<compile_context>
chip_gen: v5e
topology: v5e:2x2
jax: 0.10.0
libtpu: 0.0.40
codegen_flags: <defaults>
</compile_context>

<pallas_src>
import math

import jax
import jax.numpy as jnp
from jax.experimental import pallas as pl
from jax.experimental.pallas import tpu as pltpu


def _round_up(x, m):
    return (x + m - 1) // m * m


def _pick_vmem_limit():
    """<= 3/4 of physical per-core VMEM, capped at 96 MiB (v7x only has 64)."""
    cap = 128 * 1024 * 1024
    try:
        cap = int(pltpu.get_tpu_info().vmem_capacity_bytes)
    except Exception:
        pass
    if cap <= 0:
        cap = 128 * 1024 * 1024
    limit = min(cap * 3 // 4, 96 * 1024 * 1024)
    return int(max(limit, 32 * 1024 * 1024))


def make_kernel(T, C, H, Bt, Cp):
    d_k = C // H
    L = 2 * T                                    # padded relative-position width
    NEG = float(jnp.finfo(jnp.float32).min)

    def mm(a, b):        # (m,k) @ (k,n) -> f32 accumulation on the MXU
        return jax.lax.dot_general(a, b, (((1,), (0,)), ((), ())),
                                   preferred_element_type=jnp.float32)

    def mm_nt(a, b):     # (m,k) @ (n,k)^T -> f32
        return jax.lax.dot_general(a, b, (((1,), (1,)), ((), ())),
                                   preferred_element_type=jnp.float32)

    def kernel(q_ref, k_ref, v_ref, m_ref, p_ref, w_ref, wout_ref, bout_ref,
               vec_ref, o_ref, qu_sc, qv_sc, k_sc, v_sc, ctx_sc):
        vec = vec_ref[...]                       # (8, C) f32
        bq, bk, bv = vec[0:1], vec[1:2], vec[2:3]
        pbu, pbv = vec[3:4], vec[4:5]            # already scaled by 1/sqrt(d_k)
        wout = wout_ref[...]                     # (C, Cp) bf16
        bout = bout_ref[...]                     # (1, Cp) f32

        row = jax.lax.broadcasted_iota(jnp.int32, (T, L), 0)

        def rel_shift(bd_full):
            # bd_full: (T, L).  Returns bd[i, j] = bd_full[i, T-1 + j - i]
            # (same semantics as the torch pad->view->slice rel_shift).
            # Row i needs a cyclic right shift by i; decompose i into its bits
            # so only O(log2 T) roll+select passes are needed.
            z = bd_full
            s = 1
            while s < T:
                z = jnp.where((row & s) != 0, jnp.roll(z, s, axis=-1), z)
                s *= 2
            # z[i, j] = bd_full[i, (j - i) mod L]; the kept window [T-1, 2T-2]
            # never wraps and never touches the zero pad column at 2T-1.
            return z[:, T - 1:2 * T - 1]         # (T, T)

        for bi in range(Bt):                     # small & static (default Bt=1)
            xq = q_ref[bi]                       # (T, C) bf16
            xk = k_ref[bi]
            xv = v_ref[bi]
            mrow = m_ref[bi]                     # (1, T) f32, 1 = valid key
            valid = mrow > 0.0

            # Full-C projections (1/sqrt(d_k) already folded into wq / bq).
            q = mm(xq, w_ref[0]) + bq            # (T, C) f32
            k = mm(xk, w_ref[1]) + bk
            v = mm(xv, w_ref[2]) + bv

            qu_b = (q + pbu).astype(jnp.bfloat16)
            qv_b = (q + pbv).astype(jnp.bfloat16)
            k_b = k.astype(jnp.bfloat16)
            v_b = v.astype(jnp.bfloat16)

            # Stage per-head operands head-major so the hot loop only indexes
            # along the leading (sublane-major) axis.
            for h in range(H):
                sl = slice(h * d_k, (h + 1) * d_k)
                qu_sc[h] = qu_b[:, sl]
                qv_sc[h] = qv_b[:, sl]
                k_sc[h] = k_b[:, sl]
                v_sc[h] = v_b[:, sl]

            def head_body(h, carry):
                ac = mm_nt(qu_sc[h], k_sc[h])               # (T, T) f32
                bd = rel_shift(mm_nt(qv_sc[h], p_ref[h]))   # (T, T) f32
                sc = jnp.where(valid, ac + bd, NEG)
                sc = sc - jnp.max(sc, axis=-1, keepdims=True)
                e = jnp.exp(sc) * mrow                      # mask folded here
                denom = jnp.maximum(jnp.sum(e, axis=-1, keepdims=True), 1e-30)
                attn = e * pl.reciprocal(denom, approx=True)
                ctx_sc[h] = mm(attn.astype(jnp.bfloat16),
                               v_sc[h]).astype(jnp.bfloat16)
                return carry

            jax.lax.fori_loop(0, H, head_body, 0)

            # Single full-C output projection per batch element (lane-dense).
            ctx = jnp.concatenate([ctx_sc[hh] for hh in range(H)], axis=-1)
            y = mm(ctx, wout) + bout                        # (T, Cp) f32
            o_ref[bi] = y.astype(o_ref.dtype)

    return kernel


def rel_position_mha(query, key, value, pos_emb, mask, params, n_head,
                     block_b=1, out_dtype=jnp.float32):
    """query/key/value: (B,T,C) f32; pos_emb: (1,2T-1,C); mask: (B,1,T) 0/1."""
    B, T, C = query.shape
    H = n_head
    assert C % H == 0 and B % block_b == 0
    d_k = C // H
    M = 2 * T - 1
    assert pos_emb.shape == (1, M, C), "pos_emb must be (1, 2T-1, C)"
    assert mask.shape == (B, 1, T)
    Bt = block_b
    L = 2 * T
    Cp = _round_up(C, 128)                       # lane-dense output stores
    scale = 1.0 / math.sqrt(d_k)

    # Batch-invariant positional projection, hoisted out of the kernel.
    # Head-major layout, padded to 2T rows; the pad row (relative index 2T-1)
    # is never selected by rel_shift (window is [T-1, 2T-2]).
    pos_p = jnp.dot(pos_emb[0], params["wpos"],
                    preferred_element_type=jnp.float32)          # (M, C)
    pos_p = jnp.pad(pos_p, ((0, 1), (0, 0)))                     # (2T, C)
    assert pos_p.shape == (L, C)
    pos_hm = pos_p.reshape(L, H, d_k).transpose(1, 0, 2).astype(jnp.bfloat16)

    # Fold 1/sqrt(d_k) into the q projection and the positional biases so the
    # kernel needs no per-head scaling pass at all.
    w_pack = jnp.stack([params["wq"] * scale, params["wk"],
                        params["wv"]]).astype(jnp.bfloat16)      # (3, C, C)
    wout_p = jnp.pad(params["wout"], ((0, 0), (0, Cp - C))).astype(jnp.bfloat16)
    bout_p = jnp.pad(params["bout"], (0, Cp - C)).reshape(1, Cp).astype(jnp.float32)
    vec_pack = jnp.stack([
        params["bq"] * scale, params["bk"], params["bv"],
        params["pos_bias_u"].reshape(C) * scale,
        params["pos_bias_v"].reshape(C) * scale,
        jnp.zeros((C,), jnp.float32), jnp.zeros((C,), jnp.float32),
        jnp.zeros((C,), jnp.float32),
    ]).astype(jnp.float32)                                       # (8, C)

    qb = query.astype(jnp.bfloat16)
    kb = key.astype(jnp.bfloat16)
    vb = value.astype(jnp.bfloat16)
    maskf = mask.astype(jnp.float32)

    kernel = make_kernel(T, C, H, Bt, Cp)
    batch_spec = lambda b: (b, 0, 0)
    const3 = lambda b: (0, 0, 0)
    const2 = lambda b: (0, 0)

    def build(single_buffer_consts):
        if single_buffer_consts:
            cspec = lambda shape, imap: pl.BlockSpec(
                shape, imap, pipeline_mode=pl.Buffered(1))
        else:
            cspec = pl.BlockSpec
        return pl.pallas_call(
            kernel,
            out_shape=jax.ShapeDtypeStruct((B, T, Cp), out_dtype),
            grid_spec=pltpu.PrefetchScalarGridSpec(
                num_scalar_prefetch=0,
                grid=(B // Bt,),
                in_specs=[
                    pl.BlockSpec((Bt, T, C), batch_spec),        # query
                    pl.BlockSpec((Bt, T, C), batch_spec),        # key
                    pl.BlockSpec((Bt, T, C), batch_spec),        # value
                    pl.BlockSpec((Bt, 1, T), batch_spec),        # mask
                    cspec((H, L, d_k), const3),                  # pos (head-major)
                    cspec((3, C, C), const3),                    # packed wq/wk/wv
                    cspec((C, Cp), const2),                      # wout (padded)
                    cspec((1, Cp), const2),                      # bout (padded)
                    cspec((8, C), const2),                       # packed bias vecs
                ],
                out_specs=pl.BlockSpec((Bt, T, Cp), batch_spec),
                scratch_shapes=[pltpu.VMEM((H, T, d_k), jnp.bfloat16)] * 5,
            ),
            compiler_params=pltpu.CompilerParams(
                dimension_semantics=("parallel",),
                vmem_limit_bytes=_pick_vmem_limit()),
        )

    args = (qb, kb, vb, maskf, pos_hm, w_pack, wout_p, bout_p, vec_pack)
    try:
        out_p = build(True)(*args)
        out_p.block_until_ready()
    except Exception:
        # TODO(synk): pipeline_mode=pl.Buffered(1) unsupported on this jax
        # version; fall back to default double buffering of the constants.
        out_p = build(False)(*args)

    return out_p[..., :C] if Cp != C else out_p


# ---------------------------------------------------------------------------
# Pure-JAX reference (mirrors the PyTorch module line-by-line) for validation.
# ---------------------------------------------------------------------------
def _rel_shift_ref(x):
    """x: (B, H, T, 2T-1) -> (B, H, T, T), same as torch rel_shift."""
    Bh, Hh, Tt, Mm = x.shape
    zp = jnp.zeros((Bh, Hh, Tt, 1), x.dtype)
    xp = jnp.concatenate([zp, x], axis=-1).reshape(Bh, Hh, Mm + 1, Tt)
    return xp[:, :, 1:].reshape(Bh, Hh, Tt, Mm)[..., :Tt]


def rel_position_mha_reference(query, key, value, pos_emb, mask, params, n_head):
    B, T, C = query.shape
    H = n_head
    d_k = C // H
    M = 2 * T - 1

    q = query @ params["wq"] + params["bq"]
    k = key @ params["wk"] + params["bk"]
    v = value @ params["wv"] + params["bv"]
    q = q.reshape(B, T, H, d_k)
    k = k.reshape(B, T, H, d_k).transpose(0, 2, 1, 3)
    v = v.reshape(B, T, H, d_k).transpose(0, 2, 1, 3)

    p = (pos_emb[0] @ params["wpos"]).reshape(M, H, d_k).transpose(1, 0, 2)

    q_u = (q + params["pos_bias_u"][None, None]).transpose(0, 2, 1, 3)
    q_v = (q + params["pos_bias_v"][None, None]).transpose(0, 2, 1, 3)

    ac = jnp.einsum("bhtd,bhsd->bhts", q_u, k)
    bd = _rel_shift_ref(jnp.einsum("bhtd,hmd->bhtm", q_v, p))
    scores = (ac + bd) / math.sqrt(d_k)

    m = mask[:, None]                                 # (B,1,1,T)
    neg = jnp.finfo(jnp.float32).min
    scores = jnp.where(m > 0, scores, neg)
    attn = jax.nn.softmax(scores, axis=-1)
    attn = jnp.where(m > 0, attn, 0.0)
    ctx = jnp.einsum("bhts,bhsd->bhtd", attn, v).transpose(0, 2, 1, 3).reshape(B, T, C)
    return ctx @ params["wout"] + params["bout"]


def init_params(key, C, H):
    d_k = C // H
    ks = jax.random.split(key, 11)

    def w(k, shape, s=0.05):
        return jax.random.normal(k, shape, jnp.float32) * s

    return {
        "wq": w(ks[0], (C, C)), "bq": w(ks[1], (C,)),
        "wk": w(ks[2], (C, C)), "bk": w(ks[3], (C,)),
        "wv": w(ks[4], (C, C)), "bv": w(ks[5], (C,)),
        "wout": w(ks[6], (C, C)), "bout": w(ks[7], (C,)),
        "wpos": w(ks[8], (C, C)),
        "pos_bias_u": w(ks[9], (H, d_k)),
        "pos_bias_v": w(ks[10], (H, d_k)),
    }


if __name__ == "__main__":
    B, T, C, H = 4, 16, 64, 4

    key = jax.random.PRNGKey(0)
    kq, kk, kv, kp, kpar = jax.random.split(key, 5)
    query = jax.random.normal(kq, (B, T, C), jnp.float32)
    key_t = jax.random.normal(kk, (B, T, C), jnp.float32)
    value = jax.random.normal(kv, (B, T, C), jnp.float32)
    pos_emb = jax.random.normal(kp, (1, 2 * T - 1, C), jnp.float32)

    lengths = jnp.array([T, 12, 9, T], jnp.int32)
    mask = (jnp.arange(T)[None, :] < lengths[:, None]).astype(jnp.float32)[:, None, :]

    params = init_params(kpar, C, H)

    out = rel_position_mha(query, key_t, value, pos_emb, mask, params,
                           n_head=H, block_b=1)
    out = jax.block_until_ready(out)

    assert out.shape == (B, T, C)
    assert bool(jnp.all(jnp.isfinite(out)))

    ref = rel_position_mha_reference(query, key_t, value, pos_emb, mask, params, H)
    err = float(jnp.max(jnp.abs(out - ref)))
    assert err < 5e-2, f"max abs err vs reference: {err}"

    print("KERNEL_OK")
</pallas_src>

<mosaic_0001>
module attributes {stable_mosaic.version = 11 : i64} {
  func.func @kernel(%arg0: i32, %arg1: memref<1x16x64xbf16, #tpu.memory_space<vmem>>, %arg2: memref<1x16x64xbf16, #tpu.memory_space<vmem>>, %arg3: memref<1x16x64xbf16, #tpu.memory_space<vmem>>, %arg4: memref<1x1x16xf32, #tpu.memory_space<vmem>>, %arg5: memref<4x32x16xbf16, #tpu.memory_space<vmem>>, %arg6: memref<3x64x64xbf16, #tpu.memory_space<vmem>>, %arg7: memref<64x128xbf16, #tpu.memory_space<vmem>>, %arg8: memref<1x128xf32, #tpu.memory_space<vmem>>, %arg9: memref<8x64xf32, #tpu.memory_space<vmem>>, %arg10: memref<1x16x128xf32, #tpu.memory_space<vmem>>, %arg11: memref<4x16x16xbf16, #tpu.memory_space<vmem>>, %arg12: memref<4x16x16xbf16, #tpu.memory_space<vmem>>, %arg13: memref<4x16x16xbf16, #tpu.memory_space<vmem>>, %arg14: memref<4x16x16xbf16, #tpu.memory_space<vmem>>, %arg15: memref<4x16x16xbf16, #tpu.memory_space<vmem>>) attributes {dimension_semantics = [#tpu.dimension_semantics<parallel>], iteration_bounds = array<i64: 4>, scalar_prefetch = 0 : i64, scratch_operands = 5 : i64, tpu.core_type = #tpu.core_type<tc>, window_params = [{transform_indices = @transform_0, window_bounds = array<i64: 1, 16, 64>}, {transform_indices = @transform_1, window_bounds = array<i64: 1, 16, 64>}, {transform_indices = @transform_2, window_bounds = array<i64: 1, 16, 64>}, {transform_indices = @transform_3, window_bounds = array<i64: 1, 1, 16>}, {pipeline_mode = #tpu.pipeline_mode<synchronous>, transform_indices = @transform_4, window_bounds = array<i64: 4, 32, 16>}, {pipeline_mode = #tpu.pipeline_mode<synchronous>, transform_indices = @transform_5, window_bounds = array<i64: 3, 64, 64>}, {pipeline_mode = #tpu.pipeline_mode<synchronous>, transform_indices = @transform_6, window_bounds = array<i64: 64, 128>}, {pipeline_mode = #tpu.pipeline_mode<synchronous>, transform_indices = @transform_7, window_bounds = array<i64: 1, 128>}, {pipeline_mode = #tpu.pipeline_mode<synchronous>, transform_indices = @transform_8, window_bounds = array<i64: 8, 64>}, {transform_indices = @transform_9, window_bounds = array<i64: 1, 16, 128>}]} {
    %c0 = arith.constant 0 : index
    %c0_0 = arith.constant 0 : index
    %0 = vector.load %arg9[%c0, %c0_0] : memref<8x64xf32, #tpu.memory_space<vmem>>, vector<8x64xf32>
    %1 = vector.extract_strided_slice %0 {offsets = [0, 0], sizes = [1, 64], strides = [1, 1]} : vector<8x64xf32> to vector<1x64xf32>
    %2 = vector.extract_strided_slice %0 {offsets = [1, 0], sizes = [1, 64], strides = [1, 1]} : vector<8x64xf32> to vector<1x64xf32>
    %3 = vector.extract_strided_slice %0 {offsets = [2, 0], sizes = [1, 64], strides = [1, 1]} : vector<8x64xf32> to vector<1x64xf32>
    %4 = vector.extract_strided_slice %0 {offsets = [3, 0], sizes = [1, 64], strides = [1, 1]} : vector<8x64xf32> to vector<1x64xf32>
    %5 = vector.extract_strided_slice %0 {offsets = [4, 0], sizes = [1, 64], strides = [1, 1]} : vector<8x64xf32> to vector<1x64xf32>
    %c0_1 = arith.constant 0 : index
    %c0_2 = arith.constant 0 : index
    %6 = vector.load %arg7[%c0_1, %c0_2] : memref<64x128xbf16, #tpu.memory_space<vmem>>, vector<64x128xbf16>
    %c0_3 = arith.constant 0 : index
    %c0_4 = arith.constant 0 : index
    %7 = vector.load %arg8[%c0_3, %c0_4] : memref<1x128xf32, #tpu.memory_space<vmem>>, vector<1x128xf32>
    %8 = tpu.iota {dimensions = array<i32: 0>} : vector<16x32xi32>
    %c0_5 = arith.constant 0 : index
    %c0_6 = arith.constant 0 : index
    %c0_7 = arith.constant 0 : index
    %9 = vector.load %arg1[%c0_5, %c0_6, %c0_7] : memref<1x16x64xbf16, #tpu.memory_space<vmem>>, vector<1x16x64xbf16>
    %10 = vector.shape_cast %9 : vector<1x16x64xbf16> to vector<16x64xbf16>
    %c0_8 = arith.constant 0 : index
    %c0_9 = arith.constant 0 : index
    %c0_10 = arith.constant 0 : index
    %11 = vector.load %arg2[%c0_8, %c0_9, %c0_10] : memref<1x16x64xbf16, #tpu.memory_space<vmem>>, vector<1x16x64xbf16>
    %12 = vector.shape_cast %11 : vector<1x16x64xbf16> to vector<16x64xbf16>
    %c0_11 = arith.constant 0 : index
    %c0_12 = arith.constant 0 : index
    %c0_13 = arith.constant 0 : index
    %13 = vector.load %arg3[%c0_11, %c0_12, %c0_13] : memref<1x16x64xbf16, #tpu.memory_space<vmem>>, vector<1x16x64xbf16>
    %14 = vector.shape_cast %13 : vector<1x16x64xbf16> to vector<16x64xbf16>
    %c0_14 = arith.constant 0 : index
    %c0_15 = arith.constant 0 : index
    %c0_16 = arith.constant 0 : index
    %15 = vector.load %arg4[%c0_14, %c0_15, %c0_16] : memref<1x1x16xf32, #tpu.memory_space<vmem>>, vector<1x1x16xf32>
    %16 = vector.shape_cast %15 : vector<1x1x16xf32> to vector<1x16xf32>
    %cst = arith.constant 0.000000e+00 : f32
    %17 = vector.broadcast %cst : f32 to vector<1x16xf32>
    %18 = arith.cmpf ogt, %16, %17 : vector<1x16xf32>
    %c0_17 = arith.constant 0 : index
    %c0_18 = arith.constant 0 : index
    %c0_19 = arith.constant 0 : index
    %19 = vector.load %arg6[%c0_17, %c0_18, %c0_19] : memref<3x64x64xbf16, #tpu.memory_space<vmem>>, vector<1x64x64xbf16>
    %20 = vector.shape_cast %19 : vector<1x64x64xbf16> to vector<64x64xbf16>
    %cst_20 = arith.constant dense<0.000000e+00> : vector<16x64xf32>
    %21 = tpu.matmul %10, %20, %cst_20 {dimension_numbers = #tpu.dot_dimension_numbers<[1], [0], [0], [1], [0, 0, 1, 1], [], []>} : vector<16x64xbf16>, vector<64x64xbf16>, vector<16x64xf32> -> vector<16x64xf32>
    %22 = vector.broadcast %1 : vector<1x64xf32> to vector<16x64xf32>
    %23 = arith.addf %21, %22 : vector<16x64xf32>
    %c1 = arith.constant 1 : index
    %c0_21 = arith.constant 0 : index
    %c0_22 = arith.constant 0 : index
    %24 = vector.load %arg6[%c1, %c0_21, %c0_22] : memref<3x64x64xbf16, #tpu.memory_space<vmem>>, vector<1x64x64xbf16>
    %25 = vector.shape_cast %24 : vector<1x64x64xbf16> to vector<64x64xbf16>
    %cst_23 = arith.constant dense<0.000000e+00> : vector<16x64xf32>
    %26 = tpu.matmul %12, %25, %cst_23 {dimension_numbers = #tpu.dot_dimension_numbers<[1], [0], [0], [1], [0, 0, 1, 1], [], []>} : vector<16x64xbf16>, vector<64x64xbf16>, vector<16x64xf32> -> vector<16x64xf32>
    %27 = vector.broadcast %2 : vector<1x64xf32> to vector<16x64xf32>
    %28 = arith.addf %26, %27 : vector<16x64xf32>
    %c2 = arith.constant 2 : index
    %c0_24 = arith.constant 0 : index
    %c0_25 = arith.constant 0 : index
    %29 = vector.load %arg6[%c2, %c0_24, %c0_25] : memref<3x64x64xbf16, #tpu.memory_space<vmem>>, vector<1x64x64xbf16>
    %30 = vector.shape_cast %29 : vector<1x64x64xbf16> to vector<64x64xbf16>
    %cst_26 = arith.constant dense<0.000000e+00> : vector<16x64xf32>
    %31 = tpu.matmul %14, %30, %cst_26 {dimension_numbers = #tpu.dot_dimension_numbers<[1], [0], [0], [1], [0, 0, 1, 1], [], []>} : vector<16x64xbf16>, vector<64x64xbf16>, vector<16x64xf32> -> vector<16x64xf32>
    %32 = vector.broadcast %3 : vector<1x64xf32> to vector<16x64xf32>
    %33 = arith.addf %31, %32 : vector<16x64xf32>
    %34 = vector.broadcast %4 : vector<1x64xf32> to vector<16x64xf32>
    %35 = arith.addf %23, %34 : vector<16x64xf32>
    %36 = arith.truncf %35 : vector<16x64xf32> to vector<16x64xbf16>
    %37 = vector.broadcast %5 : vector<1x64xf32> to vector<16x64xf32>
    %38 = arith.addf %23, %37 : vector<16x64xf32>
    %39 = arith.truncf %38 : vector<16x64xf32> to vector<16x64xbf16>
    %40 = arith.truncf %28 : vector<16x64xf32> to vector<16x64xbf16>
    %41 = arith.truncf %33 : vector<16x64xf32> to vector<16x64xbf16>
    %42 = vector.extract_strided_slice %36 {offsets = [0, 0], sizes = [16, 16], strides = [1, 1]} : vector<16x64xbf16> to vector<16x16xbf16>
    %c0_27 = arith.constant 0 : index
    %c0_28 = arith.constant 0 : index
    %c0_29 = arith.constant 0 : index
    %43 = vector.load %arg11[%c0_27, %c0_28, %c0_29] : memref<4x16x16xbf16, #tpu.memory_space<vmem>>, vector<1x16x16xbf16>
    %44 = vector.shape_cast %43 : vector<1x16x16xbf16> to vector<16x16xbf16>
    %45 = vector.shape_cast %42 : vector<16x16xbf16> to vector<1x16x16xbf16>
    tpu.vector_store %arg11[%c0_27, %c0_28, %c0_29], %45 {strides = array<i32>} : memref<4x16x16xbf16, #tpu.memory_space<vmem>>, vector<1x16x16xbf16>,
    %46 = vector.extract_strided_slice %39 {offsets = [0, 0], sizes = [16, 16], strides = [1, 1]} : vector<16x64xbf16> to vector<16x16xbf16>
    %c0_30 = arith.constant 0 : index
    %c0_31 = arith.constant 0 : index
    %c0_32 = arith.constant 0 : index
    %47 = vector.load %arg12[%c0_30, %c0_31, %c0_32] : memref<4x16x16xbf16, #tpu.memory_space<vmem>>, vector<1x16x16xbf16>
    %48 = vector.shape_cast %47 : vector<1x16x16xbf16> to vector<16x16xbf16>
    %49 = vector.shape_cast %46 : vector<16x16xbf16> to vector<1x16x16xbf16>
    tpu.vector_store %arg12[%c0_30, %c0_31, %c0_32], %49 {strides = array<i32>} : memref<4x16x16xbf16, #tpu.memory_space<vmem>>, vector<1x16x16xbf16>,
    %50 = vector.extract_strided_slice %40 {offsets = [0, 0], sizes = [16, 16], strides = [1, 1]} : vector<16x64xbf16> to vector<16x16xbf16>
    %c0_33 = arith.constant 0 : index
    %c0_34 = arith.constant 0 : index
    %c0_35 = arith.constant 0 : index
    %51 = vector.load %arg13[%c0_33, %c0_34, %c0_35] : memref<4x16x16xbf16, #tpu.memory_space<vmem>>, vector<1x16x16xbf16>
    %52 = vector.shape_cast %51 : vector<1x16x16xbf16> to vector<16x16xbf16>
    %53 = vector.shape_cast %50 : vector<16x16xbf16> to vector<1x16x16xbf16>
    tpu.vector_store %arg13[%c0_33, %c0_34, %c0_35], %53 {strides = array<i32>} : memref<4x16x16xbf16, #tpu.memory_space<vmem>>, vector<1x16x16xbf16>,
    %54 = vector.extract_strided_slice %41 {offsets = [0, 0], sizes = [16, 16], strides = [1, 1]} : vector<16x64xbf16> to vector<16x16xbf16>
    %c0_36 = arith.constant 0 : index
    %c0_37 = arith.constant 0 : index
    %c0_38 = arith.constant 0 : index
    %55 = vector.load %arg14[%c0_36, %c0_37, %c0_38] : memref<4x16x16xbf16, #tpu.memory_space<vmem>>, vector<1x16x16xbf16>
    %56 = vector.shape_cast %55 : vector<1x16x16xbf16> to vector<16x16xbf16>
    %57 = vector.shape_cast %54 : vector<16x16xbf16> to vector<1x16x16xbf16>
    tpu.vector_store %arg14[%c0_36, %c0_37, %c0_38], %57 {strides = array<i32>} : memref<4x16x16xbf16, #tpu.memory_space<vmem>>, vector<1x16x16xbf16>,
    %58 = vector.extract_strided_slice %36 {offsets = [0, 16], sizes = [16, 16], strides = [1, 1]} : vector<16x64xbf16> to vector<16x16xbf16>
    %c1_39 = arith.constant 1 : index
    %c0_40 = arith.constant 0 : index
    %c0_41 = arith.constant 0 : index
    %59 = vector.load %arg11[%c1_39, %c0_40, %c0_41] : memref<4x16x16xbf16, #tpu.memory_space<vmem>>, vector<1x16x16xbf16>
    %60 = vector.shape_cast %59 : vector<1x16x16xbf16> to vector<16x16xbf16>
    %61 = vector.shape_cast %58 : vector<16x16xbf16> to vector<1x16x16xbf16>
    tpu.vector_store %arg11[%c1_39, %c0_40, %c0_41], %61 {strides = array<i32>} : memref<4x16x16xbf16, #tpu.memory_space<vmem>>, vector<1x16x16xbf16>,
    %62 = vector.extract_strided_slice %39 {offsets = [0, 16], sizes = [16, 16], strides = [1, 1]} : vector<16x64xbf16> to vector<16x16xbf16>
    %c1_42 = arith.constant 1 : index
    %c0_43 = arith.constant 0 : index
    %c0_44 = arith.constant 0 : index
    %63 = vector.load %arg12[%c1_42, %c0_43, %c0_44] : memref<4x16x16xbf16, #tpu.memory_space<vmem>>, vector<1x16x16xbf16>
    %64 = vector.shape_cast %63 : vector<1x16x16xbf16> to vector<16x16xbf16>
    %65 = vector.shape_cast %62 : vector<16x16xbf16> to vector<1x16x16xbf16>
    tpu.vector_store %arg12[%c1_42, %c0_43, %c0_44], %65 {strides = array<i32>} : memref<4x16x16xbf16, #tpu.memory_space<vmem>>, vector<1x16x16xbf16>,
    %66 = vector.extract_strided_slice %40 {offsets = [0, 16], sizes = [16, 16], strides = [1, 1]} : vector<16x64xbf16> to vector<16x16xbf16>
    %c1_45 = arith.constant 1 : index
    %c0_46 = arith.constant 0 : index
    %c0_47 = arith.constant 0 : index
    %67 = vector.load %arg13[%c1_45, %c0_46, %c0_47] : memref<4x16x16xbf16, #tpu.memory_space<vmem>>, vector<1x16x16xbf16>
    %68 = vector.shape_cast %67 : vector<1x16x16xbf16> to vector<16x16xbf16>
    %69 = vector.shape_cast %66 : vector<16x16xbf16> to vector<1x16x16xbf16>
    tpu.vector_store %arg13[%c1_45, %c0_46, %c0_47], %69 {strides = array<i32>} : memref<4x16x16xbf16, #tpu.memory_space<vmem>>, vector<1x16x16xbf16>,
    %70 = vector.extract_strided_slice %41 {offsets = [0, 16], sizes = [16, 16], strides = [1, 1]} : vector<16x64xbf16> to vector<16x16xbf16>
    %c1_48 = arith.constant 1 : index
    %c0_49 = arith.constant 0 : index
    %c0_50 = arith.constant 0 : index
    %71 = vector.load %arg14[%c1_48, %c0_49, %c0_50] : memref<4x16x16xbf16, #tpu.memory_space<vmem>>, vector<1x16x16xbf16>
    %72 = vector.shape_cast %71 : vector<1x16x16xbf16> to vector<16x16xbf16>
    %73 = vector.shape_cast %70 : vector<16x16xbf16> to vector<1x16x16xbf16>
    tpu.vector_store %arg14[%c1_48, %c0_49, %c0_50], %73 {strides = array<i32>} : memref<4x16x16xbf16, #tpu.memory_space<vmem>>, vector<1x16x16xbf16>,
    %74 = vector.extract_strided_slice %36 {offsets = [0, 32], sizes = [16, 16], strides = [1, 1]} : vector<16x64xbf16> to vector<16x16xbf16>
    %c2_51 = arith.constant 2 : index
    %c0_52 = arith.constant 0 : index
    %c0_53 = arith.constant 0 : index
    %75 = vector.load %arg11[%c2_51, %c0_52, %c0_53] : memref<4x16x16xbf16, #tpu.memory_space<vmem>>, vector<1x16x16xbf16>
    %76 = vector.shape_cast %75 : vector<1x16x16xbf16> to vector<16x16xbf16>
    %77 = vector.shape_cast %74 : vector<16x16xbf16> to vector<1x16x16xbf16>
    tpu.vector_store %arg11[%c2_51, %c0_52, %c0_53], %77 {strides = array<i32>} : memref<4x16x16xbf16, #tpu.memory_space<vmem>>, vector<1x16x16xbf16>,
    %78 = vector.extract_strided_slice %39 {offsets = [0, 32], sizes = [16, 16], strides = [1, 1]} : vector<16x64xbf16> to vector<16x16xbf16>
    %c2_54 = arith.constant 2 : index
    %c0_55 = arith.constant 0 : index
    %c0_56 = arith.constant 0 : index
    %79 = vector.load %arg12[%c2_54, %c0_55, %c0_56] : memref<4x16x16xbf16, #tpu.memory_space<vmem>>, vector<1x16x16xbf16>
    %80 = vector.shape_cast %79 : vector<1x16x16xbf16> to vector<16x16xbf16>
    %81 = vector.shape_cast %78 : vector<16x16xbf16> to vector<1x16x16xbf16>
    tpu.vector_store %arg12[%c2_54, %c0_55, %c0_56], %81 {strides = array<i32>} : memref<4x16x16xbf16, #tpu.memory_space<vmem>>, vector<1x16x16xbf16>,
    %82 = vector.extract_strided_slice %40 {offsets = [0, 32], sizes = [16, 16], strides = [1, 1]} : vector<16x64xbf16> to vector<16x16xbf16>
    %c2_57 = arith.constant 2 : index
    %c0_58 = arith.constant 0 : index
    %c0_59 = arith.constant 0 : index
    %83 = vector.load %arg13[%c2_57, %c0_58, %c0_59] : memref<4x16x16xbf16, #tpu.memory_space<vmem>>, vector<1x16x16xbf16>
    %84 = vector.shape_cast %83 : vector<1x16x16xbf16> to vector<16x16xbf16>
    %85 = vector.shape_cast %82 : vector<16x16xbf16> to vector<1x16x16xbf16>
    tpu.vector_store %arg13[%c2_57, %c0_58, %c0_59], %85 {strides = array<i32>} : memref<4x16x16xbf16, #tpu.memory_space<vmem>>, vector<1x16x16xbf16>,
    %86 = vector.extract_strided_slice %41 {offsets = [0, 32], sizes = [16, 16], strides = [1, 1]} : vector<16x64xbf16> to vector<16x16xbf16>
    %c2_60 = arith.constant 2 : index
    %c0_61 = arith.constant 0 : index
    %c0_62 = arith.constant 0 : index
    %87 = vector.load %arg14[%c2_60, %c0_61, %c0_62] : memref<4x16x16xbf16, #tpu.memory_space<vmem>>, vector<1x16x16xbf16>
    %88 = vector.shape_cast %87 : vector<1x16x16xbf16> to vector<16x16xbf16>
    %89 = vector.shape_cast %86 : vector<16x16xbf16> to vector<1x16x16xbf16>
    tpu.vector_store %arg14[%c2_60, %c0_61, %c0_62], %89 {strides = array<i32>} : memref<4x16x16xbf16, #tpu.memory_space<vmem>>, vector<1x16x16xbf16>,
    %90 = vector.extract_strided_slice %36 {offsets = [0, 48], sizes = [16, 16], strides = [1, 1]} : vector<16x64xbf16> to vector<16x16xbf16>
    %c3 = arith.constant 3 : index
    %c0_63 = arith.constant 0 : index
    %c0_64 = arith.constant 0 : index
    %91 = vector.load %arg11[%c3, %c0_63, %c0_64] : memref<4x16x16xbf16, #tpu.memory_space<vmem>>, vector<1x16x16xbf16>
    %92 = vector.shape_cast %91 : vector<1x16x16xbf16> to vector<16x16xbf16>
    %93 = vector.shape_cast %90 : vector<16x16xbf16> to vector<1x16x16xbf16>
    tpu.vector_store %arg11[%c3, %c0_63, %c0_64], %93 {strides = array<i32>} : memref<4x16x16xbf16, #tpu.memory_space<vmem>>, vector<1x16x16xbf16>,
    %94 = vector.extract_strided_slice %39 {offsets = [0, 48], sizes = [16, 16], strides = [1, 1]} : vector<16x64xbf16> to vector<16x16xbf16>
    %c3_65 = arith.constant 3 : index
    %c0_66 = arith.constant 0 : index
    %c0_67 = arith.constant 0 : index
    %95 = vector.load %arg12[%c3_65, %c0_66, %c0_67] : memref<4x16x16xbf16, #tpu.memory_space<vmem>>, vector<1x16x16xbf16>
    %96 = vector.shape_cast %95 : vector<1x16x16xbf16> to vector<16x16xbf16>
    %97 = vector.shape_cast %94 : vector<16x16xbf16> to vector<1x16x16xbf16>
    tpu.vector_store %arg12[%c3_65, %c0_66, %c0_67], %97 {strides = array<i32>} : memref<4x16x16xbf16, #tpu.memory_space<vmem>>, vector<1x16x16xbf16>,
    %98 = vector.extract_strided_slice %40 {offsets = [0, 48], sizes = [16, 16], strides = [1, 1]} : vector<16x64xbf16> to vector<16x16xbf16>
    %c3_68 = arith.constant 3 : index
    %c0_69 = arith.constant 0 : index
    %c0_70 = arith.constant 0 : index
    %99 = vector.load %arg13[%c3_68, %c0_69, %c0_70] : memref<4x16x16xbf16, #tpu.memory_space<vmem>>, vector<1x16x16xbf16>
    %100 = vector.shape_cast %99 : vector<1x16x16xbf16> to vector<16x16xbf16>
    %101 = vector.shape_cast %98 : vector<16x16xbf16> to vector<1x16x16xbf16>
    tpu.vector_store %arg13[%c3_68, %c0_69, %c0_70], %101 {strides = array<i32>} : memref<4x16x16xbf16, #tpu.memory_space<vmem>>, vector<1x16x16xbf16>,
    %102 = vector.extract_strided_slice %41 {offsets = [0, 48], sizes = [16, 16], strides = [1, 1]} : vector<16x64xbf16> to vector<16x16xbf16>
    %c3_71 = arith.constant 3 : index
    %c0_72 = arith.constant 0 : index
    %c0_73 = arith.constant 0 : index
    %103 = vector.load %arg14[%c3_71, %c0_72, %c0_73] : memref<4x16x16xbf16, #tpu.memory_space<vmem>>, vector<1x16x16xbf16>
    %104 = vector.shape_cast %103 : vector<1x16x16xbf16> to vector<16x16xbf16>
    %105 = vector.shape_cast %102 : vector<16x16xbf16> to vector<1x16x16xbf16>
    tpu.vector_store %arg14[%c3_71, %c0_72, %c0_73], %105 {strides = array<i32>} : memref<4x16x16xbf16, #tpu.memory_space<vmem>>, vector<1x16x16xbf16>,
    %c0_i32 = arith.constant 0 : i32
    %c4_i32 = arith.constant 4 : i32
    %106 = arith.addi %c0_i32, %c4_i32 : i32
    %c1_i32 = arith.constant 1 : i32
    scf.for %arg16 = %c0_i32 to %106 step %c1_i32  : i32 {
      %122 = arith.index_cast %arg16 : i32 to index
      %c0_91 = arith.constant 0 : index
      %c0_92 = arith.constant 0 : index
      %123 = vector.load %arg11[%122, %c0_91, %c0_92] : memref<4x16x16xbf16, #tpu.memory_space<vmem>>, vector<1x16x16xbf16>
      %124 = vector.shape_cast %123 : vector<1x16x16xbf16> to vector<16x16xbf16>
      %125 = arith.index_cast %arg16 : i32 to index
      %c0_93 = arith.constant 0 : index
      %c0_94 = arith.constant 0 : index
      %126 = vector.load %arg13[%125, %c0_93, %c0_94] : memref<4x16x16xbf16, #tpu.memory_space<vmem>>, vector<1x16x16xbf16>
      %127 = vector.shape_cast %126 : vector<1x16x16xbf16> to vector<16x16xbf16>
      %cst_95 = arith.constant dense<0.000000e+00> : vector<16x16xf32>
      %128 = tpu.matmul %124, %127, %cst_95 {dimension_numbers = #tpu.dot_dimension_numbers<[1], [1], [0], [0], [0, 0, 1, 0], [], []>} : vector<16x16xbf16>, vector<16x16xbf16>, vector<16x16xf32> -> vector<16x16xf32>
      %129 = arith.index_cast %arg16 : i32 to index
      %c0_96 = arith.constant 0 : index
      %c0_97 = arith.constant 0 : index
      %130 = vector.load %arg12[%129, %c0_96, %c0_97] : memref<4x16x16xbf16, #tpu.memory_space<vmem>>, vector<1x16x16xbf16>
      %131 = vector.shape_cast %130 : vector<1x16x16xbf16> to vector<16x16xbf16>
      %132 = arith.index_cast %arg16 : i32 to index
      %c0_98 = arith.constant 0 : index
      %c0_99 = arith.constant 0 : index
      %133 = vector.load %arg5[%132, %c0_98, %c0_99] : memref<4x32x16xbf16, #tpu.memory_space<vmem>>, vector<1x32x16xbf16>
      %134 = vector.shape_cast %133 : vector<1x32x16xbf16> to vector<32x16xbf16>
      %cst_100 = arith.constant dense<0.000000e+00> : vector<16x32xf32>
      %135 = tpu.matmul %131, %134, %cst_100 {dimension_numbers = #tpu.dot_dimension_numbers<[1], [1], [0], [0], [0, 0, 1, 0], [], []>} : vector<16x16xbf16>, vector<32x16xbf16>, vector<16x32xf32> -> vector<16x32xf32>
      %c1_i32_101 = arith.constant 1 : i32
      %136 = vector.broadcast %c1_i32_101 : i32 to vector<16x32xi32>
      %137 = arith.andi %8, %136 : vector<16x32xi32>
      %c0_i32_102 = arith.constant 0 : i32
      %138 = vector.broadcast %c0_i32_102 : i32 to vector<16x32xi32>
      %139 = arith.cmpi ne, %137, %138 : vector<16x32xi32>
      %140 = vector.extract_strided_slice %135 {offsets = [0, 31], sizes = [16, 1], strides = [1, 1]} : vector<16x32xf32> to vector<16x1xf32>
      %141 = vector.extract_strided_slice %135 {offsets = [0, 0], sizes = [16, 31], strides = [1, 1]} : vector<16x32xf32> to vector<16x31xf32>
      %142 = tpu.concatenate %140, %141 in 1 : vector<16x1xf32>, vector<16x31xf32> -> vector<16x32xf32>
      %143 = arith.select %139, %142, %135 : vector<16x32xi1>, vector<16x32xf32>
      %c2_i32 = arith.constant 2 : i32
      %144 = vector.broadcast %c2_i32 : i32 to vector<16x32xi32>
      %145 = arith.andi %8, %144 : vector<16x32xi32>
      %c0_i32_103 = arith.constant 0 : i32
      %146 = vector.broadcast %c0_i32_103 : i32 to vector<16x32xi32>
      %147 = arith.cmpi ne, %145, %146 : vector<16x32xi32>
      %148 = vector.extract_strided_slice %143 {offsets = [0, 30], sizes = [16, 2], strides = [1, 1]} : vector<16x32xf32> to vector<16x2xf32>
      %149 = vector.extract_strided_slice %143 {offsets = [0, 0], sizes = [16, 30], strides = [1, 1]} : vector<16x32xf32> to vector<16x30xf32>
      %150 = tpu.concatenate %148, %149 in 1 : vector<16x2xf32>, vector<16x30xf32> -> vector<16x32xf32>
      %151 = arith.select %147, %150, %143 : vector<16x32xi1>, vector<16x32xf32>
      %c4_i32_104 = arith.constant 4 : i32
      %152 = vector.broadcast %c4_i32_104 : i32 to vector<16x32xi32>
      %153 = arith.andi %8, %152 : vector<16x32xi32>
      %c0_i32_105 = arith.constant 0 : i32
      %154 = vector.broadcast %c0_i32_105 : i32 to vector<16x32xi32>
      %155 = arith.cmpi ne, %153, %154 : vector<16x32xi32>
      %156 = vector.extract_strided_slice %151 {offsets = [0, 28], sizes = [16, 4], strides = [1, 1]} : vector<16x32xf32> to vector<16x4xf32>
      %157 = vector.extract_strided_slice %151 {offsets = [0, 0], sizes = [16, 28], strides = [1, 1]} : vector<16x32xf32> to vector<16x28xf32>
      %158 = tpu.concatenate %156, %157 in 1 : vector<16x4xf32>, vector<16x28xf32> -> vector<16x32xf32>
      %159 = arith.select %155, %158, %151 : vector<16x32xi1>, vector<16x32xf32>
      %c8_i32 = arith.constant 8 : i32
      %160 = vector.broadcast %c8_i32 : i32 to vector<16x32xi32>
      %161 = arith.andi %8, %160 : vector<16x32xi32>
      %c0_i32_106 = arith.constant 0 : i32
      %162 = vector.broadcast %c0_i32_106 : i32 to vector<16x32xi32>
      %163 = arith.cmpi ne, %161, %162 : vector<16x32xi32>
      %164 = vector.extract_strided_slice %159 {offsets = [0, 24], sizes = [16, 8], strides = [1, 1]} : vector<16x32xf32> to vector<16x8xf32>
      %165 = vector.extract_strided_slice %159 {offsets = [0, 0], sizes = [16, 24], strides = [1, 1]} : vector<16x32xf32> to vector<16x24xf32>
      %166 = tpu.concatenate %164, %165 in 1 : vector<16x8xf32>, vector<16x24xf32> -> vector<16x32xf32>
      %167 = arith.select %163, %166, %159 : vector<16x32xi1>, vector<16x32xf32>
      %168 = vector.extract_strided_slice %167 {offsets = [0, 15], sizes = [16, 16], strides = [1, 1]} : vector<16x32xf32> to vector<16x16xf32>
      %169 = arith.addf %128, %168 : vector<16x16xf32>
      %cst_107 = arith.constant -3.40282347E+38 : f32
      %170 = vector.shape_cast %18 : vector<1x16xi1> to vector<1x16xi1>
      %171 = vector.broadcast %170 : vector<1x16xi1> to vector<16x16xi1>
      %172 = vector.broadcast %cst_107 : f32 to vector<16x16xf32>
      %173 = arith.select %171, %169, %172 : vector<16x16xi1>, vector<16x16xf32>
      %cst_108 = arith.constant dense<0xFF800000> : vector<16xf32>
      %174 = vector.multi_reduction <maximumf>, %173, %cst_108 [1] : vector<16x16xf32> to vector<16xf32>
      %175 = vector.shape_cast %174 : vector<16xf32> to vector<16x1xf32>
      %176 = vector.broadcast %175 : vector<16x1xf32> to vector<16x16xf32>
      %177 = arith.subf %173, %176 : vector<16x16xf32>
      %178 = math.exp %177 : vector<16x16xf32>
      %179 = vector.broadcast %16 : vector<1x16xf32> to vector<16x16xf32>
      %180 = arith.mulf %178, %179 : vector<16x16xf32>
      %cst_109 = arith.constant dense<0.000000e+00> : vector<16xf32>
      %181 = vector.multi_reduction <add>, %180, %cst_109 [1] : vector<16x16xf32> to vector<16xf32>
      %182 = vector.shape_cast %181 : vector<16xf32> to vector<16x1xf32>
      %cst_110 = arith.constant 1.000000e-30 : f32
      %183 = vector.broadcast %cst_110 : f32 to vector<16x1xf32>
      %184 = arith.maximumf %182, %183 : vector<16x1xf32>
      %185 = tpu.reciprocal %184 {approx = true} : vector<16x1xf32> -> vector<16x1xf32>
      %186 = vector.broadcast %185 : vector<16x1xf32> to vector<16x16xf32>
      %187 = arith.mulf %180, %186 : vector<16x16xf32>
      %188 = arith.truncf %187 : vector<16x16xf32> to vector<16x16xbf16>
      %189 = arith.index_cast %arg16 : i32 to index
      %c0_111 = arith.constant 0 : index
      %c0_112 = arith.constant 0 : index
      %190 = vector.load %arg14[%189, %c0_111, %c0_112] : memref<4x16x16xbf16, #tpu.memory_space<vmem>>, vector<1x16x16xbf16>
      %191 = vector.shape_cast %190 : vector<1x16x16xbf16> to vector<16x16xbf16>
      %cst_113 = arith.constant dense<0.000000e+00> : vector<16x16xf32>
      %192 = tpu.matmul %188, %191, %cst_113 {dimension_numbers = #tpu.dot_dimension_numbers<[1], [0], [0], [1], [0, 0, 1, 1], [], []>} : vector<16x16xbf16>, vector<16x16xbf16>, vector<16x16xf32> -> vector<16x16xf32>
      %193 = arith.truncf %192 : vector<16x16xf32> to vector<16x16xbf16>
      %194 = arith.index_cast %arg16 : i32 to index
      %c0_114 = arith.constant 0 : index
      %c0_115 = arith.constant 0 : index
      %195 = vector.load %arg15[%194, %c0_114, %c0_115] : memref<4x16x16xbf16, #tpu.memory_space<vmem>>, vector<1x16x16xbf16>
      %196 = vector.shape_cast %195 : vector<1x16x16xbf16> to vector<16x16xbf16>
      %197 = vector.shape_cast %193 : vector<16x16xbf16> to vector<1x16x16xbf16>
      tpu.vector_store %arg15[%194, %c0_114, %c0_115], %197 {strides = array<i32>} : memref<4x16x16xbf16, #tpu.memory_space<vmem>>, vector<1x16x16xbf16>,
    }
    %c4_i32_74 = arith.constant 4 : i32
    %c0_75 = arith.constant 0 : index
    %c0_76 = arith.constant 0 : index
    %c0_77 = arith.constant 0 : index
    %107 = vector.load %arg15[%c0_75, %c0_76, %c0_77] : memref<4x16x16xbf16, #tpu.memory_space<vmem>>, vector<1x16x16xbf16>
    %108 = vector.shape_cast %107 : vector<1x16x16xbf16> to vector<16x16xbf16>
    %c1_78 = arith.constant 1 : index
    %c0_79 = arith.constant 0 : index
    %c0_80 = arith.constant 0 : index
    %109 = vector.load %arg15[%c1_78, %c0_79, %c0_80] : memref<4x16x16xbf16, #tpu.memory_space<vmem>>, vector<1x16x16xbf16>
    %110 = vector.shape_cast %109 : vector<1x16x16xbf16> to vector<16x16xbf16>
    %c2_81 = arith.constant 2 : index
    %c0_82 = arith.constant 0 : index
    %c0_83 = arith.constant 0 : index
    %111 = vector.load %arg15[%c2_81, %c0_82, %c0_83] : memref<4x16x16xbf16, #tpu.memory_space<vmem>>, vector<1x16x16xbf16>
    %112 = vector.shape_cast %111 : vector<1x16x16xbf16> to vector<16x16xbf16>
    %c3_84 = arith.constant 3 : index
    %c0_85 = arith.constant 0 : index
    %c0_86 = arith.constant 0 : index
    %113 = vector.load %arg15[%c3_84, %c0_85, %c0_86] : memref<4x16x16xbf16, #tpu.memory_space<vmem>>, vector<1x16x16xbf16>
    %114 = vector.shape_cast %113 : vector<1x16x16xbf16> to vector<16x16xbf16>
    %115 = tpu.concatenate %108, %110, %112, %114 in 1 : vector<16x16xbf16>, vector<16x16xbf16>, vector<16x16xbf16>, vector<16x16xbf16> -> vector<16x64xbf16>
    %cst_87 = arith.constant dense<0.000000e+00> : vector<16x128xf32>
    %116 = tpu.matmul %115, %6, %cst_87 {dimension_numbers = #tpu.dot_dimension_numbers<[1], [0], [0], [1], [0, 0, 1, 1], [], []>} : vector<16x64xbf16>, vector<64x128xbf16>, vector<16x128xf32> -> vector<16x128xf32>
    %117 = vector.broadcast %7 : vector<1x128xf32> to vector<16x128xf32>
    %118 = arith.addf %116, %117 : vector<16x128xf32>
    %c0_88 = arith.constant 0 : index
    %c0_89 = arith.constant 0 : index
    %c0_90 = arith.constant 0 : index
    %119 = vector.load %arg10[%c0_88, %c0_89, %c0_90] : memref<1x16x128xf32, #tpu.memory_space<vmem>>, vector<1x16x128xf32>
    %120 = vector.shape_cast %119 : vector<1x16x128xf32> to vector<16x128xf32>
    %121 = vector.shape_cast %118 : vector<16x128xf32> to vector<1x16x128xf32>
    tpu.vector_store %arg10[%c0_88, %c0_89, %c0_90], %121 {strides = array<i32>} : memref<1x16x128xf32, #tpu.memory_space<vmem>>, vector<1x16x128xf32>,
    return
  }
  func.func @transform_0(%arg0: i32) -> (i32, i32, i32) {
    %c0_i32 = arith.constant 0 : i32
    %c0_i32_0 = arith.constant 0 : i32
    %c0_i32_1 = arith.constant 0 : i32
    return %arg0, %c0_i32, %c0_i32_0 : i32, i32, i32
  }
  func.func @transform_1(%arg0: i32) -> (i32, i32, i32) {
    %c0_i32 = arith.constant 0 : i32
    %c0_i32_0 = arith.constant 0 : i32
    %c0_i32_1 = arith.constant 0 : i32
    return %arg0, %c0_i32, %c0_i32_0 : i32, i32, i32
  }
  func.func @transform_2(%arg0: i32) -> (i32, i32, i32) {
    %c0_i32 = arith.constant 0 : i32
    %c0_i32_0 = arith.constant 0 : i32
    %c0_i32_1 = arith.constant 0 : i32
    return %arg0, %c0_i32, %c0_i32_0 : i32, i32, i32
  }
  func.func @transform_3(%arg0: i32) -> (i32, i32, i32) {
    %c0_i32 = arith.constant 0 : i32
    %c0_i32_0 = arith.constant 0 : i32
    %c0_i32_1 = arith.constant 0 : i32
    return %arg0, %c0_i32, %c0_i32_0 : i32, i32, i32
  }
  func.func @transform_4(%arg0: i32) -> (i32, i32, i32) {
    %c0_i32 = arith.constant 0 : i32
    %c0_i32_0 = arith.constant 0 : i32
    %c0_i32_1 = arith.constant 0 : i32
    %c0_i32_2 = arith.constant 0 : i32
    return %c0_i32, %c0_i32_0, %c0_i32_1 : i32, i32, i32
  }
  func.func @transform_5(%arg0: i32) -> (i32, i32, i32) {
    %c0_i32 = arith.constant 0 : i32
    %c0_i32_0 = arith.constant 0 : i32
    %c0_i32_1 = arith.constant 0 : i32
    %c0_i32_2 = arith.constant 0 : i32
    return %c0_i32, %c0_i32_0, %c0_i32_1 : i32, i32, i32
  }
  func.func @transform_6(%arg0: i32) -> (i32, i32) {
    %c0_i32 = arith.constant 0 : i32
    %c0_i32_0 = arith.constant 0 : i32
    %c0_i32_1 = arith.constant 0 : i32
    return %c0_i32, %c0_i32_0 : i32, i32
  }
  func.func @transform_7(%arg0: i32) -> (i32, i32) {
    %c0_i32 = arith.constant 0 : i32
    %c0_i32_0 = arith.constant 0 : i32
    %c0_i32_1 = arith.constant 0 : i32
    return %c0_i32, %c0_i32_0 : i32, i32
  }
  func.func @transform_8(%arg0: i32) -> (i32, i32) {
    %c0_i32 = arith.constant 0 : i32
    %c0_i32_0 = arith.constant 0 : i32
    %c0_i32_1 = arith.constant 0 : i32
    return %c0_i32, %c0_i32_0 : i32, i32
  }
  func.func @transform_9(%arg0: i32) -> (i32, i32, i32) {
    %c0_i32 = arith.constant 0 : i32
    %c0_i32_0 = arith.constant 0 : i32
    %c0_i32_1 = arith.constant 0 : i32
    return %arg0, %c0_i32, %c0_i32_0 : i32, i32, i32
  }
}

module attributes {stable_mosaic.version = 11 : i64} {
  func.func @kernel(%arg0: i32, %arg1: memref<1x16x64xbf16, #tpu.memory_space<vmem>>, %arg2: memref<1x16x64xbf16, #tpu.memory_space<vmem>>, %arg3: memref<1x16x64xbf16, #tpu.memory_space<vmem>>, %arg4: memref<1x1x16xf32, #tpu.memory_space<vmem>>, %arg5: memref<4x32x16xbf16, #tpu.memory_space<vmem>>, %arg6: memref<3x64x64xbf16, #tpu.memory_space<vmem>>, %arg7: memref<64x128xbf16, #tpu.memory_space<vmem>>, %arg8: memref<1x128xf32, #tpu.memory_space<vmem>>, %arg9: memref<8x64xf32, #tpu.memory_space<vmem>>, %arg10: memref<1x16x128xf32, #tpu.memory_space<vmem>>, %arg11: memref<4x16x16xbf16, #tpu.memory_space<vmem>>, %arg12: memref<4x16x16xbf16, #tpu.memory_space<vmem>>, %arg13: memref<4x16x16xbf16, #tpu.memory_space<vmem>>, %arg14: memref<4x16x16xbf16, #tpu.memory_space<vmem>>, %arg15: memref<4x16x16xbf16, #tpu.memory_space<vmem>>) attributes {dimension_semantics = [#tpu.dimension_semantics<parallel>], iteration_bounds = array<i64: 4>, scalar_prefetch = 0 : i64, scratch_operands = 5 : i64, tpu.core_type = #tpu.core_type<tc>, window_params = [{transform_indices = @transform_0, window_bounds = array<i64: 1, 16, 64>}, {transform_indices = @transform_1, window_bounds = array<i64: 1, 16, 64>}, {transform_indices = @transform_2, window_bounds = array<i64: 1, 16, 64>}, {transform_indices = @transform_3, window_bounds = array<i64: 1, 1, 16>}, {pipeline_mode = #tpu.pipeline_mode<synchronous>, transform_indices = @transform_4, window_bounds = array<i64: 4, 32, 16>}, {pipeline_mode = #tpu.pipeline_mode<synchronous>, transform_indices = @transform_5, window_bounds = array<i64: 3, 64, 64>}, {pipeline_mode = #tpu.pipeline_mode<synchronous>, transform_indices = @transform_6, window_bounds = array<i64: 64, 128>}, {pipeline_mode = #tpu.pipeline_mode<synchronous>, transform_indices = @transform_7, window_bounds = array<i64: 1, 128>}, {pipeline_mode = #tpu.pipeline_mode<synchronous>, transform_indices = @transform_8, window_bounds = array<i64: 8, 64>}, {transform_indices = @transform_9, window_bounds = array<i64: 1, 16, 128>}]} {
    %c0 = arith.constant 0 : index
    %c0_0 = arith.constant 0 : index
    %0 = vector.load %arg9[%c0, %c0_0] : memref<8x64xf32, #tpu.memory_space<vmem>>, vector<8x64xf32>
    %1 = vector.extract_strided_slice %0 {offsets = [0, 0], sizes = [1, 64], strides = [1, 1]} : vector<8x64xf32> to vector<1x64xf32>
    %2 = vector.extract_strided_slice %0 {offsets = [1, 0], sizes = [1, 64], strides = [1, 1]} : vector<8x64xf32> to vector<1x64xf32>
    %3 = vector.extract_strided_slice %0 {offsets = [2, 0], sizes = [1, 64], strides = [1, 1]} : vector<8x64xf32> to vector<1x64xf32>
    %4 = vector.extract_strided_slice %0 {offsets = [3, 0], sizes = [1, 64], strides = [1, 1]} : vector<8x64xf32> to vector<1x64xf32>
    %5 = vector.extract_strided_slice %0 {offsets = [4, 0], sizes = [1, 64], strides = [1, 1]} : vector<8x64xf32> to vector<1x64xf32>
    %c0_1 = arith.constant 0 : index
    %c0_2 = arith.constant 0 : index
    %6 = vector.load %arg7[%c0_1, %c0_2] : memref<64x128xbf16, #tpu.memory_space<vmem>>, vector<64x128xbf16>
    %c0_3 = arith.constant 0 : index
    %c0_4 = arith.constant 0 : index
    %7 = vector.load %arg8[%c0_3, %c0_4] : memref<1x128xf32, #tpu.memory_space<vmem>>, vector<1x128xf32>
    %8 = tpu.iota {dimensions = array<i32: 0>} : vector<16x32xi32>
    %c0_5 = arith.constant 0 : index
    %c0_6 = arith.constant 0 : index
    %c0_7 = arith.constant 0 : index
    %9 = vector.load %arg1[%c0_5, %c0_6, %c0_7] : memref<1x16x64xbf16, #tpu.memory_space<vmem>>, vector<1x16x64xbf16>
    %10 = vector.shape_cast %9 : vector<1x16x64xbf16> to vector<16x64xbf16>
    %c0_8 = arith.constant 0 : index
    %c0_9 = arith.constant 0 : index
    %c0_10 = arith.constant 0 : index
    %11 = vector.load %arg2[%c0_8, %c0_9, %c0_10] : memref<1x16x64xbf16, #tpu.memory_space<vmem>>, vector<1x16x64xbf16>
    %12 = vector.shape_cast %11 : vector<1x16x64xbf16> to vector<16x64xbf16>
    %c0_11 = arith.constant 0 : index
    %c0_12 = arith.constant 0 : index
    %c0_13 = arith.constant 0 : index
    %13 = vector.load %arg3[%c0_11, %c0_12, %c0_13] : memref<1x16x64xbf16, #tpu.memory_space<vmem>>, vector<1x16x64xbf16>
    %14 = vector.shape_cast %13 : vector<1x16x64xbf16> to vector<16x64xbf16>
    %c0_14 = arith.constant 0 : index
    %c0_15 = arith.constant 0 : index
    %c0_16 = arith.constant 0 : index
    %15 = vector.load %arg4[%c0_14, %c0_15, %c0_16] : memref<1x1x16xf32, #tpu.memory_space<vmem>>, vector<1x1x16xf32>
    %16 = vector.shape_cast %15 : vector<1x1x16xf32> to vector<1x16xf32>
    %cst = arith.constant 0.000000e+00 : f32
    %17 = vector.broadcast %cst : f32 to vector<1x16xf32>
    %18 = arith.cmpf ogt, %16, %17 : vector<1x16xf32>
    %c0_17 = arith.constant 0 : index
    %c0_18 = arith.constant 0 : index
    %c0_19 = arith.constant 0 : index
    %19 = vector.load %arg6[%c0_17, %c0_18, %c0_19] : memref<3x64x64xbf16, #tpu.memory_space<vmem>>, vector<1x64x64xbf16>
    %20 = vector.shape_cast %19 : vector<1x64x64xbf16> to vector<64x64xbf16>
    %cst_20 = arith.constant dense<0.000000e+00> : vector<16x64xf32>
    %21 = tpu.matmul %10, %20, %cst_20 {dimension_numbers = #tpu.dot_dimension_numbers<[1], [0], [0], [1], [0, 0, 1, 1], [], []>} : vector<16x64xbf16>, vector<64x64xbf16>, vector<16x64xf32> -> vector<16x64xf32>
    %22 = vector.broadcast %1 : vector<1x64xf32> to vector<16x64xf32>
    %23 = arith.addf %21, %22 : vector<16x64xf32>
    %c1 = arith.constant 1 : index
    %c0_21 = arith.constant 0 : index
    %c0_22 = arith.constant 0 : index
    %24 = vector.load %arg6[%c1, %c0_21, %c0_22] : memref<3x64x64xbf16, #tpu.memory_space<vmem>>, vector<1x64x64xbf16>
    %25 = vector.shape_cast %24 : vector<1x64x64xbf16> to vector<64x64xbf16>
    %cst_23 = arith.constant dense<0.000000e+00> : vector<16x64xf32>
    %26 = tpu.matmul %12, %25, %cst_23 {dimension_numbers = #tpu.dot_dimension_numbers<[1], [0], [0], [1], [0, 0, 1, 1], [], []>} : vector<16x64xbf16>, vector<64x64xbf16>, vector<16x64xf32> -> vector<16x64xf32>
    %27 = vector.broadcast %2 : vector<1x64xf32> to vector<16x64xf32>
    %28 = arith.addf %26, %27 : vector<16x64xf32>
    %c2 = arith.constant 2 : index
    %c0_24 = arith.constant 0 : index
    %c0_25 = arith.constant 0 : index
    %29 = vector.load %arg6[%c2, %c0_24, %c0_25] : memref<3x64x64xbf16, #tpu.memory_space<vmem>>, vector<1x64x64xbf16>
    %30 = vector.shape_cast %29 : vector<1x64x64xbf16> to vector<64x64xbf16>
    %cst_26 = arith.constant dense<0.000000e+00> : vector<16x64xf32>
    %31 = tpu.matmul %14, %30, %cst_26 {dimension_numbers = #tpu.dot_dimension_numbers<[1], [0], [0], [1], [0, 0, 1, 1], [], []>} : vector<16x64xbf16>, vector<64x64xbf16>, vector<16x64xf32> -> vector<16x64xf32>
    %32 = vector.broadcast %3 : vector<1x64xf32> to vector<16x64xf32>
    %33 = arith.addf %31, %32 : vector<16x64xf32>
    %34 = vector.broadcast %4 : vector<1x64xf32> to vector<16x64xf32>
    %35 = arith.addf %23, %34 : vector<16x64xf32>
    %36 = arith.truncf %35 : vector<16x64xf32> to vector<16x64xbf16>
    %37 = vector.broadcast %5 : vector<1x64xf32> to vector<16x64xf32>
    %38 = arith.addf %23, %37 : vector<16x64xf32>
    %39 = arith.truncf %38 : vector<16x64xf32> to vector<16x64xbf16>
    %40 = arith.truncf %28 : vector<16x64xf32> to vector<16x64xbf16>
    %41 = arith.truncf %33 : vector<16x64xf32> to vector<16x64xbf16>
    %42 = vector.extract_strided_slice %36 {offsets = [0, 0], sizes = [16, 16], strides = [1, 1]} : vector<16x64xbf16> to vector<16x16xbf16>
    %c0_27 = arith.constant 0 : index
    %c0_28 = arith.constant 0 : index
    %c0_29 = arith.constant 0 : index
    %43 = vector.load %arg11[%c0_27, %c0_28, %c0_29] : memref<4x16x16xbf16, #tpu.memory_space<vmem>>, vector<1x16x16xbf16>
    %44 = vector.shape_cast %43 : vector<1x16x16xbf16> to vector<16x16xbf16>
    %45 = vector.shape_cast %42 : vector<16x16xbf16> to vector<1x16x16xbf16>
    tpu.vector_store %arg11[%c0_27, %c0_28, %c0_29], %45 {strides = array<i32>} : memref<4x16x16xbf16, #tpu.memory_space<vmem>>, vector<1x16x16xbf16>,
    %46 = vector.extract_strided_slice %39 {offsets = [0, 0], sizes = [16, 16], strides = [1, 1]} : vector<16x64xbf16> to vector<16x16xbf16>
    %c0_30 = arith.constant 0 : index
    %c0_31 = arith.constant 0 : index
    %c0_32 = arith.constant 0 : index
    %47 = vector.load %arg12[%c0_30, %c0_31, %c0_32] : memref<4x16x16xbf16, #tpu.memory_space<vmem>>, vector<1x16x16xbf16>
    %48 = vector.shape_cast %47 : vector<1x16x16xbf16> to vector<16x16xbf16>
    %49 = vector.shape_cast %46 : vector<16x16xbf16> to vector<1x16x16xbf16>
    tpu.vector_store %arg12[%c0_30, %c0_31, %c0_32], %49 {strides = array<i32>} : memref<4x16x16xbf16, #tpu.memory_space<vmem>>, vector<1x16x16xbf16>,
    %50 = vector.extract_strided_slice %40 {offsets = [0, 0], sizes = [16, 16], strides = [1, 1]} : vector<16x64xbf16> to vector<16x16xbf16>
    %c0_33 = arith.constant 0 : index
    %c0_34 = arith.constant 0 : index
    %c0_35 = arith.constant 0 : index
    %51 = vector.load %arg13[%c0_33, %c0_34, %c0_35] : memref<4x16x16xbf16, #tpu.memory_space<vmem>>, vector<1x16x16xbf16>
    %52 = vector.shape_cast %51 : vector<1x16x16xbf16> to vector<16x16xbf16>
    %53 = vector.shape_cast %50 : vector<16x16xbf16> to vector<1x16x16xbf16>
    tpu.vector_store %arg13[%c0_33, %c0_34, %c0_35], %53 {strides = array<i32>} : memref<4x16x16xbf16, #tpu.memory_space<vmem>>, vector<1x16x16xbf16>,
    %54 = vector.extract_strided_slice %41 {offsets = [0, 0], sizes = [16, 16], strides = [1, 1]} : vector<16x64xbf16> to vector<16x16xbf16>
    %c0_36 = arith.constant 0 : index
    %c0_37 = arith.constant 0 : index
    %c0_38 = arith.constant 0 : index
    %55 = vector.load %arg14[%c0_36, %c0_37, %c0_38] : memref<4x16x16xbf16, #tpu.memory_space<vmem>>, vector<1x16x16xbf16>
    %56 = vector.shape_cast %55 : vector<1x16x16xbf16> to vector<16x16xbf16>
    %57 = vector.shape_cast %54 : vector<16x16xbf16> to vector<1x16x16xbf16>
    tpu.vector_store %arg14[%c0_36, %c0_37, %c0_38], %57 {strides = array<i32>} : memref<4x16x16xbf16, #tpu.memory_space<vmem>>, vector<1x16x16xbf16>,
    %58 = vector.extract_strided_slice %36 {offsets = [0, 16], sizes = [16, 16], strides = [1, 1]} : vector<16x64xbf16> to vector<16x16xbf16>
    %c1_39 = arith.constant 1 : index
    %c0_40 = arith.constant 0 : index
    %c0_41 = arith.constant 0 : index
    %59 = vector.load %arg11[%c1_39, %c0_40, %c0_41] : memref<4x16x16xbf16, #tpu.memory_space<vmem>>, vector<1x16x16xbf16>
    %60 = vector.shape_cast %59 : vector<1x16x16xbf16> to vector<16x16xbf16>
    %61 = vector.shape_cast %58 : vector<16x16xbf16> to vector<1x16x16xbf16>
    tpu.vector_store %arg11[%c1_39, %c0_40, %c0_41], %61 {strides = array<i32>} : memref<4x16x16xbf16, #tpu.memory_space<vmem>>, vector<1x16x16xbf16>,
    %62 = vector.extract_strided_slice %39 {offsets = [0, 16], sizes = [16, 16], strides = [1, 1]} : vector<16x64xbf16> to vector<16x16xbf16>
    %c1_42 = arith.constant 1 : index
    %c0_43 = arith.constant 0 : index
    %c0_44 = arith.constant 0 : index
    %63 = vector.load %arg12[%c1_42, %c0_43, %c0_44] : memref<4x16x16xbf16, #tpu.memory_space<vmem>>, vector<1x16x16xbf16>
    %64 = vector.shape_cast %63 : vector<1x16x16xbf16> to vector<16x16xbf16>
    %65 = vector.shape_cast %62 : vector<16x16xbf16> to vector<1x16x16xbf16>
    tpu.vector_store %arg12[%c1_42, %c0_43, %c0_44], %65 {strides = array<i32>} : memref<4x16x16xbf16, #tpu.memory_space<vmem>>, vector<1x16x16xbf16>,
    %66 = vector.extract_strided_slice %40 {offsets = [0, 16], sizes = [16, 16], strides = [1, 1]} : vector<16x64xbf16> to vector<16x16xbf16>
    %c1_45 = arith.constant 1 : index
    %c0_46 = arith.constant 0 : index
    %c0_47 = arith.constant 0 : index
    %67 = vector.load %arg13[%c1_45, %c0_46, %c0_47] : memref<4x16x16xbf16, #tpu.memory_space<vmem>>, vector<1x16x16xbf16>
    %68 = vector.shape_cast %67 : vector<1x16x16xbf16> to vector<16x16xbf16>
    %69 = vector.shape_cast %66 : vector<16x16xbf16> to vector<1x16x16xbf16>
    tpu.vector_store %arg13[%c1_45, %c0_46, %c0_47], %69 {strides = array<i32>} : memref<4x16x16xbf16, #tpu.memory_space<vmem>>, vector<1x16x16xbf16>,
    %70 = vector.extract_strided_slice %41 {offsets = [0, 16], sizes = [16, 16], strides = [1, 1]} : vector<16x64xbf16> to vector<16x16xbf16>
    %c1_48 = arith.constant 1 : index
    %c0_49 = arith.constant 0 : index
    %c0_50 = arith.constant 0 : index
    %71 = vector.load %arg14[%c1_48, %c0_49, %c0_50] : memref<4x16x16xbf16, #tpu.memory_space<vmem>>, vector<1x16x16xbf16>
    %72 = vector.shape_cast %71 : vector<1x16x16xbf16> to vector<16x16xbf16>
    %73 = vector.shape_cast %70 : vector<16x16xbf16> to vector<1x16x16xbf16>
    tpu.vector_store %arg14[%c1_48, %c0_49, %c0_50], %73 {strides = array<i32>} : memref<4x16x16xbf16, #tpu.memory_space<vmem>>, vector<1x16x16xbf16>,
    %74 = vector.extract_strided_slice %36 {offsets = [0, 32], sizes = [16, 16], strides = [1, 1]} : vector<16x64xbf16> to vector<16x16xbf16>
    %c2_51 = arith.constant 2 : index
    %c0_52 = arith.constant 0 : index
    %c0_53 = arith.constant 0 : index
    %75 = vector.load %arg11[%c2_51, %c0_52, %c0_53] : memref<4x16x16xbf16, #tpu.memory_space<vmem>>, vector<1x16x16xbf16>
    %76 = vector.shape_cast %75 : vector<1x16x16xbf16> to vector<16x16xbf16>
    %77 = vector.shape_cast %74 : vector<16x16xbf16> to vector<1x16x16xbf16>
    tpu.vector_store %arg11[%c2_51, %c0_52, %c0_53], %77 {strides = array<i32>} : memref<4x16x16xbf16, #tpu.memory_space<vmem>>, vector<1x16x16xbf16>,
    %78 = vector.extract_strided_slice %39 {offsets = [0, 32], sizes = [16, 16], strides = [1, 1]} : vector<16x64xbf16> to vector<16x16xbf16>
    %c2_54 = arith.constant 2 : index
    %c0_55 = arith.constant 0 : index
    %c0_56 = arith.constant 0 : index
    %79 = vector.load %arg12[%c2_54, %c0_55, %c0_56] : memref<4x16x16xbf16, #tpu.memory_space<vmem>>, vector<1x16x16xbf16>
    %80 = vector.shape_cast %79 : vector<1x16x16xbf16> to vector<16x16xbf16>
    %81 = vector.shape_cast %78 : vector<16x16xbf16> to vector<1x16x16xbf16>
    tpu.vector_store %arg12[%c2_54, %c0_55, %c0_56], %81 {strides = array<i32>} : memref<4x16x16xbf16, #tpu.memory_space<vmem>>, vector<1x16x16xbf16>,
    %82 = vector.extract_strided_slice %40 {offsets = [0, 32], sizes = [16, 16], strides = [1, 1]} : vector<16x64xbf16> to vector<16x16xbf16>
    %c2_57 = arith.constant 2 : index
    %c0_58 = arith.constant 0 : index
    %c0_59 = arith.constant 0 : index
    %83 = vector.load %arg13[%c2_57, %c0_58, %c0_59] : memref<4x16x16xbf16, #tpu.memory_space<vmem>>, vector<1x16x16xbf16>
    %84 = vector.shape_cast %83 : vector<1x16x16xbf16> to vector<16x16xbf16>
    %85 = vector.shape_cast %82 : vector<16x16xbf16> to vector<1x16x16xbf16>
    tpu.vector_store %arg13[%c2_57, %c0_58, %c0_59], %85 {strides = array<i32>} : memref<4x16x16xbf16, #tpu.memory_space<vmem>>, vector<1x16x16xbf16>,
    %86 = vector.extract_strided_slice %41 {offsets = [0, 32], sizes = [16, 16], strides = [1, 1]} : vector<16x64xbf16> to vector<16x16xbf16>
    %c2_60 = arith.constant 2 : index
    %c0_61 = arith.constant 0 : index
    %c0_62 = arith.constant 0 : index
    %87 = vector.load %arg14[%c2_60, %c0_61, %c0_62] : memref<4x16x16xbf16, #tpu.memory_space<vmem>>, vector<1x16x16xbf16>
    %88 = vector.shape_cast %87 : vector<1x16x16xbf16> to vector<16x16xbf16>
    %89 = vector.shape_cast %86 : vector<16x16xbf16> to vector<1x16x16xbf16>
    tpu.vector_store %arg14[%c2_60, %c0_61, %c0_62], %89 {strides = array<i32>} : memref<4x16x16xbf16, #tpu.memory_space<vmem>>, vector<1x16x16xbf16>,
    %90 = vector.extract_strided_slice %36 {offsets = [0, 48], sizes = [16, 16], strides = [1, 1]} : vector<16x64xbf16> to vector<16x16xbf16>
    %c3 = arith.constant 3 : index
    %c0_63 = arith.constant 0 : index
    %c0_64 = arith.constant 0 : index
    %91 = vector.load %arg11[%c3, %c0_63, %c0_64] : memref<4x16x16xbf16, #tpu.memory_space<vmem>>, vector<1x16x16xbf16>
    %92 = vector.shape_cast %91 : vector<1x16x16xbf16> to vector<16x16xbf16>
    %93 = vector.shape_cast %90 : vector<16x16xbf16> to vector<1x16x16xbf16>
    tpu.vector_store %arg11[%c3, %c0_63, %c0_64], %93 {strides = array<i32>} : memref<4x16x16xbf16, #tpu.memory_space<vmem>>, vector<1x16x16xbf16>,
    %94 = vector.extract_strided_slice %39 {offsets = [0, 48], sizes = [16, 16], strides = [1, 1]} : vector<16x64xbf16> to vector<16x16xbf16>
    %c3_65 = arith.constant 3 : index
    %c0_66 = arith.constant 0 : index
    %c0_67 = arith.constant 0 : index
    %95 = vector.load %arg12[%c3_65, %c0_66, %c0_67] : memref<4x16x16xbf16, #tpu.memory_space<vmem>>, vector<1x16x16xbf16>
    %96 = vector.shape_cast %95 : vector<1x16x16xbf16> to vector<16x16xbf16>
    %97 = vector.shape_cast %94 : vector<16x16xbf16> to vector<1x16x16xbf16>
    tpu.vector_store %arg12[%c3_65, %c0_66, %c0_67], %97 {strides = array<i32>} : memref<4x16x16xbf16, #tpu.memory_space<vmem>>, vector<1x16x16xbf16>,
    %98 = vector.extract_strided_slice %40 {offsets = [0, 48], sizes = [16, 16], strides = [1, 1]} : vector<16x64xbf16> to vector<16x16xbf16>
    %c3_68 = arith.constant 3 : index
    %c0_69 = arith.constant 0 : index
    %c0_70 = arith.constant 0 : index
    %99 = vector.load %arg13[%c3_68, %c0_69, %c0_70] : memref<4x16x16xbf16, #tpu.memory_space<vmem>>, vector<1x16x16xbf16>
    %100 = vector.shape_cast %99 : vector<1x16x16xbf16> to vector<16x16xbf16>
    %101 = vector.shape_cast %98 : vector<16x16xbf16> to vector<1x16x16xbf16>
    tpu.vector_store %arg13[%c3_68, %c0_69, %c0_70], %101 {strides = array<i32>} : memref<4x16x16xbf16, #tpu.memory_space<vmem>>, vector<1x16x16xbf16>,
    %102 = vector.extract_strided_slice %41 {offsets = [0, 48], sizes = [16, 16], strides = [1, 1]} : vector<16x64xbf16> to vector<16x16xbf16>
    %c3_71 = arith.constant 3 : index
    %c0_72 = arith.constant 0 : index
    %c0_73 = arith.constant 0 : index
    %103 = vector.load %arg14[%c3_71, %c0_72, %c0_73] : memref<4x16x16xbf16, #tpu.memory_space<vmem>>, vector<1x16x16xbf16>
    %104 = vector.shape_cast %103 : vector<1x16x16xbf16> to vector<16x16xbf16>
    %105 = vector.shape_cast %102 : vector<16x16xbf16> to vector<1x16x16xbf16>
    tpu.vector_store %arg14[%c3_71, %c0_72, %c0_73], %105 {strides = array<i32>} : memref<4x16x16xbf16, #tpu.memory_space<vmem>>, vector<1x16x16xbf16>,
    %c0_i32 = arith.constant 0 : i32
    %c4_i32 = arith.constant 4 : i32
    %106 = arith.addi %c0_i32, %c4_i32 : i32
    %c1_i32 = arith.constant 1 : i32
    scf.for %arg16 = %c0_i32 to %106 step %c1_i32  : i32 {
      %122 = arith.index_cast %arg16 : i32 to index
      %c0_91 = arith.constant 0 : index
      %c0_92 = arith.constant 0 : index
      %123 = vector.load %arg11[%122, %c0_91, %c0_92] : memref<4x16x16xbf16, #tpu.memory_space<vmem>>, vector<1x16x16xbf16>
      %124 = vector.shape_cast %123 : vector<1x16x16xbf16> to vector<16x16xbf16>
      %125 = arith.index_cast %arg16 : i32 to index
      %c0_93 = arith.constant 0 : index
      %c0_94 = arith.constant 0 : index
      %126 = vector.load %arg13[%125, %c0_93, %c0_94] : memref<4x16x16xbf16, #tpu.memory_space<vmem>>, vector<1x16x16xbf16>
      %127 = vector.shape_cast %126 : vector<1x16x16xbf16> to vector<16x16xbf16>
      %cst_95 = arith.constant dense<0.000000e+00> : vector<16x16xf32>
      %128 = tpu.matmul %124, %127, %cst_95 {dimension_numbers = #tpu.dot_dimension_numbers<[1], [1], [0], [0], [0, 0, 1, 0], [], []>} : vector<16x16xbf16>, vector<16x16xbf16>, vector<16x16xf32> -> vector<16x16xf32>
      %129 = arith.index_cast %arg16 : i32 to index
      %c0_96 = arith.constant 0 : index
      %c0_97 = arith.constant 0 : index
      %130 = vector.load %arg12[%129, %c0_96, %c0_97] : memref<4x16x16xbf16, #tpu.memory_space<vmem>>, vector<1x16x16xbf16>
      %131 = vector.shape_cast %130 : vector<1x16x16xbf16> to vector<16x16xbf16>
      %132 = arith.index_cast %arg16 : i32 to index
      %c0_98 = arith.constant 0 : index
      %c0_99 = arith.constant 0 : index
      %133 = vector.load %arg5[%132, %c0_98, %c0_99] : memref<4x32x16xbf16, #tpu.memory_space<vmem>>, vector<1x32x16xbf16>
      %134 = vector.shape_cast %133 : vector<1x32x16xbf16> to vector<32x16xbf16>
      %cst_100 = arith.constant dense<0.000000e+00> : vector<16x32xf32>
      %135 = tpu.matmul %131, %134, %cst_100 {dimension_numbers = #tpu.dot_dimension_numbers<[1], [1], [0], [0], [0, 0, 1, 0], [], []>} : vector<16x16xbf16>, vector<32x16xbf16>, vector<16x32xf32> -> vector<16x32xf32>
      %c1_i32_101 = arith.constant 1 : i32
      %136 = vector.broadcast %c1_i32_101 : i32 to vector<16x32xi32>
      %137 = arith.andi %8, %136 : vector<16x32xi32>
      %c0_i32_102 = arith.constant 0 : i32
      %138 = vector.broadcast %c0_i32_102 : i32 to vector<16x32xi32>
      %139 = arith.cmpi ne, %137, %138 : vector<16x32xi32>
      %140 = vector.extract_strided_slice %135 {offsets = [0, 31], sizes = [16, 1], strides = [1, 1]} : vector<16x32xf32> to vector<16x1xf32>
      %141 = vector.extract_strided_slice %135 {offsets = [0, 0], sizes = [16, 31], strides = [1, 1]} : vector<16x32xf32> to vector<16x31xf32>
      %142 = tpu.concatenate %140, %141 in 1 : vector<16x1xf32>, vector<16x31xf32> -> vector<16x32xf32>
      %143 = arith.select %139, %142, %135 : vector<16x32xi1>, vector<16x32xf32>
      %c2_i32 = arith.constant 2 : i32
      %144 = vector.broadcast %c2_i32 : i32 to vector<16x32xi32>
      %145 = arith.andi %8, %144 : vector<16x32xi32>
      %c0_i32_103 = arith.constant 0 : i32
      %146 = vector.broadcast %c0_i32_103 : i32 to vector<16x32xi32>
      %147 = arith.cmpi ne, %145, %146 : vector<16x32xi32>
      %148 = vector.extract_strided_slice %143 {offsets = [0, 30], sizes = [16, 2], strides = [1, 1]} : vector<16x32xf32> to vector<16x2xf32>
      %149 = vector.extract_strided_slice %143 {offsets = [0, 0], sizes = [16, 30], strides = [1, 1]} : vector<16x32xf32> to vector<16x30xf32>
      %150 = tpu.concatenate %148, %149 in 1 : vector<16x2xf32>, vector<16x30xf32> -> vector<16x32xf32>
      %151 = arith.select %147, %150, %143 : vector<16x32xi1>, vector<16x32xf32>
      %c4_i32_104 = arith.constant 4 : i32
      %152 = vector.broadcast %c4_i32_104 : i32 to vector<16x32xi32>
      %153 = arith.andi %8, %152 : vector<16x32xi32>
      %c0_i32_105 = arith.constant 0 : i32
      %154 = vector.broadcast %c0_i32_105 : i32 to vector<16x32xi32>
      %155 = arith.cmpi ne, %153, %154 : vector<16x32xi32>
      %156 = vector.extract_strided_slice %151 {offsets = [0, 28], sizes = [16, 4], strides = [1, 1]} : vector<16x32xf32> to vector<16x4xf32>
      %157 = vector.extract_strided_slice %151 {offsets = [0, 0], sizes = [16, 28], strides = [1, 1]} : vector<16x32xf32> to vector<16x28xf32>
      %158 = tpu.concatenate %156, %157 in 1 : vector<16x4xf32>, vector<16x28xf32> -> vector<16x32xf32>
      %159 = arith.select %155, %158, %151 : vector<16x32xi1>, vector<16x32xf32>
      %c8_i32 = arith.constant 8 : i32
      %160 = vector.broadcast %c8_i32 : i32 to vector<16x32xi32>
      %161 = arith.andi %8, %160 : vector<16x32xi32>
      %c0_i32_106 = arith.constant 0 : i32
      %162 = vector.broadcast %c0_i32_106 : i32 to vector<16x32xi32>
      %163 = arith.cmpi ne, %161, %162 : vector<16x32xi32>
      %164 = vector.extract_strided_slice %159 {offsets = [0, 24], sizes = [16, 8], strides = [1, 1]} : vector<16x32xf32> to vector<16x8xf32>
      %165 = vector.extract_strided_slice %159 {offsets = [0, 0], sizes = [16, 24], strides = [1, 1]} : vector<16x32xf32> to vector<16x24xf32>
      %166 = tpu.concatenate %164, %165 in 1 : vector<16x8xf32>, vector<16x24xf32> -> vector<16x32xf32>
      %167 = arith.select %163, %166, %159 : vector<16x32xi1>, vector<16x32xf32>
      %168 = vector.extract_strided_slice %167 {offsets = [0, 15], sizes = [16, 16], strides = [1, 1]} : vector<16x32xf32> to vector<16x16xf32>
      %169 = arith.addf %128, %168 : vector<16x16xf32>
      %cst_107 = arith.constant -3.40282347E+38 : f32
      %170 = vector.shape_cast %18 : vector<1x16xi1> to vector<1x16xi1>
      %171 = vector.broadcast %170 : vector<1x16xi1> to vector<16x16xi1>
      %172 = vector.broadcast %cst_107 : f32 to vector<16x16xf32>
      %173 = arith.select %171, %169, %172 : vector<16x16xi1>, vector<16x16xf32>
      %cst_108 = arith.constant dense<0xFF800000> : vector<16xf32>
      %174 = vector.multi_reduction <maximumf>, %173, %cst_108 [1] : vector<16x16xf32> to vector<16xf32>
      %175 = vector.shape_cast %174 : vector<16xf32> to vector<16x1xf32>
      %176 = vector.broadcast %175 : vector<16x1xf32> to vector<16x16xf32>
      %177 = arith.subf %173, %176 : vector<16x16xf32>
      %178 = math.exp %177 : vector<16x16xf32>
      %179 = vector.broadcast %16 : vector<1x16xf32> to vector<16x16xf32>
      %180 = arith.mulf %178, %179 : vector<16x16xf32>
      %cst_109 = arith.constant dense<0.000000e+00> : vector<16xf32>
      %181 = vector.multi_reduction <add>, %180, %cst_109 [1] : vector<16x16xf32> to vector<16xf32>
      %182 = vector.shape_cast %181 : vector<16xf32> to vector<16x1xf32>
      %cst_110 = arith.constant 1.000000e-30 : f32
      %183 = vector.broadcast %cst_110 : f32 to vector<16x1xf32>
      %184 = arith.maximumf %182, %183 : vector<16x1xf32>
      %185 = tpu.reciprocal %184 {approx = true} : vector<16x1xf32> -> vector<16x1xf32>
      %186 = vector.broadcast %185 : vector<16x1xf32> to vector<16x16xf32>
      %187 = arith.mulf %180, %186 : vector<16x16xf32>
      %188 = arith.truncf %187 : vector<16x16xf32> to vector<16x16xbf16>
      %189 = arith.index_cast %arg16 : i32 to index
      %c0_111 = arith.constant 0 : index
      %c0_112 = arith.constant 0 : index
      %190 = vector.load %arg14[%189, %c0_111, %c0_112] : memref<4x16x16xbf16, #tpu.memory_space<vmem>>, vector<1x16x16xbf16>
      %191 = vector.shape_cast %190 : vector<1x16x16xbf16> to vector<16x16xbf16>
      %cst_113 = arith.constant dense<0.000000e+00> : vector<16x16xf32>
      %192 = tpu.matmul %188, %191, %cst_113 {dimension_numbers = #tpu.dot_dimension_numbers<[1], [0], [0], [1], [0, 0, 1, 1], [], []>} : vector<16x16xbf16>, vector<16x16xbf16>, vector<16x16xf32> -> vector<16x16xf32>
      %193 = arith.truncf %192 : vector<16x16xf32> to vector<16x16xbf16>
      %194 = arith.index_cast %arg16 : i32 to index
      %c0_114 = arith.constant 0 : index
      %c0_115 = arith.constant 0 : index
      %195 = vector.load %arg15[%194, %c0_114, %c0_115] : memref<4x16x16xbf16, #tpu.memory_space<vmem>>, vector<1x16x16xbf16>
      %196 = vector.shape_cast %195 : vector<1x16x16xbf16> to vector<16x16xbf16>
      %197 = vector.shape_cast %193 : vector<16x16xbf16> to vector<1x16x16xbf16>
      tpu.vector_store %arg15[%194, %c0_114, %c0_115], %197 {strides = array<i32>} : memref<4x16x16xbf16, #tpu.memory_space<vmem>>, vector<1x16x16xbf16>,
    }
    %c4_i32_74 = arith.constant 4 : i32
    %c0_75 = arith.constant 0 : index
    %c0_76 = arith.constant 0 : index
    %c0_77 = arith.constant 0 : index
    %107 = vector.load %arg15[%c0_75, %c0_76, %c0_77] : memref<4x16x16xbf16, #tpu.memory_space<vmem>>, vector<1x16x16xbf16>
    %108 = vector.shape_cast %107 : vector<1x16x16xbf16> to vector<16x16xbf16>
    %c1_78 = arith.constant 1 : index
    %c0_79 = arith.constant 0 : index
    %c0_80 = arith.constant 0 : index
    %109 = vector.load %arg15[%c1_78, %c0_79, %c0_80] : memref<4x16x16xbf16, #tpu.memory_space<vmem>>, vector<1x16x16xbf16>
    %110 = vector.shape_cast %109 : vector<1x16x16xbf16> to vector<16x16xbf16>
    %c2_81 = arith.constant 2 : index
    %c0_82 = arith.constant 0 : index
    %c0_83 = arith.constant 0 : index
    %111 = vector.load %arg15[%c2_81, %c0_82, %c0_83] : memref<4x16x16xbf16, #tpu.memory_space<vmem>>, vector<1x16x16xbf16>
    %112 = vector.shape_cast %111 : vector<1x16x16xbf16> to vector<16x16xbf16>
    %c3_84 = arith.constant 3 : index
    %c0_85 = arith.constant 0 : index
    %c0_86 = arith.constant 0 : index
    %113 = vector.load %arg15[%c3_84, %c0_85, %c0_86] : memref<4x16x16xbf16, #tpu.memory_space<vmem>>, vector<1x16x16xbf16>
    %114 = vector.shape_cast %113 : vector<1x16x16xbf16> to vector<16x16xbf16>
    %115 = tpu.concatenate %108, %110, %112, %114 in 1 : vector<16x16xbf16>, vector<16x16xbf16>, vector<16x16xbf16>, vector<16x16xbf16> -> vector<16x64xbf16>
    %cst_87 = arith.constant dense<0.000000e+00> : vector<16x128xf32>
    %116 = tpu.matmul %115, %6, %cst_87 {dimension_numbers = #tpu.dot_dimension_numbers<[1], [0], [0], [1], [0, 0, 1, 1], [], []>} : vector<16x64xbf16>, vector<64x128xbf16>, vector<16x128xf32> -> vector<16x128xf32>
    %117 = vector.broadcast %7 : vector<1x128xf32> to vector<16x128xf32>
    %118 = arith.addf %116, %117 : vector<16x128xf32>
    %c0_88 = arith.constant 0 : index
    %c0_89 = arith.constant 0 : index
    %c0_90 = arith.constant 0 : index
    %119 = vector.load %arg10[%c0_88, %c0_89, %c0_90] : memref<1x16x128xf32, #tpu.memory_space<vmem>>, vector<1x16x128xf32>
    %120 = vector.shape_cast %119 : vector<1x16x128xf32> to vector<16x128xf32>
    %121 = vector.shape_cast %118 : vector<16x128xf32> to vector<1x16x128xf32>
    tpu.vector_store %arg10[%c0_88, %c0_89, %c0_90], %121 {strides = array<i32>} : memref<1x16x128xf32, #tpu.memory_space<vmem>>, vector<1x16x128xf32>,
    return
  }
  func.func @transform_0(%arg0: i32) -> (i32, i32, i32) {
    %c0_i32 = arith.constant 0 : i32
    %c0_i32_0 = arith.constant 0 : i32
    %c0_i32_1 = arith.constant 0 : i32
    return %arg0, %c0_i32, %c0_i32_0 : i32, i32, i32
  }
  func.func @transform_1(%arg0: i32) -> (i32, i32, i32) {
    %c0_i32 = arith.constant 0 : i32
    %c0_i32_0 = arith.constant 0 : i32
    %c0_i32_1 = arith.constant 0 : i32
    return %arg0, %c0_i32, %c0_i32_0 : i32, i32, i32
  }
  func.func @transform_2(%arg0: i32) -> (i32, i32, i32) {
    %c0_i32 = arith.constant 0 : i32
    %c0_i32_0 = arith.constant 0 : i32
    %c0_i32_1 = arith.constant 0 : i32
    return %arg0, %c0_i32, %c0_i32_0 : i32, i32, i32
  }
  func.func @transform_3(%arg0: i32) -> (i32, i32, i32) {
    %c0_i32 = arith.constant 0 : i32
    %c0_i32_0 = arith.constant 0 : i32
    %c0_i32_1 = arith.constant 0 : i32
    return %arg0, %c0_i32, %c0_i32_0 : i32, i32, i32
  }
  func.func @transform_4(%arg0: i32) -> (i32, i32, i32) {
    %c0_i32 = arith.constant 0 : i32
    %c0_i32_0 = arith.constant 0 : i32
    %c0_i32_1 = arith.constant 0 : i32
    %c0_i32_2 = arith.constant 0 : i32
    return %c0_i32, %c0_i32_0, %c0_i32_1 : i32, i32, i32
  }
  func.func @transform_5(%arg0: i32) -> (i32, i32, i32) {
    %c0_i32 = arith.constant 0 : i32
    %c0_i32_0 = arith.constant 0 : i32
    %c0_i32_1 = arith.constant 0 : i32
    %c0_i32_2 = arith.constant 0 : i32
    return %c0_i32, %c0_i32_0, %c0_i32_1 : i32, i32, i32
  }
  func.func @transform_6(%arg0: i32) -> (i32, i32) {
    %c0_i32 = arith.constant 0 : i32
    %c0_i32_0 = arith.constant 0 : i32
    %c0_i32_1 = arith.constant 0 : i32
    return %c0_i32, %c0_i32_0 : i32, i32
  }
  func.func @transform_7(%arg0: i32) -> (i32, i32) {
    %c0_i32 = arith.constant 0 : i32
    %c0_i32_0 = arith.constant 0 : i32
    %c0_i32_1 = arith.constant 0 : i32
    return %c0_i32, %c0_i32_0 : i32, i32
  }
  func.func @transform_8(%arg0: i32) -> (i32, i32) {
    %c0_i32 = arith.constant 0 : i32
    %c0_i32_0 = arith.constant 0 : i32
    %c0_i32_1 = arith.constant 0 : i32
    return %c0_i32, %c0_i32_0 : i32, i32
  }
  func.func @transform_9(%arg0: i32) -> (i32, i32, i32) {
    %c0_i32 = arith.constant 0 : i32
    %c0_i32_0 = arith.constant 0 : i32
    %c0_i32_1 = arith.constant 0 : i32
    return %arg0, %c0_i32, %c0_i32_0 : i32, i32, i32
  }
}

</mosaic_0001>

<bundles_post_ra>
// kernel: tpu_custom_call.1
= control target key start
LH: loop header
LB: loop body
LE: loop exit
PB: predicated region body
PF: predicated region fallthrough
CT: control target
= control target key end

     0   :  { %s2385_s0 = inlined_call_operand.hbm [shape: bf16[4,16,64], index: 0, kind: input, shape index: {}]   ;;  %s2386_s1 = inlined_call_operand.hbm [shape: bf16[4,16,64], index: 1, kind: input, shape index: {}]   ;;  %s2387_s2 = inlined_call_operand.hbm [shape: bf16[4,16,64], index: 2, kind: input, shape index: {}]   ;;  %s2388_s3 = inlined_call_operand.vmem [shape: f32[4,1,16], index: 3, kind: input, shape index: {}]   ;;  %s2389_s4 = inlined_call_operand.vmem [shape: bf16[4,32,16], index: 4, kind: input, shape index: {}]   ;;  %s2390_s5 = inlined_call_operand.vmem [shape: bf16[3,64,64], index: 5, kind: input, shape index: {}]   ;;  %s2391_s6 = inlined_call_operand.hbm [shape: bf16[64,128], index: 6, kind: input, shape index: {}]   ;;  %s2392_s7 = inlined_call_operand.vmem [shape: f32[1,128], index: 7, kind: input, shape index: {}]   ;;  %s2393_s8 = inlined_call_operand.hbm [shape: f32[8,64], index: 8, kind: input, shape index: {}]   ;;  %s2394_s9 = inlined_call_operand.hbm [shape: f32[4,16,128], index: 9, kind: output, shape index: {}]  }
   0x1   :  { %2409 = sst [smem:[#allocation27_spill]] %s2386_s1 }
   0x2   :  { %2410 = sst [smem:[#allocation28_spill]] %s2389_s4 }
   0x3   :  { %2411 = sst [smem:[#allocation29_spill]] %s2391_s6 }
   0x4   :  { %2412 = sst [smem:[#allocation30_spill]] %s2393_s8 }
   0x5   :  { %2413 = sst [smem:[#allocation31_spill]] %s2394_s9 }
   0x6   :  { %14 = vsyncpa [#allocation8], 0 }
   0x7   :  { %16 = vsyncpa [#allocation8 + $0x1], 0 }
   0x8   :  { %17 = vsyncpa [#allocation11], 0 }
   0x9   :  { %19 = vsyncpa [#allocation11 + $0x1], 0 }
   0xa   :  { %20 = vsyncpa [#allocation14], 0 }
   0xb   :  { %21 = vsyncpa [#allocation9], 0 }
   0xc   :  { %23 = vsyncpa [#allocation9 + $0x1], 0  ;;  %s1971_s30 = smov 0   ;;  %s1973_s10 = smov 0  }
   0xd   :  { %s1975_s11 = smov 0   ;;  %s1977_s12 = smov 0  }
   0xe LB: > { %2414 = sst [smem:[#allocation21_spill]] %s1881_s30  ;;  %s1992_s13 = sadd.s32 4294967295, %s1893_s12   ;;  %s1893_s12 = sphi %s1977_s12, %s2442_s12   ;;  %s1889_s11 = sphi %s1975_s11, %s2446_s11   ;;  %s1885_s10 = sphi %s1973_s10, %s2445_s10   ;;  %s1881_s30 = sphi %s1971_s30, %s2444_s30  }
   0xf   : > { %2415 = sst [smem:[#allocation22_spill]] %s1893_s12  ;;  %s1340_s14 = sadd.s32 4294967294, %s1893_s12  }
  0x10   : > { %p49_p0 = scmp.ne.s32.totalorder %s1885_s10, %s1881_s30  ;;  %p2408_p1 = scmp.eq.s32.totalorder %s1992_s13, 0 }
  0x11   : > { %p256_p2 = scmp.eq.s32.totalorder %s1992_s13, 3  ;;  %p262_p3 = scmp.eq.s32.totalorder %s1340_s14, 3 }
  0x12   : > { %p2001_p4 = por %p2408_p1, %p49_p0  ;;  %p1341_p5 = scmp.ge.s32.totalorder %s1893_s12, 1 }
  0x13   : > { %p2006_p6 = por %p262_p3, %p49_p0  ;;  %p269_p7 = scmp.lt.s32.totalorder %s1893_s12, 5 }
  0x14   : > { %s2419_s6 = sld [smem:[#allocation29_spill]]  ;;  %s1899_s21 = smov [#allocation13]  }
  0x15   : > { %s2417_s16 = scalar_select %p2006_p6, 1, 0 }
  0x16   : > { %p2014_p8 = pnand %p1341_p5, %p269_p7  ;;  %s288_s22 = sshll.u32 %s1899_s21, 4  ;;  %s289_s22 = int_to_ptr.vmem [resolvable:$true] %s288_s22 }
  0x17   : > { %2418 = sst [smem:[#allocation23_spill]] %s2417_s16  ;;  %s2027_s24 = sadd.s32 1, %s1893_s12  }
  0x18   : > { %p1568_p9 = pneg %p2014_p8  ;;  %2422 = sst [smem:[#allocation24_spill]] %s2027_s24 }
  0x19   : > { %s2395_s25 = smov 64   ;;  %s2397_s26 = smov 4  }
  0x1a   : > { %s286_s19 = sshll.u32 %s2419_s6, 4  ;;  %p2022_p10 = pnand %p1568_p9, %p2408_p1  ;;  %s287_s19 = int_to_ptr.hbm [resolvable:$true] %s286_s19 }
  0x1b   : > { %s33_s27 = ssub.s32 %s1893_s12, %s2027_s24  ;;  %s36_s28 = sadd.s32 1, %s1889_s11 }
  0x1c   : > { %1571 = dma.hbm_to_vmem [thread:$0]  (!%p2022_p10), %s287_s19, 512, %s289_s22, [#allocation14], %s2395_s25, %s2395_s25, %s2397_s26  }
  0x1d   : > { %p34_p11 = scmp.eq.s32.totalorder %s33_s27, 0  ;;  %p43_p12 = scmp.ne.s32.totalorder %s1889_s11, %s1885_s10 }
  0x1e   : > { %p44_p13 = scmp.eq.s32.totalorder %s1893_s12, 0  ;;  %p1591_p0 = scmp.lt.s32.totalorder %s1893_s12, 4 }
  0x1f   : > { %s2042_s29 = scalar_select %p34_p11, %s1889_s11, %s36_s28  }
  0x20   : > { %p45_p3 = por %p44_p13, %p43_p12  ;;  %p2046_p5 = por %p256_p2, %p43_p12 }
  0x21   : > { %2423 = sst [smem:[#allocation25_spill]] %s2042_s29  ;;  %s2401_s17 = sand.u32 1, %s1889_s11  }
  0x22   : > { %s2424_s14 = scalar_select %p2046_p5, 1, 0 }
  0x23   : > { %s2052_s18 = sshll.u32 %s1893_s12, 3  ;;  %s2056_s19 = sshll.u32 %s2401_s17, 3 }
  0x24   : > { %2425 = sst [smem:[#allocation26_spill]] %s2424_s14  ;;  %p2058_p7 = pnand %p1591_p0, %p45_p3 }
  0x25   : > { %s339_s22 = sand.u32 1, %s1893_s12   ;;  %s2427_s1 = sld [smem:[#allocation27_spill]] }
  0x26   : > { %s343_s26 = scalar_lea.vmem [#allocation10], %s2056_s19  ;;  %s2428_s8 = sld [smem:[#allocation30_spill]] }
  0x27   : > { %s351_s6 = sshll.u32 %s343_s26, 4  ;;  %s2071_s30 = scalar_lea.sflag [#allocation11], %s339_s22  ;;  %s352_s6 = int_to_ptr.vmem [resolvable:$true] %s351_s6 }
  0x28   : > { %p1699_p9 = pneg %p2058_p7 }
  0x2b   : > { %s348_s25 = scalar_lea.hbm %s2427_s1, %s2052_s18  ;;  %s1702_s27 = scalar_lea.hbm %s2427_s1, 32 }
  0x2c   : > { %s349_s29 = sshll.u32 %s348_s25, 4  ;;  %s304_s16 = sshll.u32 %s2428_s8, 4  ;;  %s350_s29 = int_to_ptr.hbm [resolvable:$true] %s349_s29  ;;  %s305_s16 = int_to_ptr.hbm [resolvable:$true] %s304_s16 }
  0x2d   : > { %s1695_s9 = sshra.s32 %s350_s29, 4  ;;  %s1696_s9 = int_to_ptr.hbm [resolvable:$true] %s1695_s9 }
  0x2e   : > { %s1697_s14 = scalar_lea.hbm %s1696_s9, 8  ;;  %p1703_p13 = scmp.lt.s32.totalorder %s1696_s9, %s2427_s1 }
  0x2f   : > { %p1698_p2 = scmp.ne.s32.totalorder %s1696_s9, %s1697_s14  ;;  %p1704_p0 = scmp.lt.s32.totalorder %s1702_s27, %s1697_s14 }
  0x31   : > { %p1700_p11 = pnand %p1699_p9, %p1698_p2  ;;  %p1705_p3 = por %p1704_p0, %p1703_p13 }
  0x33   : > { %p1701_p12 = pneg %p1700_p11 }
  0x35   : > { %p1706_p1 = pnand %p1705_p3, %p1701_p12 }
  0x37   : > { %1709 = shalt.err (!%p1706_p1)
}
  0x38   : > { %s2429_s24 = smov 4   ;;  %s2430_s17 = smov 64  }
  0x39   : > { %1581 = dma.hbm_to_vmem [thread:$0]  (!%p2058_p7), %s350_s29, 128, %s352_s6, %s2071_s30, %s2430_s17, %s2430_s17, %s2429_s24  }
  0x3a   : > { %s1902_s22 = smov [#allocation15]   ;;  %s326_s26 = scalar_lea.hbm %s2385_s0, %s2052_s18 }
  0x3b   : > { %s306_s12 = sshll.u32 %s1902_s22, 4  ;;  %s321_s25 = scalar_lea.vmem [#allocation7], %s2056_s19  ;;  %s307_s12 = int_to_ptr.vmem [resolvable:$true] %s306_s12 }
  0x3c   : > { %1574 = dma.hbm_to_vmem [thread:$0]  (!%p2022_p10), %s305_s16, 128, %s307_s12, [#allocation14]  }
  0x3d   : > { %s329_s27 = sshll.u32 %s321_s25, 4  ;;  %s327_s28 = sshll.u32 %s326_s26, 4  ;;  %s330_s27 = int_to_ptr.vmem [resolvable:$true] %s329_s27  ;;  %s328_s28 = int_to_ptr.hbm [resolvable:$true] %s327_s28 }
  0x3e   : > { %s2431_s1 = sand.u32 1, %s1889_s11   ;;  %s1755_s4 = sshra.s32 %s328_s28, 4  ;;  %s1756_s4 = int_to_ptr.hbm [resolvable:$true] %s1755_s4 }
  0x3f   : > { %s318_s8 = scalar_lea.sflag [#allocation8], %s2431_s1  ;;  %s1757_s6 = scalar_lea.hbm %s1756_s4, 8 }
  0x40   : > { %p1758_p1 = scmp.ne.s32.totalorder %s1756_s4, %s1757_s6  ;;  %s1762_s29 = scalar_lea.hbm %s2385_s0, 32 }
  0x41   : > { %p1763_p10 = scmp.lt.s32.totalorder %s1756_s4, %s2385_s0  ;;  %p1764_p12 = scmp.lt.s32.totalorder %s1762_s29, %s1757_s6 }
  0x42   : > { %p1760_p2 = pnand %p1758_p1, %p1699_p9 }
  0x43   : > { %p1765_p13 = por %p1764_p12, %p1763_p10 }
  0x44   : > { %p1761_p11 = pneg %p1760_p2 }
  0x46   : > { %p1766_p0 = pnand %p1765_p13, %p1761_p11 }
  0x48   : > { %1769 = shalt.err (!%p1766_p0)
}
  0x49   : > { %1578 = dma.hbm_to_vmem [thread:$0]  (!%p2058_p7), %s328_s28, 128, %s330_s27, %s318_s8, %s2430_s17, %s2430_s17, %s2429_s24  }
  0x4a   : > { %s370_s14 = scalar_lea.hbm %s2387_s2, %s2052_s18  ;;  %s365_s26 = scalar_lea.vmem [#allocation12], %s2056_s19 }
  0x4b   : > { %s373_s25 = sshll.u32 %s365_s26, 4  ;;  %s371_s4 = sshll.u32 %s370_s14, 4  ;;  %s374_s25 = int_to_ptr.vmem [resolvable:$true] %s373_s25  ;;  %s372_s4 = int_to_ptr.hbm [resolvable:$true] %s371_s4 }
  0x4c   : > { %s1785_s6 = sshra.s32 %s372_s4, 4  ;;  %s1792_s8 = scalar_lea.hbm %s2387_s2, 32  ;;  %s1786_s6 = int_to_ptr.hbm [resolvable:$true] %s1785_s6 }
  0x4d   : > { %s1787_s16 = scalar_lea.hbm %s1786_s6, 8  ;;  %p1793_p11 = scmp.lt.s32.totalorder %s1786_s6, %s2387_s2 }
  0x4e   : > { %p1788_p3 = scmp.ne.s32.totalorder %s1786_s6, %s1787_s16  ;;  %p1794_p10 = scmp.lt.s32.totalorder %s1792_s8, %s1787_s16 }
  0x50   : > { %p1790_p1 = pnand %p1788_p3, %p1699_p9  ;;  %p1795_p12 = por %p1794_p10, %p1793_p11 }
  0x52   : > { %p1791_p2 = pneg %p1790_p1 }
  0x54   : > { %p1796_p13 = pnand %p1795_p12, %p1791_p2 }
  0x56   : > { %1799 = shalt.err (!%p1796_p13)
}
  0x57   : > { %1584 = dma.hbm_to_vmem [thread:$0]  (!%p2058_p7), %s372_s4, 128, %s374_s25, %s2071_s30, %s2430_s17, %s2430_s17, %s2429_s24  }
  0x58   : > { %391 = sbr.rel (%p2014_p8) target bundleno = 1834 (0x72a), region = 56  ;;  %s2136_s18 = sand.u32 (!%p2014_p8), 1, %s1885_s10  }
  0x59   : > { %s2139_s19 = sshll.u32 (!%p2014_p8), %s2136_s18, 3  ;;  %s394_s22 = scalar_lea.sflag (!%p2014_p8), [#allocation8], %s2136_s18 }
  0x5a   : > { %s397_s12 = scalar_lea.vmem (!%p2014_p8), [#allocation7], %s2139_s19 }
  0x5d   : > { %1864 = dma.done.wait (%p2001_p4), %s394_s22, 128  }
  0x5e   : > { %1866 = vsyncadd (%p2001_p4), %s394_s22, 4294967168  ;;  %s403_s30 = sand.u32 1, %s1992_s13   ;;  %s407_s21 = scalar_lea.vmem [#allocation10], %s2139_s19 }
  0x5f   : > { %s404_s20 = scalar_lea.sflag [#allocation11], %s403_s30 }
  0x60   : > { %1868 = dma.done.wait (%p2001_p4), %s404_s20, 256  }
  0x61   : > { %1870 = vsyncadd (%p2001_p4), %s404_s20, 4294967040  ;;  %s417_s24 = scalar_lea.vmem [#allocation12], %s2139_s19  ;;  %p2432_p8 = scmp.eq.s32.totalorder %s1992_s13, 0 }
  0x63   : > { %1872 = dma.done.wait (%p2432_p8), [#allocation14], 640   ;;  %p2433_p7 = pmov %p2432_p8 }
  0x64   : > { %p476_p9 = scmp.lt.s32.totalorder %s1992_s13, 3  ;;  %s1360_s17 = sshll.u32 %s2136_s18, 4  ;;  %v490_v0 = vlaneseq  ;;  %v2169_v3 = vld [vmem:[#allocation13] sm:$0xf]  ;;  %v2171_v4 = vld [vmem:[#allocation13] sm:$0xf0] }
  0x65   : > { %1874 = vsyncadd (%p2433_p7), [#allocation14], 4294966656  ;;  %v2173_v5 = vld [vmem:[#allocation13 + $0x8] sm:$0xf]  ;;  %v2175_v6 = vld [vmem:[#allocation13 + $0x8] sm:$0xf0] }
  0x66   : > { %v2160_v1 = vshrl.u32 %v490_v0, 7  ;;  %s477_s1 = scalar_select %p476_p9, %s1992_s13, 3  ;;  %v2177_v7 = vld [vmem:[#allocation13 + $0x10] sm:$0xf]  ;;  %v2179_v8 = vld [vmem:[#allocation13 + $0x10] sm:$0xf0] }
  0x67   : > { %v2181_v9 = vld [vmem:[#allocation13 + $0x18] sm:$0xf]  ;;  %v2183_v10 = vld [vmem:[#allocation13 + $0x18] sm:$0xf0]  ;;  %v2188_v11 = vld [vmem:[%s2392_s7] sm:$0x1] }
  0x68   : > { %v2164_v2 = vadd.s32 8, %v2160_v1  ;;  %s478_s14 = scalar_lea.vmem %s2388_s3, %s477_s1  ;;  %v1526_v13 = vld [vmem:[%s2390_s5 + $0x18] sm:$0xff]  ;;  %v1525_v15 = vld [vmem:[%s2390_s5 + $0x10] sm:$0xff]  ;;  %v1524_v19 = vld [vmem:[%s2390_s5 + $0x8] sm:$0xff]  ;;  %vm539_vm1 = vcmask 523264   ;;  %vm683_vm2 = vcmask 125952  }
  0x69   : > { %v2190_v12 = vld [vmem:[%s478_s14] sm:$0x1]  ;;  %v1530_v14 = vld [vmem:[%s2390_s5 + $0x38] sm:$0xff]  ;;  %547 = vmatpush.bf16.msra.mxu0 %v1526_v13  ;;  %v1529_v16 = vld [vmem:[%s2390_s5 + $0x30] sm:$0xff]  ;;  %s1903_s19 = smov 96   ;;  %s2290_s28 = smov 0  }
  0x6a   : > { %vm500_vm0 = vcmp.gt.f32.partialorder %v2190_v12, 0.0  ;;  %603 = vmatpush.bf16.msra.mxu1 %v1530_v14  ;;  %v1534_v17 = vld [vmem:[%s2390_s5 + $0x58] sm:$0xff]  ;;  %v1533_v18 = vld [vmem:[%s2390_s5 + $0x50] sm:$0xff]  ;;  %v1528_v20 = vld [vmem:[%s2390_s5 + $0x28] sm:$0xff] }
  0x6b   : > { %659 = vmatpush.bf16.msra.mxu2 %v1534_v17  ;;  %v1532_v21 = vld [vmem:[%s2390_s5 + $0x48] sm:$0xff]  ;;  %v1523_v22 = vld [vmem:[%s2390_s5] sm:$0xff]  ;;  %v1521_v25 = vld [vmem:[%s407_s21] sm:$0xff]  ;;  %s1905_s21 = smov 80  }
  0x6c   : > { %v1527_v23 = vld [vmem:[%s2390_s5 + $0x20] sm:$0xff]  ;;  %v480_v28 = vld [vmem:[#allocation15] sm:$0xff] }
  0x6d   : > { %548 = vmatpush.bf16.msra.mxu0 %v1525_v15  ;;  %v1520_v24 = vld [vmem:[%s397_s12] sm:$0xff]  ;;  %v509_v29 = vperm.slane %v480_v28, 0  ;;  %v566_v30 = vperm.slane %v480_v28, 1  ;;  %v669_v31 = vperm.slane %v480_v28, 3  ;;  %v674_v32 = vperm.slane %v480_v28, 4  ;;  %s1904_s12 = smov 112  }
  0x6e   : > { %604 = vmatpush.bf16.msra.mxu1 %v1529_v16  ;;  %v1531_v26 = vld [vmem:[%s2390_s5 + $0x40] sm:$0xff]  ;;  %v622_v42 = vperm.slane %v480_v28, 2 }
  0x6f   : > { %660 = vmatpush.bf16.msra.mxu2 %v1533_v18  ;;  %v1522_v27 = vld [vmem:[%s417_s24] sm:$0xff]  ;;  %s2288_s24 = scalar_lea.vmem [#allocation16], %s1360_s17 }
  0x71   : > { %549 = vmatpush.bf16.msra.mxu0 %v1524_v19 }
  0x72   : > { %605 = vmatpush.bf16.msra.mxu1 %v1528_v20 }
  0x73   : > { %661 = vmatpush.bf16.msra.mxu2 %v1532_v21 }
  0x75   : > { %550 = vmatpush.bf16.msra.mxu0 %v1523_v22 }
  0x76   : > { %606 = vmatpush.bf16.msra.mxu1 %v1527_v23 }
  0x77   : > { %662 = vmatpush.bf16.msra.mxu2 %v1531_v26 }
  0x78   : > { %1381 = vmatmul.msk.bf16.vlgmr.msra.gmra.mxu0 %vm539_vm1, %v1520_v24 }
  0x79   : > { %1410 = vmatmul.msk.bf16.vlgmr.msra.gmra.mxu1 %vm539_vm1, %v1521_v25 }
  0x7a   : > { %1439 = vmatmul.msk.bf16.vlgmr.msra.gmra.mxu2 %vm539_vm1, %v1522_v27 }
  0xf5   : > { %v552_v33 = vpop.f32.mrf.mxu0 }
  0xf6   : > { %v608_v34 = vpop.f32.mrf.mxu1  ;;  %v553_v35 = vadd.f32 %v552_v33, %v509_v29 }
  0xf7   : > { %v609_v36 = vadd.f32 %v608_v34, %v566_v30 }
  0xf8   : > { %v670_v37 = vadd.f32 %v669_v31, %v553_v35  ;;  %v675_v38 = vadd.f32 %v674_v32, %v553_v35 }
  0xf9   : > { %v679_v39 = vpack.c.bf16 %v609_v36, %v609_v36 }
  0xfa   : > { %v672_v40 = vpack.c.bf16 %v670_v37, %v670_v37  ;;  %v677_v41 = vpack.c.bf16 %v675_v38, %v675_v38 }
  0xfb   : > { %688 = vst.msk [vmem:[#allocation4] sm:$0xf] %vm683_vm2, %v679_v39  ;;  %754 = vrot.lane.b32.xlu0 %v679_v39, %s1903_s19  ;;  %716 = vrot.lane.b32.xlu2 %v679_v39, %s1904_s12 }
  0xfc   : > { %684 = vst.msk [vmem:[#allocation2] sm:$0xf] %vm683_vm2, %v672_v40  ;;  %705 = vrot.lane.b32.xlu1 %v677_v41, %s1904_s12 }
  0xfd   : > { %686 = vst.msk [vmem:[#allocation3] sm:$0xf] %vm683_vm2, %v677_v41  ;;  %v554_v43 = vpop.f32.mrf.mxu0  ;;  %v664_v47 = vpop.f32.mrf.mxu2 }
  0xfe   : > { %v610_v44 = vpop.f32.mrf.mxu1  ;;  %v555_v45 = vadd.f32 %v554_v43, %v509_v29  ;;  %v665_v51 = vadd.f32 %v664_v47, %v622_v42 }
  0xff   : > { %v611_v46 = vadd.f32 %v610_v44, %v566_v30 }
 0x100   : > { %v671_v48 = vadd.f32 %v669_v31, %v555_v45  ;;  %v676_v49 = vadd.f32 %v674_v32, %v555_v45  ;;  %v681_v54 = vpack.c.bf16 %v665_v51, %v665_v51 }
 0x101   : > { %v680_v50 = vpack.c.bf16 %v611_v46, %v611_v46 }
 0x102   : > { %v673_v52 = vpack.c.bf16 %v671_v48, %v671_v48  ;;  %v678_v53 = vpack.c.bf16 %v676_v49, %v676_v49  ;;  %690 = vst.msk [vmem:[#allocation5] sm:$0xf] %vm683_vm2, %v681_v54 }
 0x103   : > { %689 = vst.msk [vmem:[#allocation4 + $0x4] sm:$0xf] %vm683_vm2, %v680_v50  ;;  %790 = vrot.lane.b32.xlu2 %v679_v39, %s1905_s21  ;;  %694 = vrot.lane.b32.xlu0 %v672_v40, %s1904_s12 }
 0x104   : > { %685 = vst.msk [vmem:[#allocation2 + $0x4] sm:$0xf] %vm683_vm2, %v673_v52  ;;  %745 = vrot.lane.b32.xlu1 %v677_v41, %s1903_s19 }
 0x105   : > { %687 = vst.msk [vmem:[#allocation3 + $0x4] sm:$0xf] %vm683_vm2, %v678_v53  ;;  %v666_v55 = vpop.f32.mrf.mxu2 }
 0x106   : > { %v667_v56 = vadd.f32 %v666_v55, %v622_v42 }
 0x108   : > { %v682_v57 = vpack.c.bf16 %v667_v56, %v667_v56 }
 0x10a   : > { %691 = vst.msk [vmem:[#allocation5 + $0x4] sm:$0xf] %vm683_vm2, %v682_v57 }
 0x10b   : > { %736 = vrot.lane.b32.xlu2 %v672_v40, %s1903_s19  ;;  %781 = vrot.lane.b32.xlu0 %v677_v41, %s1905_s21 }
 0x10c   : > { %772 = vrot.lane.b32.xlu1 %v672_v40, %s1905_s21 }
 0x113   : > { %763 = vrot.lane.b32.xlu2 %v681_v54, %s1903_s19  ;;  %727 = vrot.lane.b32.xlu0 %v681_v54, %s1904_s12 }
 0x114   : > { %756 = vrot.lane.b32.xlu1 %v680_v50, %s1903_s19 }
 0x11b   : > { %718 = vrot.lane.b32.xlu2 %v680_v50, %s1904_s12  ;;  %696 = vrot.lane.b32.xlu0 %v673_v52, %s1904_s12 }
 0x11c   : > { %707 = vrot.lane.b32.xlu1 %v678_v53, %s1904_s12 }
 0x123   : > { %747 = vrot.lane.b32.xlu2 %v678_v53, %s1903_s19  ;;  %738 = vrot.lane.b32.xlu0 %v673_v52, %s1903_s19 }
 0x124   : > { %783 = vrot.lane.b32.xlu1 %v678_v53, %s1905_s21 }
 0x12b   : > { %774 = vrot.lane.b32.xlu2 %v673_v52, %s1905_s21  ;;  %765 = vrot.lane.b32.xlu0 %v682_v57, %s1903_s19 }
 0x12c   : > { %729 = vrot.lane.b32.xlu1 %v682_v57, %s1904_s12 }
 0x133   : > { %801 = vrot.lane.b32.xlu2 %v682_v57, %s1905_s21  ;;  %792 = vrot.lane.b32.xlu0 %v680_v50, %s1905_s21 }
 0x134   : > { %799 = vrot.lane.b32.xlu1 %v681_v54, %s1905_s21 }
 0x155   : > { %v717_v58 = vpop.permute.xlu2 %716 }
 0x156   : > { %723 = vst.msk [vmem:[#allocation4 + $0x8] sm:$0xf] %vm683_vm2, %v717_v58 }
 0x15d   : > { %v791_v59 = vpop.permute.xlu2 %790 }
 0x15e   : > { %797 = vst.msk [vmem:[#allocation4 + $0x18] sm:$0xf] %vm683_vm2, %v791_v59 }
 0x165   : > { %v737_v60 = vpop.permute.xlu2 %736 }
 0x166   : > { %743 = vst.msk [vmem:[#allocation2 + $0x10] sm:$0xf] %vm683_vm2, %v737_v60 }
 0x16d   : > { %v755_v61 = vpop.permute.xlu0 %754  ;;  %v764_v62 = vpop.permute.xlu2 %763 }
 0x16e   : > { %761 = vst.msk [vmem:[#allocation4 + $0x10] sm:$0xf] %vm683_vm2, %v755_v61  ;;  %v706_v63 = vpop.permute.xlu1 %705 }
 0x16f   : > { %770 = vst.msk [vmem:[#allocation5 + $0x10] sm:$0xf] %vm683_vm2, %v764_v62 }
 0x170   : > { %712 = vst.msk [vmem:[#allocation3 + $0x8] sm:$0xf] %vm683_vm2, %v706_v63 }
 0x175   : > { %v719_v0 = vpop.permute.xlu2 %718  ;;  %v695_v13 = vpop.permute.xlu0 %694 }
 0x176   : > { %724 = vst.msk [vmem:[#allocation4 + $0xc] sm:$0xf] %vm683_vm2, %v719_v0  ;;  %v746_v14 = vpop.permute.xlu1 %745 }
 0x177   : > { %701 = vst.msk [vmem:[#allocation2 + $0x8] sm:$0xf] %vm683_vm2, %v695_v13 }
 0x178   : > { %752 = vst.msk [vmem:[#allocation3 + $0x10] sm:$0xf] %vm683_vm2, %v746_v14 }
 0x17d   : > { %v748_v15 = vpop.permute.xlu2 %747  ;;  %v782_v16 = vpop.permute.xlu0 %781 }
 0x17e   : > { %753 = vst.msk [vmem:[#allocation3 + $0x14] sm:$0xf] %vm683_vm2, %v748_v15  ;;  %v773_v17 = vpop.permute.xlu1 %772 }
 0x17f   : > { %788 = vst.msk [vmem:[#allocation3 + $0x18] sm:$0xf] %vm683_vm2, %v782_v16 }
 0x180   : > { %779 = vst.msk [vmem:[#allocation2 + $0x18] sm:$0xf] %vm683_vm2, %v773_v17 }
 0x185   : > { %v775_v18 = vpop.permute.xlu2 %774  ;;  %v728_v19 = vpop.permute.xlu0 %727 }
 0x186   : > { %780 = vst.msk [vmem:[#allocation2 + $0x1c] sm:$0xf] %vm683_vm2, %v775_v18  ;;  %v757_v20 = vpop.permute.xlu1 %756 }
 0x187   : > { %734 = vst.msk [vmem:[#allocation5 + $0x8] sm:$0xf] %vm683_vm2, %v728_v19 }
 0x188   : > { %762 = vst.msk [vmem:[#allocation4 + $0x14] sm:$0xf] %vm683_vm2, %v757_v20 }
 0x18d   : > { %v802_v21 = vpop.permute.xlu2 %801  ;;  %v697_v22 = vpop.permute.xlu0 %696 }
 0x18e   : > { %807 = vst.msk [vmem:[#allocation5 + $0x1c] sm:$0xf] %vm683_vm2, %v802_v21  ;;  %v708_v23 = vpop.permute.xlu1 %707 }
 0x18f   : > { %702 = vst.msk [vmem:[#allocation2 + $0xc] sm:$0xf] %vm683_vm2, %v697_v22 }
 0x190   : > { %713 = vst.msk [vmem:[#allocation3 + $0xc] sm:$0xf] %vm683_vm2, %v708_v23 }
 0x195   : > { %v739_v24 = vpop.permute.xlu0 %738 }
 0x196   : > { %744 = vst.msk [vmem:[#allocation2 + $0x14] sm:$0xf] %vm683_vm2, %v739_v24  ;;  %v784_v25 = vpop.permute.xlu1 %783 }
 0x197   : > { %789 = vst.msk [vmem:[#allocation3 + $0x1c] sm:$0xf] %vm683_vm2, %v784_v25 }
 0x19d   : > { %v766_v26 = vpop.permute.xlu0 %765 }
 0x19e   : > { %771 = vst.msk [vmem:[#allocation5 + $0x14] sm:$0xf] %vm683_vm2, %v766_v26  ;;  %v730_v27 = vpop.permute.xlu1 %729 }
 0x19f   : > { %735 = vst.msk [vmem:[#allocation5 + $0xc] sm:$0xf] %vm683_vm2, %v730_v27 }
 0x1a5   : > { %v793_v28 = vpop.permute.xlu0 %792 }
 0x1a6   : > { %798 = vst.msk [vmem:[#allocation4 + $0x1c] sm:$0xf] %vm683_vm2, %v793_v28  ;;  %v800_v29 = vpop.permute.xlu1 %799 }
 0x1a7   : > { %806 = vst.msk [vmem:[#allocation5 + $0x18] sm:$0xf] %vm683_vm2, %v800_v29 }
 0x1a8 LB: >> { %s1541_s22 = sshll.u32 %s1897_s28, 4  ;;  %s2434_s1 = sld [smem:[#allocation28_spill]]  ;;  %vm849_vm3 = vcmask 130048   ;;  %v873_v38 = vand.u32 1, %v2160_v1  ;;  %vm891_vm4 = vcmask 7168   ;;  %v874_v43 = vand.u32 1, %v2164_v2  ;;  %s1897_s28 = sphi %s2290_s28, %s813_s28  }
 0x1a9   : >> { %s2301_s17 = sshll.u32 %s1897_s28, 3  ;;  %s1906_s14 = smov 97   ;;  %v897_v50 = vand.u32 2, %v2164_v2  ;;  %vm914_vm7 = vcmask 15360   ;;  %v896_v54 = vand.u32 2, %v2160_v1  ;;  %v920_v60 = vand.u32 4, %v2164_v2 }
 0x1aa   : >> { %s824_s9 = scalar_lea.vmem [#allocation3], %s2301_s17  ;;  %s1907_s26 = smov 1   ;;  %vm875_vm5 = vcmp.ne.s32.totalorder %v873_v38, 0  ;;  %vm876_vm6 = vcmp.ne.s32.totalorder %v874_v43, 0  ;;  %vm937_vm10 = vcmask 31744   ;;  %v919_v13 = vand.u32 4, %v2160_v1 }
 0x1ab   : >> { %v1540_v34 = vld [vmem:[%s824_s9] sm:$0xff]  ;;  %s1908_s25 = smov 2   ;;  %s1909_s4 = smov 98   ;;  %vm899_vm8 = vcmp.ne.s32.totalorder %v897_v50, 0  ;;  %vm898_vm9 = vcmp.ne.s32.totalorder %v896_v54, 0  ;;  %vm922_vm11 = vcmp.ne.s32.totalorder %v920_v60, 0 }
 0x1ac   : >> { %s820_s6 = scalar_lea.vmem [#allocation4], %s2301_s17  ;;  %s1910_s16 = smov 4   ;;  %vm921_vm12 = vcmp.ne.s32.totalorder %v919_v13, 0  ;;  %v1915_v18 = vmov 0   ;;  %vm960_vm14 = vcmask 64512  }
 0x1ad   : >> { %v1538_v47 = vld [vmem:[%s820_s6] sm:$0xff]  ;;  %s1911_s23 = smov 100   ;;  %s816_s29 = scalar_lea.vmem [#allocation2], %s2301_s17  ;;  %v1003_v19 = vsel %vm500_vm0, 1, %v1915_v18 }
 0x1ae   : >> { %s829_s15 = scalar_lea.vmem %s2434_s1, %s1541_s22  ;;  %v987_v48 = vsel %vm849_vm3, %v1538_v47, 0  ;;  %v1536_v59 = vld [vmem:[%s816_s29] sm:$0xff]  ;;  %s1912_s8 = smov 8   ;;  %v1004_v20 = vperm.slane %v1003_v19, 0 }
 0x1af   : >> { %v1543_v30 = vld [vmem:[%s829_s15 + $0x8] sm:$0xff]  ;;  %v1542_v32 = vld [vmem:[%s829_s15] sm:$0xff]  ;;  %996 = vmatpush.bf16.xpose.msra.mxu1 %v987_v48  ;;  %s1913_s27 = smov 104   ;;  %s1914_s19 = smov 113  }
 0x1b0   : >> { %v857_v31 = vsel %vm849_vm3, %v1543_v30, 0  ;;  %v854_v33 = vsel %vm849_vm3, %v1542_v32, 0  ;;  %vm2318_vm13 = vcmp.eq.s32.totalorder %v1004_v20, 1  ;;  %s1039_s12 = scalar_lea.vmem [#allocation5], %s2301_s17  ;;  %s1068_s21 = scalar_lea.vmem [#allocation6], %s2301_s17 }
 0x1b1   : >> { %865 = vmatpush.bf16.xpose.msra.mxu0 %v857_v31  ;;  %v1545_v48 = vld [vmem:[%s1039_s12] sm:$0xff]  ;;  %s813_s28 = sadd.s32 1, %s1897_s28  }
 0x1b2   : >> { %1058 = vmatpush.bf16.msra.mxu2 %v1545_v48  ;;  %p810_p4 = scmp.ge.s32.totalorder %s813_s28, 4  }
 0x1b3   : > { %s1916_s22 = smov (%p810_p4), 16   ;;  %s1917_s30 = smov (%p810_p4), 48   ;;  %v1502_v13 = vor.u32 (%p810_p4), %v2179_v8, %v2177_v7  ;;  %v1498_v1 = vor.u32 (%p810_p4), %v2175_v6, %v2173_v5  ;;  %v1494_v2 = vor.u32 (%p810_p4), %v2171_v4, %v2169_v3  ;;  %vm1112_vm15 = vcmask (%p810_p4), 261120  }
 0x1b4   : > { %s1918_s20 = smov (%p810_p4), 32   ;;  %vm1115_vm0 = vcmask (%p810_p4), 392192   ;;  %v1119_v5 = vperm.slane (%p810_p4), %v2188_v11, 0  ;;  %s1551_s28 = sshll.u32 (%p810_p4), %s1992_s13, 4 }
 0x1b5   : > { %s2438_s9 = sld [smem:[#allocation31_spill]] (%p810_p4) }
 0x1b6   : >> { %1467 = vmatmul.msk.bf16.vlgmr.msra.gmra.mxu1 %vm849_vm3, %v1536_v59 }
 0x1b9   : >> { %866 = vmatpush.bf16.xpose.msra.mxu0 %v854_v33  ;;  %v1021_v33 = vperm.slane %v2190_v12, 0 }
 0x1bb   : > { %s1835_s29 = scalar_lea.hbm (%p810_p4), %s2438_s9, 64 }
 0x1c0   : >> { %1458 = vmatmul.msk.bf16.vlgmr.msra.gmra.mxu0 %vm849_vm3, %v1540_v34 }
 0x233   : >> { %v998_v21 = vpop.f32.mrf.mxu1 }
 0x23d   : >> { %v868_v35 = vpop.f32.mrf.mxu0 }
 0x23e   : >> { %879 = vrot.lane.b32.xlu1 %v868_v35, %s1906_s14 }
 0x245   : >> { %v870_v36 = vpop.f32.mrf.mxu0 }
 0x246   : >> { %885 = vrot.lane.b32.xlu1 %v868_v35, %s1907_s26  ;;  %881 = vrot.lane.b32.xlu0 %v870_v36, %s1906_s14  ;;  %s1175_s14 = scalar_lea.hbm (%p810_p4), %s2438_s9, %s1551_s28 }
 0x24e   : >> { %887 = vrot.lane.b32.xlu0 %v870_v36, %s1907_s26  ;;  %s1176_s26 = sshll.u32 (%p810_p4), %s2288_s24, 4  ;;  %s1177_s26 = int_to_ptr.vmem [resolvable:$true] %s1176_s26 }
 0x2b0   : >> { %v880_v37 = vpop.permute.xlu1 %879 }
 0x2b8   : >> { %v886_v39 = vpop.permute.xlu1 %885  ;;  %v882_v40 = vpop.permute.xlu0 %881 }
 0x2b9   : >> { %v892_v41 = vsel %vm891_vm4, %v880_v37, %v886_v39 }
 0x2ba   : >> { %v894_v42 = vsel %vm875_vm5, %v892_v41, %v868_v35  ;;  %v1000_v35 = vpop.f32.mrf.mxu1 }
 0x2bb   : >> { %908 = vrot.lane.b32.xlu1 %v894_v42, %s1908_s25  ;;  %902 = vrot.lane.b32.xlu0 %v894_v42, %s1909_s4 }
 0x2c0   : >> { %v888_v44 = vpop.permute.xlu0 %887 }
 0x2c1   : >> { %v893_v45 = vsel %vm891_vm4, %v882_v40, %v888_v44 }
 0x2c2   : >> { %v895_v46 = vsel %vm876_vm6, %v893_v45, %v870_v36 }
 0x2c3   : >> { %904 = vrot.lane.b32.xlu2 %v895_v46, %s1909_s4  ;;  %s1164_s4 = scalar_lea.sflag (%p810_p4), [#allocation9], %s2136_s18 }
 0x2cb   : >> { %910 = vrot.lane.b32.xlu2 %v895_v46, %s1908_s25  ;;  %s1178_s25 = sshll.u32 (%p810_p4), %s1175_s14, 4  ;;  %s1179_s25 = int_to_ptr.hbm [resolvable:$true] %s1178_s25 }
 0x2cc   : > { %s1829_s6 = sshra.s32 (%p810_p4), %s1179_s25, 4  ;;  %s1830_s6 = int_to_ptr.hbm [resolvable:$true] %s1829_s6 }
 0x2cd   : > { %p1836_p2 = scmp.lt.s32.totalorder (%p810_p4), %s1830_s6, %s2438_s9 }
 0x31d   : >> { %v905_v49 = vpop.permute.xlu2 %904 }
 0x325   : >> { %v911_v51 = vpop.permute.xlu2 %910 }
 0x326   : >> { %v916_v52 = vsel %vm914_vm7, %v905_v49, %v911_v51 }
 0x327   : >> { %v918_v53 = vsel %vm899_vm8, %v916_v52, %v895_v46 }
 0x328   : >> { %933 = vrot.lane.b32.xlu0 %v918_v53, %s1910_s16  ;;  %927 = vrot.lane.b32.xlu2 %v918_v53, %s1911_s23 }
 0x32d   : >> { %v909_v55 = vpop.permute.xlu1 %908  ;;  %v903_v56 = vpop.permute.xlu0 %902 }
 0x32e   : >> { %v915_v57 = vsel %vm914_vm7, %v903_v56, %v909_v55 }
 0x32f   : >> { %v917_v58 = vsel %vm898_vm9, %v915_v57, %v894_v42 }
 0x330   : >> { %931 = vrot.lane.b32.xlu2 %v917_v58, %s1910_s16  ;;  %925 = vrot.lane.b32.xlu1 %v917_v58, %s1911_s23  ;;  %s1831_s16 = scalar_lea.hbm (%p810_p4), %s1830_s6, 16 }
 0x331   : > { %p1832_p0 = scmp.ne.s32.totalorder (%p810_p4), %s1830_s6, %s1831_s16  ;;  %p1837_p11 = scmp.lt.s32.totalorder (%p810_p4), %s1835_s29, %s1831_s16 }
 0x333   : > { %p1833_p3 = pnand (%p810_p4), %p1832_p0, %p2046_p5  ;;  %p1838_p10 = por (%p810_p4), %p1837_p11, %p1836_p2 }
 0x335   : > { %p1834_p1 = pneg (%p810_p4), %p1833_p3 }
 0x337   : > { %p1839_p12 = pnand (%p810_p4), %p1838_p10, %p1834_p1 }
 0x382   : >> { %v928_v61 = vpop.permute.xlu2 %927 }
 0x38a   : >> { %v932_v14 = vpop.permute.xlu2 %931 }
 0x39a   : >> { %v934_v62 = vpop.permute.xlu0 %933 }
 0x39b   : >> { %v939_v63 = vsel %vm937_vm10, %v928_v61, %v934_v62 }
 0x39c   : >> { %v941_v0 = vsel %vm922_vm11, %v939_v63, %v918_v53 }
 0x39d   : >> { %956 = vrot.lane.b32.xlu1 %v941_v0, %s1912_s8  ;;  %950 = vrot.lane.b32.xlu0 %v941_v0, %s1913_s27  ;;  %v1506_v0 = vor.u32 (%p810_p4), %v2183_v10, %v2181_v9 }
 0x39f   : > { %1151 = vmatpush.bf16.msra.mxu0 (%p810_p4), %v1506_v0 }
 0x3a2   : >> { %v926_v15 = vpop.permute.xlu1 %925 }
 0x3a3   : >> { %v938_v16 = vsel %vm937_vm10, %v926_v15, %v932_v14  ;;  %1152 = vmatpush.bf16.msra.mxu0 (%p810_p4), %v1502_v13 }
 0x3a4   : >> { %v940_v17 = vsel %vm921_vm12, %v938_v16, %v917_v58 }
 0x3a5   : >> { %977 = vrot.lane.b32.xlu2 %v940_v17, %s1914_s19 }
 0x3a7   : > { %1153 = vmatpush.bf16.msra.mxu0 (%p810_p4), %v1498_v1 }
 0x3ab   : > { %1154 = vmatpush.bf16.msra.mxu0 (%p810_p4), %v1494_v2 }
 0x3ff   : >> { %v978_v22 = vpop.permute.xlu2 %977 }
 0x400   : >> { %v999_v24 = vadd.f32 %v998_v21, %v978_v22 }
 0x402   : >> { %v1006_v25 = vsel %vm2318_vm13, %v999_v24, -3.4028235e+38 }
 0x403   : >> { %v1008_v26 = vsel %vm849_vm3, %v1006_v25, -inf }
 0x404   : >> { %1009 = vmax.xlane.f32.xlu1 %v1008_v26 }
 0x40f   : >> { %v957_v27 = vpop.permute.xlu1 %956  ;;  %v951_v28 = vpop.permute.xlu0 %950 }
 0x410   : >> { %v962_v29 = vsel %vm960_vm14, %v951_v28, %v957_v27 }
 0x411   : >> { %979 = vrot.lane.b32.xlu0 %v962_v29, %s1914_s19 }
 0x477   : >> { %v1010_v30 = vpop.xlane.xlu1 %1009 }
 0x478   : >> { %v1014_v31 = vsub.f32 %v1006_v25, %v1010_v30 }
 0x47a   : >> { %v1016_v32 = vmul.f32 1.442695, %v1014_v31 }
 0x47c   : >> { %1657 = vpow2.f32 %v1016_v32 }
 0x482   : >> { %v1658_v34 = vpop.eup %1657 }
 0x483   : >> { %v980_v36 = vpop.permute.xlu0 %979  ;;  %v1023_v37 = vmul.f32 %v1658_v34, %v1021_v33 }
 0x484   : >> { %v1001_v38 = vadd.f32 %v1000_v35, %v980_v36 }
 0x485   : >> { %v1025_v39 = vsel %vm849_vm3, %v1023_v37, 0.0 }
 0x486   : >> { %1026 = vadd.xlane.f32.xlu0 %v1025_v39  ;;  %v1007_v40 = vsel %vm2318_vm13, %v1001_v38, -3.4028235e+38 }
 0x487   : >> { %v1011_v41 = vsel %vm849_vm3, %v1007_v40, -inf }
 0x488   : >> { %1012 = vmax.xlane.f32.xlu2 %v1011_v41 }
 0x4f9   : >> { %v1027_v49 = vpop.xlane.xlu0 %1026 }
 0x4fa   : >> { %v1031_v50 = vmax.f32 %v1027_v49, 1e-30 }
 0x4fb   : >> { %v1013_v42 = vpop.xlane.xlu2 %1012 }
 0x4fc   : >> { %v1015_v43 = vsub.f32 %v1007_v40, %v1013_v42 }
 0x4fe   : >> { %v1018_v44 = vmul.f32 1.442695, %v1015_v43 }
 0x500   : >> { %1659 = vpow2.f32 %v1018_v44 }
 0x501   : >> { %1661 = vrcp.f32 %v1031_v50 }
 0x506   : >> { %v1660_v45 = vpop.eup %1659 }
 0x507   : >> { %v1024_v46 = vmul.f32 %v1660_v45, %v1021_v33  ;;  %v1662_v53 = vpop.eup %1661 }
 0x508   : >> { %v1035_v55 = vmul.f32 %v1662_v53, %v1023_v37 }
 0x509   : >> { %v1028_v47 = vsel %vm849_vm3, %v1024_v46, 0.0 }
 0x50a   : >> { %1029 = vadd.xlane.f32.xlu2 %v1028_v47 }
 0x57d   : >> { %v1030_v51 = vpop.xlane.xlu2 %1029 }
 0x57e   : >> { %v1032_v52 = vmax.f32 %v1030_v51, 1e-30 }
 0x580   : >> { %1663 = vrcp.f32 %v1032_v52 }
 0x586   : >> { %v1664_v54 = vpop.eup %1663 }
 0x587   : >> { %v1036_v56 = vmul.f32 %v1664_v54, %v1024_v46 }
 0x589   : >> { %v1037_v57 = vpack.c.bf16 %v1036_v56, %v1035_v55 }
 0x58b   : >> { %1473 = vmatmul.msk.bf16.vlgmr.msra.gmra.mxu2 %vm849_vm3, %v1037_v57 }
 0x60e   : >> { %v1060_v58 = vpop.f32.mrf.mxu2 }
 0x60f   : >> { %v1065_v59 = vpack.c.bf16 %v1060_v58, %v1060_v58 }
 0x611   : >> { %1069 = vst.msk [vmem:[%s1068_s21] sm:$0xf] %vm683_vm2, %v1065_v59 }
 0x615   : > { %812 = sbr.rel (!%p810_p4) target bundleno = 424 (0x1a8), region = 166 }
 0x616   : >> { %v1062_v60 = vpop.f32.mrf.mxu2 }
 0x617   : >> { %v1066_v61 = vpack.c.bf16 %v1062_v60, %v1062_v60 }
 0x619   : >> { %1070 = vst.msk [vmem:[%s1068_s21 + $0x4] sm:$0xf] %vm683_vm2, %v1066_v61 }
 0x620   : > { %v1548_v62 = vld [vmem:[#allocation6 + $0x8] sm:$0xff]  ;;  %v1550_v63 = vld [vmem:[#allocation6 + $0x18] sm:$0xff]  ;;  %v1549_v14 = vld [vmem:[#allocation6 + $0x10] sm:$0xff] }
 0x621   : > { %1092 = vrot.lane.b32.xlu0 %v1548_v62, %s1916_s22  ;;  %1106 = vrot.lane.b32.xlu1 %v1550_v63, %s1917_s30  ;;  %v1547_v10 = vld [vmem:[#allocation6] sm:$0xff] }
 0x629   : > { %1099 = vrot.lane.b32.xlu0 %v1549_v14, %s1918_s20 }
 0x693   : > { %v1093_v9 = vpop.permute.xlu0 %1092  ;;  %v1107_v12 = vpop.permute.xlu1 %1106 }
 0x694   : > { %v1111_v7 = vsel %vm849_vm3, %v1547_v10, %v1093_v9 }
 0x69b   : > { %v1100_v8 = vpop.permute.xlu0 %1099 }
 0x69c   : > { %v1114_v15 = vsel %vm1112_vm15, %v1111_v7, %v1100_v8 }
 0x69d   : > { %v1117_v16 = vsel %vm1115_vm0, %v1114_v15, %v1107_v12 }
 0x69e   : > { %1507 = vmatmul.msk.bf16.vlgmr.msra.gmra.mxu0 %vm539_vm1, %v1117_v16 }
 0x71b   : > { %v1156_v3 = vpop.f32.mrf.mxu0 }
 0x71c   : > { %v1157_v4 = vadd.f32 %v1156_v3, %v1119_v5 }
 0x71e   : > { %1161 = vst [vmem:[%s2288_s24] sm:$0xff] %v1157_v4 }
 0x723   : > { %v1158_v6 = vpop.f32.mrf.mxu0 }
 0x724   : > { %v1159_v17 = vadd.f32 %v1158_v6, %v1119_v5 }
 0x726   : > { %1162 = vst [vmem:[%s2288_s24 + $0x8] sm:$0xff] %v1159_v17 }
 0x727   : > { %1842 = shalt.err (!%p1839_p12)
}
 0x728   : > { %s1919_s18 = smov 128   ;;  %s1920_s24 = smov 8  }
 0x729   : > { %1566 = dma.vmem_to_hbm [thread:$0]  (%p2046_p5), %s1177_s26, 256, %s1179_s25, %s1164_s4, %s1919_s18, %s1919_s18, %s1920_s24  }
 0x72a PF: > { %s2439_s19 = sld [smem:[#allocation22_spill]] }
 0x72b   : > { %s2440_s12 = sld [smem:[#allocation21_spill]] }
 0x730   : > { %p1594_p13 = scmp.ge.s32.totalorder %s2439_s19, 2 }
 0x731   : > { %s1193_s22 = sand.u32 1, %s2440_s12  }
 0x732   : > { %p1586_p8 = pnand %p1594_p13, %p2006_p6  ;;  %s1194_s30 = scalar_lea.sflag [#allocation9], %s1193_s22 }
 0x734   : > { %p1587_p7 = pneg %p1586_p8 }
 0x736   : > { %1876 = dma.done.wait (%p1587_p7), %s1194_s30, 256  }
 0x737   : > { %1878 = vsyncadd (%p1587_p7), %s1194_s30, 4294967040  ;;  %s2442_s12 = sld [smem:[#allocation24_spill]]  ;;  %s2444_s30 = smov %s1885_s10 }
 0x738   : > { %s2443_s20 = sld [smem:[#allocation25_spill]]  ;;  %s2445_s10 = smov %s1889_s11 }
 0x73d   : > { %p26_p9 = scmp.ge.s32.totalorder %s2442_s12, 6  }
 0x73e   : > { %s2446_s11 = smov %s2443_s20 }
 0x73f   :  { %28 = sbr.rel (!%p26_p9) target bundleno = 14 (0xe), region = 177 }
 0x744   :  { %1200 = vsyncpa [#allocation8], 1 }
 0x745   :  { %1202 = vsyncpa [#allocation8 + $0x1], 1 }
 0x746   :  { %1203 = vsyncpa [#allocation11], 1 }
 0x747   :  { %1205 = vsyncpa [#allocation11 + $0x1], 1 }
 0x748   :  { %1206 = vsyncpa [#allocation14], 1 }
 0x749   :  { %1207 = vsyncpa [#allocation9], 1 }
 0x74a   :  { %1209 = vsyncpa [#allocation9 + $0x1], 1 }

// kernel: tpu_custom_call.1
= control target key start
LH: loop header
LB: loop body
LE: loop exit
PB: predicated region body
PF: predicated region fallthrough
CT: control target
= control target key end

     0   :  { %s2385_s0 = inlined_call_operand.hbm [shape: bf16[4,16,64], index: 0, kind: input, shape index: {}]   ;;  %s2386_s1 = inlined_call_operand.hbm [shape: bf16[4,16,64], index: 1, kind: input, shape index: {}]   ;;  %s2387_s2 = inlined_call_operand.hbm [shape: bf16[4,16,64], index: 2, kind: input, shape index: {}]   ;;  %s2388_s3 = inlined_call_operand.vmem [shape: f32[4,1,16], index: 3, kind: input, shape index: {}]   ;;  %s2389_s4 = inlined_call_operand.vmem [shape: bf16[4,32,16], index: 4, kind: input, shape index: {}]   ;;  %s2390_s5 = inlined_call_operand.vmem [shape: bf16[3,64,64], index: 5, kind: input, shape index: {}]   ;;  %s2391_s6 = inlined_call_operand.hbm [shape: bf16[64,128], index: 6, kind: input, shape index: {}]   ;;  %s2392_s7 = inlined_call_operand.vmem [shape: f32[1,128], index: 7, kind: input, shape index: {}]   ;;  %s2393_s8 = inlined_call_operand.hbm [shape: f32[8,64], index: 8, kind: input, shape index: {}]   ;;  %s2394_s9 = inlined_call_operand.hbm [shape: f32[4,16,128], index: 9, kind: output, shape index: {}]  }
   0x1   :  { %2409 = sst [smem:[#allocation27_spill]] %s2386_s1 }
   0x2   :  { %2410 = sst [smem:[#allocation28_spill]] %s2389_s4 }
   0x3   :  { %2411 = sst [smem:[#allocation29_spill]] %s2391_s6 }
   0x4   :  { %2412 = sst [smem:[#allocation30_spill]] %s2393_s8 }
   0x5   :  { %2413 = sst [smem:[#allocation31_spill]] %s2394_s9 }
   0x6   :  { %14 = vsyncpa [#allocation8], 0 }
   0x7   :  { %16 = vsyncpa [#allocation8 + $0x1], 0 }
   0x8   :  { %17 = vsyncpa [#allocation11], 0 }
   0x9   :  { %19 = vsyncpa [#allocation11 + $0x1], 0 }
   0xa   :  { %20 = vsyncpa [#allocation14], 0 }
   0xb   :  { %21 = vsyncpa [#allocation9], 0 }
   0xc   :  { %23 = vsyncpa [#allocation9 + $0x1], 0  ;;  %s1971_s30 = smov 0   ;;  %s1973_s10 = smov 0  }
   0xd   :  { %s1975_s11 = smov 0   ;;  %s1977_s12 = smov 0  }
   0xe LB: > { %2414 = sst [smem:[#allocation21_spill]] %s1881_s30  ;;  %s1992_s13 = sadd.s32 4294967295, %s1893_s12   ;;  %s1893_s12 = sphi %s1977_s12, %s2442_s12   ;;  %s1889_s11 = sphi %s1975_s11, %s2446_s11   ;;  %s1885_s10 = sphi %s1973_s10, %s2445_s10   ;;  %s1881_s30 = sphi %s1971_s30, %s2444_s30  }
   0xf   : > { %2415 = sst [smem:[#allocation22_spill]] %s1893_s12  ;;  %s1340_s14 = sadd.s32 4294967294, %s1893_s12  }
  0x10   : > { %p49_p0 = scmp.ne.s32.totalorder %s1885_s10, %s1881_s30  ;;  %p2408_p1 = scmp.eq.s32.totalorder %s1992_s13, 0 }
  0x11   : > { %p256_p2 = scmp.eq.s32.totalorder %s1992_s13, 3  ;;  %p262_p3 = scmp.eq.s32.totalorder %s1340_s14, 3 }
  0x12   : > { %p2001_p4 = por %p2408_p1, %p49_p0  ;;  %p1341_p5 = scmp.ge.s32.totalorder %s1893_s12, 1 }
  0x13   : > { %p2006_p6 = por %p262_p3, %p49_p0  ;;  %p269_p7 = scmp.lt.s32.totalorder %s1893_s12, 5 }
  0x14   : > { %s2419_s6 = sld [smem:[#allocation29_spill]]  ;;  %s1899_s21 = smov [#allocation13]  }
  0x15   : > { %s2417_s16 = scalar_select %p2006_p6, 1, 0 }
  0x16   : > { %p2014_p8 = pnand %p1341_p5, %p269_p7  ;;  %s288_s22 = sshll.u32 %s1899_s21, 4  ;;  %s289_s22 = int_to_ptr.vmem [resolvable:$true] %s288_s22 }
  0x17   : > { %2418 = sst [smem:[#allocation23_spill]] %s2417_s16  ;;  %s2027_s24 = sadd.s32 1, %s1893_s12  }
  0x18   : > { %p1568_p9 = pneg %p2014_p8  ;;  %2422 = sst [smem:[#allocation24_spill]] %s2027_s24 }
  0x19   : > { %s2395_s25 = smov 64   ;;  %s2397_s26 = smov 4  }
  0x1a   : > { %s286_s19 = sshll.u32 %s2419_s6, 4  ;;  %p2022_p10 = pnand %p1568_p9, %p2408_p1  ;;  %s287_s19 = int_to_ptr.hbm [resolvable:$true] %s286_s19 }
  0x1b   : > { %s33_s27 = ssub.s32 %s1893_s12, %s2027_s24  ;;  %s36_s28 = sadd.s32 1, %s1889_s11 }
  0x1c   : > { %1571 = dma.hbm_to_vmem [thread:$0]  (!%p2022_p10), %s287_s19, 512, %s289_s22, [#allocation14], %s2395_s25, %s2395_s25, %s2397_s26  }
  0x1d   : > { %p34_p11 = scmp.eq.s32.totalorder %s33_s27, 0  ;;  %p43_p12 = scmp.ne.s32.totalorder %s1889_s11, %s1885_s10 }
  0x1e   : > { %p44_p13 = scmp.eq.s32.totalorder %s1893_s12, 0  ;;  %p1591_p0 = scmp.lt.s32.totalorder %s1893_s12, 4 }
  0x1f   : > { %s2042_s29 = scalar_select %p34_p11, %s1889_s11, %s36_s28  }
  0x20   : > { %p45_p3 = por %p44_p13, %p43_p12  ;;  %p2046_p5 = por %p256_p2, %p43_p12 }
  0x21   : > { %2423 = sst [smem:[#allocation25_spill]] %s2042_s29  ;;  %s2401_s17 = sand.u32 1, %s1889_s11  }
  0x22   : > { %s2424_s14 = scalar_select %p2046_p5, 1, 0 }
  0x23   : > { %s2052_s18 = sshll.u32 %s1893_s12, 3  ;;  %s2056_s19 = sshll.u32 %s2401_s17, 3 }
  0x24   : > { %2425 = sst [smem:[#allocation26_spill]] %s2424_s14  ;;  %p2058_p7 = pnand %p1591_p0, %p45_p3 }
  0x25   : > { %s339_s22 = sand.u32 1, %s1893_s12   ;;  %s2427_s1 = sld [smem:[#allocation27_spill]] }
  0x26   : > { %s343_s26 = scalar_lea.vmem [#allocation10], %s2056_s19  ;;  %s2428_s8 = sld [smem:[#allocation30_spill]] }
  0x27   : > { %s351_s6 = sshll.u32 %s343_s26, 4  ;;  %s2071_s30 = scalar_lea.sflag [#allocation11], %s339_s22  ;;  %s352_s6 = int_to_ptr.vmem [resolvable:$true] %s351_s6 }
  0x28   : > { %p1699_p9 = pneg %p2058_p7 }
  0x2b   : > { %s348_s25 = scalar_lea.hbm %s2427_s1, %s2052_s18  ;;  %s1702_s27 = scalar_lea.hbm %s2427_s1, 32 }
  0x2c   : > { %s349_s29 = sshll.u32 %s348_s25, 4  ;;  %s304_s16 = sshll.u32 %s2428_s8, 4  ;;  %s350_s29 = int_to_ptr.hbm [resolvable:$true] %s349_s29  ;;  %s305_s16 = int_to_ptr.hbm [resolvable:$true] %s304_s16 }
  0x2d   : > { %s1695_s9 = sshra.s32 %s350_s29, 4  ;;  %s1696_s9 = int_to_ptr.hbm [resolvable:$true] %s1695_s9 }
  0x2e   : > { %s1697_s14 = scalar_lea.hbm %s1696_s9, 8  ;;  %p1703_p13 = scmp.lt.s32.totalorder %s1696_s9, %s2427_s1 }
  0x2f   : > { %p1698_p2 = scmp.ne.s32.totalorder %s1696_s9, %s1697_s14  ;;  %p1704_p0 = scmp.lt.s32.totalorder %s1702_s27, %s1697_s14 }
  0x31   : > { %p1700_p11 = pnand %p1699_p9, %p1698_p2  ;;  %p1705_p3 = por %p1704_p0, %p1703_p13 }
  0x33   : > { %p1701_p12 = pneg %p1700_p11 }
  0x35   : > { %p1706_p1 = pnand %p1705_p3, %p1701_p12 }
  0x37   : > { %1709 = shalt.err (!%p1706_p1)
}
  0x38   : > { %s2429_s24 = smov 4   ;;  %s2430_s17 = smov 64  }
  0x39   : > { %1581 = dma.hbm_to_vmem [thread:$0]  (!%p2058_p7), %s350_s29, 128, %s352_s6, %s2071_s30, %s2430_s17, %s2430_s17, %s2429_s24  }
  0x3a   : > { %s1902_s22 = smov [#allocation15]   ;;  %s326_s26 = scalar_lea.hbm %s2385_s0, %s2052_s18 }
  0x3b   : > { %s306_s12 = sshll.u32 %s1902_s22, 4  ;;  %s321_s25 = scalar_lea.vmem [#allocation7], %s2056_s19  ;;  %s307_s12 = int_to_ptr.vmem [resolvable:$true] %s306_s12 }
  0x3c   : > { %1574 = dma.hbm_to_vmem [thread:$0]  (!%p2022_p10), %s305_s16, 128, %s307_s12, [#allocation14]  }
  0x3d   : > { %s329_s27 = sshll.u32 %s321_s25, 4  ;;  %s327_s28 = sshll.u32 %s326_s26, 4  ;;  %s330_s27 = int_to_ptr.vmem [resolvable:$true] %s329_s27  ;;  %s328_s28 = int_to_ptr.hbm [resolvable:$true] %s327_s28 }
  0x3e   : > { %s2431_s1 = sand.u32 1, %s1889_s11   ;;  %s1755_s4 = sshra.s32 %s328_s28, 4  ;;  %s1756_s4 = int_to_ptr.hbm [resolvable:$true] %s1755_s4 }
  0x3f   : > { %s318_s8 = scalar_lea.sflag [#allocation8], %s2431_s1  ;;  %s1757_s6 = scalar_lea.hbm %s1756_s4, 8 }
  0x40   : > { %p1758_p1 = scmp.ne.s32.totalorder %s1756_s4, %s1757_s6  ;;  %s1762_s29 = scalar_lea.hbm %s2385_s0, 32 }
  0x41   : > { %p1763_p10 = scmp.lt.s32.totalorder %s1756_s4, %s2385_s0  ;;  %p1764_p12 = scmp.lt.s32.totalorder %s1762_s29, %s1757_s6 }
  0x42   : > { %p1760_p2 = pnand %p1758_p1, %p1699_p9 }
  0x43   : > { %p1765_p13 = por %p1764_p12, %p1763_p10 }
  0x44   : > { %p1761_p11 = pneg %p1760_p2 }
  0x46   : > { %p1766_p0 = pnand %p1765_p13, %p1761_p11 }
  0x48   : > { %1769 = shalt.err (!%p1766_p0)
}
  0x49   : > { %1578 = dma.hbm_to_vmem [thread:$0]  (!%p2058_p7), %s328_s28, 128, %s330_s27, %s318_s8, %s2430_s17, %s2430_s17, %s2429_s24  }
  0x4a   : > { %s370_s14 = scalar_lea.hbm %s2387_s2, %s2052_s18  ;;  %s365_s26 = scalar_lea.vmem [#allocation12], %s2056_s19 }
  0x4b   : > { %s373_s25 = sshll.u32 %s365_s26, 4  ;;  %s371_s4 = sshll.u32 %s370_s14, 4  ;;  %s374_s25 = int_to_ptr.vmem [resolvable:$true] %s373_s25  ;;  %s372_s4 = int_to_ptr.hbm [resolvable:$true] %s371_s4 }
  0x4c   : > { %s1785_s6 = sshra.s32 %s372_s4, 4  ;;  %s1792_s8 = scalar_lea.hbm %s2387_s2, 32  ;;  %s1786_s6 = int_to_ptr.hbm [resolvable:$true] %s1785_s6 }
  0x4d   : > { %s1787_s16 = scalar_lea.hbm %s1786_s6, 8  ;;  %p1793_p11 = scmp.lt.s32.totalorder %s1786_s6, %s2387_s2 }
  0x4e   : > { %p1788_p3 = scmp.ne.s32.totalorder %s1786_s6, %s1787_s16  ;;  %p1794_p10 = scmp.lt.s32.totalorder %s1792_s8, %s1787_s16 }
  0x50   : > { %p1790_p1 = pnand %p1788_p3, %p1699_p9  ;;  %p1795_p12 = por %p1794_p10, %p1793_p11 }
  0x52   : > { %p1791_p2 = pneg %p1790_p1 }
  0x54   : > { %p1796_p13 = pnand %p1795_p12, %p1791_p2 }
  0x56   : > { %1799 = shalt.err (!%p1796_p13)
}
  0x57   : > { %1584 = dma.hbm_to_vmem [thread:$0]  (!%p2058_p7), %s372_s4, 128, %s374_s25, %s2071_s30, %s2430_s17, %s2430_s17, %s2429_s24  }
  0x58   : > { %391 = sbr.rel (%p2014_p8) target bundleno = 1834 (0x72a), region = 56  ;;  %s2136_s18 = sand.u32 (!%p2014_p8), 1, %s1885_s10  }
  0x59   : > { %s2139_s19 = sshll.u32 (!%p2014_p8), %s2136_s18, 3  ;;  %s394_s22 = scalar_lea.sflag (!%p2014_p8), [#allocation8], %s2136_s18 }
  0x5a   : > { %s397_s12 = scalar_lea.vmem (!%p2014_p8), [#allocation7], %s2139_s19 }
  0x5d   : > { %1864 = dma.done.wait (%p2001_p4), %s394_s22, 128  }
  0x5e   : > { %1866 = vsyncadd (%p2001_p4), %s394_s22, 4294967168  ;;  %s403_s30 = sand.u32 1, %s1992_s13   ;;  %s407_s21 = scalar_lea.vmem [#allocation10], %s2139_s19 }
  0x5f   : > { %s404_s20 = scalar_lea.sflag [#allocation11], %s403_s30 }
  0x60   : > { %1868 = dma.done.wait (%p2001_p4), %s404_s20, 256  }
  0x61   : > { %1870 = vsyncadd (%p2001_p4), %s404_s20, 4294967040  ;;  %s417_s24 = scalar_lea.vmem [#allocation12], %s2139_s19  ;;  %p2432_p8 = scmp.eq.s32.totalorder %s1992_s13, 0 }
  0x63   : > { %1872 = dma.done.wait (%p2432_p8), [#allocation14], 640   ;;  %p2433_p7 = pmov %p2432_p8 }
  0x64   : > { %p476_p9 = scmp.lt.s32.totalorder %s1992_s13, 3  ;;  %s1360_s17 = sshll.u32 %s2136_s18, 4  ;;  %v490_v0 = vlaneseq  ;;  %v2169_v3 = vld [vmem:[#allocation13] sm:$0xf]  ;;  %v2171_v4 = vld [vmem:[#allocation13] sm:$0xf0] }
  0x65   : > { %1874 = vsyncadd (%p2433_p7), [#allocation14], 4294966656  ;;  %v2173_v5 = vld [vmem:[#allocation13 + $0x8] sm:$0xf]  ;;  %v2175_v6 = vld [vmem:[#allocation13 + $0x8] sm:$0xf0] }
  0x66   : > { %v2160_v1 = vshrl.u32 %v490_v0, 7  ;;  %s477_s1 = scalar_select %p476_p9, %s1992_s13, 3  ;;  %v2177_v7 = vld [vmem:[#allocation13 + $0x10] sm:$0xf]  ;;  %v2179_v8 = vld [vmem:[#allocation13 + $0x10] sm:$0xf0] }
  0x67   : > { %v2181_v9 = vld [vmem:[#allocation13 + $0x18] sm:$0xf]  ;;  %v2183_v10 = vld [vmem:[#allocation13 + $0x18] sm:$0xf0]  ;;  %v2188_v11 = vld [vmem:[%s2392_s7] sm:$0x1] }
  0x68   : > { %v2164_v2 = vadd.s32 8, %v2160_v1  ;;  %s478_s14 = scalar_lea.vmem %s2388_s3, %s477_s1  ;;  %v1526_v13 = vld [vmem:[%s2390_s5 + $0x18] sm:$0xff]  ;;  %v1525_v15 = vld [vmem:[%s2390_s5 + $0x10] sm:$0xff]  ;;  %v1524_v19 = vld [vmem:[%s2390_s5 + $0x8] sm:$0xff]  ;;  %vm539_vm1 = vcmask 523264   ;;  %vm683_vm2 = vcmask 125952  }
  0x69   : > { %v2190_v12 = vld [vmem:[%s478_s14] sm:$0x1]  ;;  %v1530_v14 = vld [vmem:[%s2390_s5 + $0x38] sm:$0xff]  ;;  %547 = vmatpush.bf16.msra.mxu0 %v1526_v13  ;;  %v1529_v16 = vld [vmem:[%s2390_s5 + $0x30] sm:$0xff]  ;;  %s1903_s19 = smov 96   ;;  %s2290_s28 = smov 0  }
  0x6a   : > { %vm500_vm0 = vcmp.gt.f32.partialorder %v2190_v12, 0.0  ;;  %603 = vmatpush.bf16.msra.mxu1 %v1530_v14  ;;  %v1534_v17 = vld [vmem:[%s2390_s5 + $0x58] sm:$0xff]  ;;  %v1533_v18 = vld [vmem:[%s2390_s5 + $0x50] sm:$0xff]  ;;  %v1528_v20 = vld [vmem:[%s2390_s5 + $0x28] sm:$0xff] }
  0x6b   : > { %659 = vmatpush.bf16.msra.mxu2 %v1534_v17  ;;  %v1532_v21 = vld [vmem:[%s2390_s5 + $0x48] sm:$0xff]  ;;  %v1523_v22 = vld [vmem:[%s2390_s5] sm:$0xff]  ;;  %v1521_v25 = vld [vmem:[%s407_s21] sm:$0xff]  ;;  %s1905_s21 = smov 80  }
  0x6c   : > { %v1527_v23 = vld [vmem:[%s2390_s5 + $0x20] sm:$0xff]  ;;  %v480_v28 = vld [vmem:[#allocation15] sm:$0xff] }
  0x6d   : > { %548 = vmatpush.bf16.msra.mxu0 %v1525_v15  ;;  %v1520_v24 = vld [vmem:[%s397_s12] sm:$0xff]  ;;  %v509_v29 = vperm.slane %v480_v28, 0  ;;  %v566_v30 = vperm.slane %v480_v28, 1  ;;  %v669_v31 = vperm.slane %v480_v28, 3  ;;  %v674_v32 = vperm.slane %v480_v28, 4  ;;  %s1904_s12 = smov 112  }
  0x6e   : > { %604 = vmatpush.bf16.msra.mxu1 %v1529_v16  ;;  %v1531_v26 = vld [vmem:[%s2390_s5 + $0x40] sm:$0xff]  ;;  %v622_v42 = vperm.slane %v480_v28, 2 }
  0x6f   : > { %660 = vmatpush.bf16.msra.mxu2 %v1533_v18  ;;  %v1522_v27 = vld [vmem:[%s417_s24] sm:$0xff]  ;;  %s2288_s24 = scalar_lea.vmem [#allocation16], %s1360_s17 }
  0x71   : > { %549 = vmatpush.bf16.msra.mxu0 %v1524_v19 }
  0x72   : > { %605 = vmatpush.bf16.msra.mxu1 %v1528_v20 }
  0x73   : > { %661 = vmatpush.bf16.msra.mxu2 %v1532_v21 }
  0x75   : > { %550 = vmatpush.bf16.msra.mxu0 %v1523_v22 }
  0x76   : > { %606 = vmatpush.bf16.msra.mxu1 %v1527_v23 }
  0x77   : > { %662 = vmatpush.bf16.msra.mxu2 %v1531_v26 }
  0x78   : > { %1381 = vmatmul.msk.bf16.vlgmr.msra.gmra.mxu0 %vm539_vm1, %v1520_v24 }
  0x79   : > { %1410 = vmatmul.msk.bf16.vlgmr.msra.gmra.mxu1 %vm539_vm1, %v1521_v25 }
  0x7a   : > { %1439 = vmatmul.msk.bf16.vlgmr.msra.gmra.mxu2 %vm539_vm1, %v1522_v27 }
  0xf5   : > { %v552_v33 = vpop.f32.mrf.mxu0 }
  0xf6   : > { %v608_v34 = vpop.f32.mrf.mxu1  ;;  %v553_v35 = vadd.f32 %v552_v33, %v509_v29 }
  0xf7   : > { %v609_v36 = vadd.f32 %v608_v34, %v566_v30 }
  0xf8   : > { %v670_v37 = vadd.f32 %v669_v31, %v553_v35  ;;  %v675_v38 = vadd.f32 %v674_v32, %v553_v35 }
  0xf9   : > { %v679_v39 = vpack.c.bf16 %v609_v36, %v609_v36 }
  0xfa   : > { %v672_v40 = vpack.c.bf16 %v670_v37, %v670_v37  ;;  %v677_v41 = vpack.c.bf16 %v675_v38, %v675_v38 }
  0xfb   : > { %688 = vst.msk [vmem:[#allocation4] sm:$0xf] %vm683_vm2, %v679_v39  ;;  %754 = vrot.lane.b32.xlu0 %v679_v39, %s1903_s19  ;;  %716 = vrot.lane.b32.xlu2 %v679_v39, %s1904_s12 }
  0xfc   : > { %684 = vst.msk [vmem:[#allocation2] sm:$0xf] %vm683_vm2, %v672_v40  ;;  %705 = vrot.lane.b32.xlu1 %v677_v41, %s1904_s12 }
  0xfd   : > { %686 = vst.msk [vmem:[#allocation3] sm:$0xf] %vm683_vm2, %v677_v41  ;;  %v554_v43 = vpop.f32.mrf.mxu0  ;;  %v664_v47 = vpop.f32.mrf.mxu2 }
  0xfe   : > { %v610_v44 = vpop.f32.mrf.mxu1  ;;  %v555_v45 = vadd.f32 %v554_v43, %v509_v29  ;;  %v665_v51 = vadd.f32 %v664_v47, %v622_v42 }
  0xff   : > { %v611_v46 = vadd.f32 %v610_v44, %v566_v30 }
 0x100   : > { %v671_v48 = vadd.f32 %v669_v31, %v555_v45  ;;  %v676_v49 = vadd.f32 %v674_v32, %v555_v45  ;;  %v681_v54 = vpack.c.bf16 %v665_v51, %v665_v51 }
 0x101   : > { %v680_v50 = vpack.c.bf16 %v611_v46, %v611_v46 }
 0x102   : > { %v673_v52 = vpack.c.bf16 %v671_v48, %v671_v48  ;;  %v678_v53 = vpack.c.bf16 %v676_v49, %v676_v49  ;;  %690 = vst.msk [vmem:[#allocation5] sm:$0xf] %vm683_vm2, %v681_v54 }
 0x103   : > { %689 = vst.msk [vmem:[#allocation4 + $0x4] sm:$0xf] %vm683_vm2, %v680_v50  ;;  %790 = vrot.lane.b32.xlu2 %v679_v39, %s1905_s21  ;;  %694 = vrot.lane.b32.xlu0 %v672_v40, %s1904_s12 }
 0x104   : > { %685 = vst.msk [vmem:[#allocation2 + $0x4] sm:$0xf] %vm683_vm2, %v673_v52  ;;  %745 = vrot.lane.b32.xlu1 %v677_v41, %s1903_s19 }
 0x105   : > { %687 = vst.msk [vmem:[#allocation3 + $0x4] sm:$0xf] %vm683_vm2, %v678_v53  ;;  %v666_v55 = vpop.f32.mrf.mxu2 }
 0x106   : > { %v667_v56 = vadd.f32 %v666_v55, %v622_v42 }
 0x108   : > { %v682_v57 = vpack.c.bf16 %v667_v56, %v667_v56 }
 0x10a   : > { %691 = vst.msk [vmem:[#allocation5 + $0x4] sm:$0xf] %vm683_vm2, %v682_v57 }
 0x10b   : > { %736 = vrot.lane.b32.xlu2 %v672_v40, %s1903_s19  ;;  %781 = vrot.lane.b32.xlu0 %v677_v41, %s1905_s21 }
 0x10c   : > { %772 = vrot.lane.b32.xlu1 %v672_v40, %s1905_s21 }
 0x113   : > { %763 = vrot.lane.b32.xlu2 %v681_v54, %s1903_s19  ;;  %727 = vrot.lane.b32.xlu0 %v681_v54, %s1904_s12 }
 0x114   : > { %756 = vrot.lane.b32.xlu1 %v680_v50, %s1903_s19 }
 0x11b   : > { %718 = vrot.lane.b32.xlu2 %v680_v50, %s1904_s12  ;;  %696 = vrot.lane.b32.xlu0 %v673_v52, %s1904_s12 }
 0x11c   : > { %707 = vrot.lane.b32.xlu1 %v678_v53, %s1904_s12 }
 0x123   : > { %747 = vrot.lane.b32.xlu2 %v678_v53, %s1903_s19  ;;  %738 = vrot.lane.b32.xlu0 %v673_v52, %s1903_s19 }
 0x124   : > { %783 = vrot.lane.b32.xlu1 %v678_v53, %s1905_s21 }
 0x12b   : > { %774 = vrot.lane.b32.xlu2 %v673_v52, %s1905_s21  ;;  %765 = vrot.lane.b32.xlu0 %v682_v57, %s1903_s19 }
 0x12c   : > { %729 = vrot.lane.b32.xlu1 %v682_v57, %s1904_s12 }
 0x133   : > { %801 = vrot.lane.b32.xlu2 %v682_v57, %s1905_s21  ;;  %792 = vrot.lane.b32.xlu0 %v680_v50, %s1905_s21 }
 0x134   : > { %799 = vrot.lane.b32.xlu1 %v681_v54, %s1905_s21 }
 0x155   : > { %v717_v58 = vpop.permute.xlu2 %716 }
 0x156   : > { %723 = vst.msk [vmem:[#allocation4 + $0x8] sm:$0xf] %vm683_vm2, %v717_v58 }
 0x15d   : > { %v791_v59 = vpop.permute.xlu2 %790 }
 0x15e   : > { %797 = vst.msk [vmem:[#allocation4 + $0x18] sm:$0xf] %vm683_vm2, %v791_v59 }
 0x165   : > { %v737_v60 = vpop.permute.xlu2 %736 }
 0x166   : > { %743 = vst.msk [vmem:[#allocation2 + $0x10] sm:$0xf] %vm683_vm2, %v737_v60 }
 0x16d   : > { %v755_v61 = vpop.permute.xlu0 %754  ;;  %v764_v62 = vpop.permute.xlu2 %763 }
 0x16e   : > { %761 = vst.msk [vmem:[#allocation4 + $0x10] sm:$0xf] %vm683_vm2, %v755_v61  ;;  %v706_v63 = vpop.permute.xlu1 %705 }
 0x16f   : > { %770 = vst.msk [vmem:[#allocation5 + $0x10] sm:$0xf] %vm683_vm2, %v764_v62 }
 0x170   : > { %712 = vst.msk [vmem:[#allocation3 + $0x8] sm:$0xf] %vm683_vm2, %v706_v63 }
 0x175   : > { %v719_v0 = vpop.permute.xlu2 %718  ;;  %v695_v13 = vpop.permute.xlu0 %694 }
 0x176   : > { %724 = vst.msk [vmem:[#allocation4 + $0xc] sm:$0xf] %vm683_vm2, %v719_v0  ;;  %v746_v14 = vpop.permute.xlu1 %745 }
 0x177   : > { %701 = vst.msk [vmem:[#allocation2 + $0x8] sm:$0xf] %vm683_vm2, %v695_v13 }
 0x178   : > { %752 = vst.msk [vmem:[#allocation3 + $0x10] sm:$0xf] %vm683_vm2, %v746_v14 }
 0x17d   : > { %v748_v15 = vpop.permute.xlu2 %747  ;;  %v782_v16 = vpop.permute.xlu0 %781 }
 0x17e   : > { %753 = vst.msk [vmem:[#allocation3 + $0x14] sm:$0xf] %vm683_vm2, %v748_v15  ;;  %v773_v17 = vpop.permute.xlu1 %772 }
 0x17f   : > { %788 = vst.msk [vmem:[#allocation3 + $0x18] sm:$0xf] %vm683_vm2, %v782_v16 }
 0x180   : > { %779 = vst.msk [vmem:[#allocation2 + $0x18] sm:$0xf] %vm683_vm2, %v773_v17 }
 0x185   : > { %v775_v18 = vpop.permute.xlu2 %774  ;;  %v728_v19 = vpop.permute.xlu0 %727 }
 0x186   : > { %780 = vst.msk [vmem:[#allocation2 + $0x1c] sm:$0xf] %vm683_vm2, %v775_v18  ;;  %v757_v20 = vpop.permute.xlu1 %756 }
 0x187   : > { %734 = vst.msk [vmem:[#allocation5 + $0x8] sm:$0xf] %vm683_vm2, %v728_v19 }
 0x188   : > { %762 = vst.msk [vmem:[#allocation4 + $0x14] sm:$0xf] %vm683_vm2, %v757_v20 }
 0x18d   : > { %v802_v21 = vpop.permute.xlu2 %801  ;;  %v697_v22 = vpop.permute.xlu0 %696 }
 0x18e   : > { %807 = vst.msk [vmem:[#allocation5 + $0x1c] sm:$0xf] %vm683_vm2, %v802_v21  ;;  %v708_v23 = vpop.permute.xlu1 %707 }
 0x18f   : > { %702 = vst.msk [vmem:[#allocation2 + $0xc] sm:$0xf] %vm683_vm2, %v697_v22 }
 0x190   : > { %713 = vst.msk [vmem:[#allocation3 + $0xc] sm:$0xf] %vm683_vm2, %v708_v23 }
 0x195   : > { %v739_v24 = vpop.permute.xlu0 %738 }
 0x196   : > { %744 = vst.msk [vmem:[#allocation2 + $0x14] sm:$0xf] %vm683_vm2, %v739_v24  ;;  %v784_v25 = vpop.permute.xlu1 %783 }
 0x197   : > { %789 = vst.msk [vmem:[#allocation3 + $0x1c] sm:$0xf] %vm683_vm2, %v784_v25 }
 0x19d   : > { %v766_v26 = vpop.permute.xlu0 %765 }
 0x19e   : > { %771 = vst.msk [vmem:[#allocation5 + $0x14] sm:$0xf] %vm683_vm2, %v766_v26  ;;  %v730_v27 = vpop.permute.xlu1 %729 }
 0x19f   : > { %735 = vst.msk [vmem:[#allocation5 + $0xc] sm:$0xf] %vm683_vm2, %v730_v27 }
 0x1a5   : > { %v793_v28 = vpop.permute.xlu0 %792 }
 0x1a6   : > { %798 = vst.msk [vmem:[#allocation4 + $0x1c] sm:$0xf] %vm683_vm2, %v793_v28  ;;  %v800_v29 = vpop.permute.xlu1 %799 }
 0x1a7   : > { %806 = vst.msk [vmem:[#allocation5 + $0x18] sm:$0xf] %vm683_vm2, %v800_v29 }
 0x1a8 LB: >> { %s1541_s22 = sshll.u32 %s1897_s28, 4  ;;  %s2434_s1 = sld [smem:[#allocation28_spill]]  ;;  %vm849_vm3 = vcmask 130048   ;;  %v873_v38 = vand.u32 1, %v2160_v1  ;;  %vm891_vm4 = vcmask 7168   ;;  %v874_v43 = vand.u32 1, %v2164_v2  ;;  %s1897_s28 = sphi %s2290_s28, %s813_s28  }
 0x1a9   : >> { %s2301_s17 = sshll.u32 %s1897_s28, 3  ;;  %s1906_s14 = smov 97   ;;  %v897_v50 = vand.u32 2, %v2164_v2  ;;  %vm914_vm7 = vcmask 15360   ;;  %v896_v54 = vand.u32 2, %v2160_v1  ;;  %v920_v60 = vand.u32 4, %v2164_v2 }
 0x1aa   : >> { %s824_s9 = scalar_lea.vmem [#allocation3], %s2301_s17  ;;  %s1907_s26 = smov 1   ;;  %vm875_vm5 = vcmp.ne.s32.totalorder %v873_v38, 0  ;;  %vm876_vm6 = vcmp.ne.s32.totalorder %v874_v43, 0  ;;  %vm937_vm10 = vcmask 31744   ;;  %v919_v13 = vand.u32 4, %v2160_v1 }
 0x1ab   : >> { %v1540_v34 = vld [vmem:[%s824_s9] sm:$0xff]  ;;  %s1908_s25 = smov 2   ;;  %s1909_s4 = smov 98   ;;  %vm899_vm8 = vcmp.ne.s32.totalorder %v897_v50, 0  ;;  %vm898_vm9 = vcmp.ne.s32.totalorder %v896_v54, 0  ;;  %vm922_vm11 = vcmp.ne.s32.totalorder %v920_v60, 0 }
 0x1ac   : >> { %s820_s6 = scalar_lea.vmem [#allocation4], %s2301_s17  ;;  %s1910_s16 = smov 4   ;;  %vm921_vm12 = vcmp.ne.s32.totalorder %v919_v13, 0  ;;  %v1915_v18 = vmov 0   ;;  %vm960_vm14 = vcmask 64512  }
 0x1ad   : >> { %v1538_v47 = vld [vmem:[%s820_s6] sm:$0xff]  ;;  %s1911_s23 = smov 100   ;;  %s816_s29 = scalar_lea.vmem [#allocation2], %s2301_s17  ;;  %v1003_v19 = vsel %vm500_vm0, 1, %v1915_v18 }
 0x1ae   : >> { %s829_s15 = scalar_lea.vmem %s2434_s1, %s1541_s22  ;;  %v987_v48 = vsel %vm849_vm3, %v1538_v47, 0  ;;  %v1536_v59 = vld [vmem:[%s816_s29] sm:$0xff]  ;;  %s1912_s8 = smov 8   ;;  %v1004_v20 = vperm.slane %v1003_v19, 0 }
 0x1af   : >> { %v1543_v30 = vld [vmem:[%s829_s15 + $0x8] sm:$0xff]  ;;  %v1542_v32 = vld [vmem:[%s829_s15] sm:$0xff]  ;;  %996 = vmatpush.bf16.xpose.msra.mxu1 %v987_v48  ;;  %s1913_s27 = smov 104   ;;  %s1914_s19 = smov 113  }
 0x1b0   : >> { %v857_v31 = vsel %vm849_vm3, %v1543_v30, 0  ;;  %v854_v33 = vsel %vm849_vm3, %v1542_v32, 0  ;;  %vm2318_vm13 = vcmp.eq.s32.totalorder %v1004_v20, 1  ;;  %s1039_s12 = scalar_lea.vmem [#allocation5], %s2301_s17  ;;  %s1068_s21 = scalar_lea.vmem [#allocation6], %s2301_s17 }
 0x1b1   : >> { %865 = vmatpush.bf16.xpose.msra.mxu0 %v857_v31  ;;  %v1545_v48 = vld [vmem:[%s1039_s12] sm:$0xff]  ;;  %s813_s28 = sadd.s32 1, %s1897_s28  }
 0x1b2   : >> { %1058 = vmatpush.bf16.msra.mxu2 %v1545_v48  ;;  %p810_p4 = scmp.ge.s32.totalorder %s813_s28, 4  }
 0x1b3   : > { %s1916_s22 = smov (%p810_p4), 16   ;;  %s1917_s30 = smov (%p810_p4), 48   ;;  %v1502_v13 = vor.u32 (%p810_p4), %v2179_v8, %v2177_v7  ;;  %v1498_v1 = vor.u32 (%p810_p4), %v2175_v6, %v2173_v5  ;;  %v1494_v2 = vor.u32 (%p810_p4), %v2171_v4, %v2169_v3  ;;  %vm1112_vm15 = vcmask (%p810_p4), 261120  }
 0x1b4   : > { %s1918_s20 = smov (%p810_p4), 32   ;;  %vm1115_vm0 = vcmask (%p810_p4), 392192   ;;  %v1119_v5 = vperm.slane (%p810_p4), %v2188_v11, 0  ;;  %s1551_s28 = sshll.u32 (%p810_p4), %s1992_s13, 4 }
 0x1b5   : > { %s2438_s9 = sld [smem:[#allocation31_spill]] (%p810_p4) }
 0x1b6   : >> { %1467 = vmatmul.msk.bf16.vlgmr.msra.gmra.mxu1 %vm849_vm3, %v1536_v59 }
 0x1b9   : >> { %866 = vmatpush.bf16.xpose.msra.mxu0 %v854_v33  ;;  %v1021_v33 = vperm.slane %v2190_v12, 0 }
 0x1bb   : > { %s1835_s29 = scalar_lea.hbm (%p810_p4), %s2438_s9, 64 }
 0x1c0   : >> { %1458 = vmatmul.msk.bf16.vlgmr.msra.gmra.mxu0 %vm849_vm3, %v1540_v34 }
 0x233   : >> { %v998_v21 = vpop.f32.mrf.mxu1 }
 0x23d   : >> { %v868_v35 = vpop.f32.mrf.mxu0 }
 0x23e   : >> { %879 = vrot.lane.b32.xlu1 %v868_v35, %s1906_s14 }
 0x245   : >> { %v870_v36 = vpop.f32.mrf.mxu0 }
 0x246   : >> { %885 = vrot.lane.b32.xlu1 %v868_v35, %s1907_s26  ;;  %881 = vrot.lane.b32.xlu0 %v870_v36, %s1906_s14  ;;  %s1175_s14 = scalar_lea.hbm (%p810_p4), %s2438_s9, %s1551_s28 }
 0x24e   : >> { %887 = vrot.lane.b32.xlu0 %v870_v36, %s1907_s26  ;;  %s1176_s26 = sshll.u32 (%p810_p4), %s2288_s24, 4  ;;  %s1177_s26 = int_to_ptr.vmem [resolvable:$true] %s1176_s26 }
 0x2b0   : >> { %v880_v37 = vpop.permute.xlu1 %879 }
 0x2b8   : >> { %v886_v39 = vpop.permute.xlu1 %885  ;;  %v882_v40 = vpop.permute.xlu0 %881 }
 0x2b9   : >> { %v892_v41 = vsel %vm891_vm4, %v880_v37, %v886_v39 }
 0x2ba   : >> { %v894_v42 = vsel %vm875_vm5, %v892_v41, %v868_v35  ;;  %v1000_v35 = vpop.f32.mrf.mxu1 }
 0x2bb   : >> { %908 = vrot.lane.b32.xlu1 %v894_v42, %s1908_s25  ;;  %902 = vrot.lane.b32.xlu0 %v894_v42, %s1909_s4 }
 0x2c0   : >> { %v888_v44 = vpop.permute.xlu0 %887 }
 0x2c1   : >> { %v893_v45 = vsel %vm891_vm4, %v882_v40, %v888_v44 }
 0x2c2   : >> { %v895_v46 = vsel %vm876_vm6, %v893_v45, %v870_v36 }
 0x2c3   : >> { %904 = vrot.lane.b32.xlu2 %v895_v46, %s1909_s4  ;;  %s1164_s4 = scalar_lea.sflag (%p810_p4), [#allocation9], %s2136_s18 }
 0x2cb   : >> { %910 = vrot.lane.b32.xlu2 %v895_v46, %s1908_s25  ;;  %s1178_s25 = sshll.u32 (%p810_p4), %s1175_s14, 4  ;;  %s1179_s25 = int_to_ptr.hbm [resolvable:$true] %s1178_s25 }
 0x2cc   : > { %s1829_s6 = sshra.s32 (%p810_p4), %s1179_s25, 4  ;;  %s1830_s6 = int_to_ptr.hbm [resolvable:$true] %s1829_s6 }
 0x2cd   : > { %p1836_p2 = scmp.lt.s32.totalorder (%p810_p4), %s1830_s6, %s2438_s9 }
 0x31d   : >> { %v905_v49 = vpop.permute.xlu2 %904 }
 0x325   : >> { %v911_v51 = vpop.permute.xlu2 %910 }
 0x326   : >> { %v916_v52 = vsel %vm914_vm7, %v905_v49, %v911_v51 }
 0x327   : >> { %v918_v53 = vsel %vm899_vm8, %v916_v52, %v895_v46 }
 0x328   : >> { %933 = vrot.lane.b32.xlu0 %v918_v53, %s1910_s16  ;;  %927 = vrot.lane.b32.xlu2 %v918_v53, %s1911_s23 }
 0x32d   : >> { %v909_v55 = vpop.permute.xlu1 %908  ;;  %v903_v56 = vpop.permute.xlu0 %902 }
 0x32e   : >> { %v915_v57 = vsel %vm914_vm7, %v903_v56, %v909_v55 }
 0x32f   : >> { %v917_v58 = vsel %vm898_vm9, %v915_v57, %v894_v42 }
 0x330   : >> { %931 = vrot.lane.b32.xlu2 %v917_v58, %s1910_s16  ;;  %925 = vrot.lane.b32.xlu1 %v917_v58, %s1911_s23  ;;  %s1831_s16 = scalar_lea.hbm (%p810_p4), %s1830_s6, 16 }
 0x331   : > { %p1832_p0 = scmp.ne.s32.totalorder (%p810_p4), %s1830_s6, %s1831_s16  ;;  %p1837_p11 = scmp.lt.s32.totalorder (%p810_p4), %s1835_s29, %s1831_s16 }
 0x333   : > { %p1833_p3 = pnand (%p810_p4), %p1832_p0, %p2046_p5  ;;  %p1838_p10 = por (%p810_p4), %p1837_p11, %p1836_p2 }
 0x335   : > { %p1834_p1 = pneg (%p810_p4), %p1833_p3 }
 0x337   : > { %p1839_p12 = pnand (%p810_p4), %p1838_p10, %p1834_p1 }
 0x382   : >> { %v928_v61 = vpop.permute.xlu2 %927 }
 0x38a   : >> { %v932_v14 = vpop.permute.xlu2 %931 }
 0x39a   : >> { %v934_v62 = vpop.permute.xlu0 %933 }
 0x39b   : >> { %v939_v63 = vsel %vm937_vm10, %v928_v61, %v934_v62 }
 0x39c   : >> { %v941_v0 = vsel %vm922_vm11, %v939_v63, %v918_v53 }
 0x39d   : >> { %956 = vrot.lane.b32.xlu1 %v941_v0, %s1912_s8  ;;  %950 = vrot.lane.b32.xlu0 %v941_v0, %s1913_s27  ;;  %v1506_v0 = vor.u32 (%p810_p4), %v2183_v10, %v2181_v9 }
 0x39f   : > { %1151 = vmatpush.bf16.msra.mxu0 (%p810_p4), %v1506_v0 }
 0x3a2   : >> { %v926_v15 = vpop.permute.xlu1 %925 }
 0x3a3   : >> { %v938_v16 = vsel %vm937_vm10, %v926_v15, %v932_v14  ;;  %1152 = vmatpush.bf16.msra.mxu0 (%p810_p4), %v1502_v13 }
 0x3a4   : >> { %v940_v17 = vsel %vm921_vm12, %v938_v16, %v917_v58 }
 0x3a5   : >> { %977 = vrot.lane.b32.xlu2 %v940_v17, %s1914_s19 }
 0x3a7   : > { %1153 = vmatpush.bf16.msra.mxu0 (%p810_p4), %v1498_v1 }
 0x3ab   : > { %1154 = vmatpush.bf16.msra.mxu0 (%p810_p4), %v1494_v2 }
 0x3ff   : >> { %v978_v22 = vpop.permute.xlu2 %977 }
 0x400   : >> { %v999_v24 = vadd.f32 %v998_v21, %v978_v22 }
 0x402   : >> { %v1006_v25 = vsel %vm2318_vm13, %v999_v24, -3.4028235e+38 }
 0x403   : >> { %v1008_v26 = vsel %vm849_vm3, %v1006_v25, -inf }
 0x404   : >> { %1009 = vmax.xlane.f32.xlu1 %v1008_v26 }
 0x40f   : >> { %v957_v27 = vpop.permute.xlu1 %956  ;;  %v951_v28 = vpop.permute.xlu0 %950 }
 0x410   : >> { %v962_v29 = vsel %vm960_vm14, %v951_v28, %v957_v27 }
 0x411   : >> { %979 = vrot.lane.b32.xlu0 %v962_v29, %s1914_s19 }
 0x477   : >> { %v1010_v30 = vpop.xlane.xlu1 %1009 }
 0x478   : >> { %v1014_v31 = vsub.f32 %v1006_v25, %v1010_v30 }
 0x47a   : >> { %v1016_v32 = vmul.f32 1.442695, %v1014_v31 }
 0x47c   : >> { %1657 = vpow2.f32 %v1016_v32 }
 0x482   : >> { %v1658_v34 = vpop.eup %1657 }
 0x483   : >> { %v980_v36 = vpop.permute.xlu0 %979  ;;  %v1023_v37 = vmul.f32 %v1658_v34, %v1021_v33 }
 0x484   : >> { %v1001_v38 = vadd.f32 %v1000_v35, %v980_v36 }
 0x485   : >> { %v1025_v39 = vsel %vm849_vm3, %v1023_v37, 0.0 }
 0x486   : >> { %1026 = vadd.xlane.f32.xlu0 %v1025_v39  ;;  %v1007_v40 = vsel %vm2318_vm13, %v1001_v38, -3.4028235e+38 }
 0x487   : >> { %v1011_v41 = vsel %vm849_vm3, %v1007_v40, -inf }
 0x488   : >> { %1012 = vmax.xlane.f32.xlu2 %v1011_v41 }
 0x4f9   : >> { %v1027_v49 = vpop.xlane.xlu0 %1026 }
 0x4fa   : >> { %v1031_v50 = vmax.f32 %v1027_v49, 1e-30 }
 0x4fb   : >> { %v1013_v42 = vpop.xlane.xlu2 %1012 }
 0x4fc   : >> { %v1015_v43 = vsub.f32 %v1007_v40, %v1013_v42 }
 0x4fe   : >> { %v1018_v44 = vmul.f32 1.442695, %v1015_v43 }
 0x500   : >> { %1659 = vpow2.f32 %v1018_v44 }
 0x501   : >> { %1661 = vrcp.f32 %v1031_v50 }
 0x506   : >> { %v1660_v45 = vpop.eup %1659 }
 0x507   : >> { %v1024_v46 = vmul.f32 %v1660_v45, %v1021_v33  ;;  %v1662_v53 = vpop.eup %1661 }
 0x508   : >> { %v1035_v55 = vmul.f32 %v1662_v53, %v1023_v37 }
 0x509   : >> { %v1028_v47 = vsel %vm849_vm3, %v1024_v46, 0.0 }
 0x50a   : >> { %1029 = vadd.xlane.f32.xlu2 %v1028_v47 }
 0x57d   : >> { %v1030_v51 = vpop.xlane.xlu2 %1029 }
 0x57e   : >> { %v1032_v52 = vmax.f32 %v1030_v51, 1e-30 }
 0x580   : >> { %1663 = vrcp.f32 %v1032_v52 }
 0x586   : >> { %v1664_v54 = vpop.eup %1663 }
 0x587   : >> { %v1036_v56 = vmul.f32 %v1664_v54, %v1024_v46 }
 0x589   : >> { %v1037_v57 = vpack.c.bf16 %v1036_v56, %v1035_v55 }
 0x58b   : >> { %1473 = vmatmul.msk.bf16.vlgmr.msra.gmra.mxu2 %vm849_vm3, %v1037_v57 }
 0x60e   : >> { %v1060_v58 = vpop.f32.mrf.mxu2 }
 0x60f   : >> { %v1065_v59 = vpack.c.bf16 %v1060_v58, %v1060_v58 }
 0x611   : >> { %1069 = vst.msk [vmem:[%s1068_s21] sm:$0xf] %vm683_vm2, %v1065_v59 }
 0x615   : > { %812 = sbr.rel (!%p810_p4) target bundleno = 424 (0x1a8), region = 166 }
 0x616   : >> { %v1062_v60 = vpop.f32.mrf.mxu2 }
 0x617   : >> { %v1066_v61 = vpack.c.bf16 %v1062_v60, %v1062_v60 }
 0x619   : >> { %1070 = vst.msk [vmem:[%s1068_s21 + $0x4] sm:$0xf] %vm683_vm2, %v1066_v61 }
 0x620   : > { %v1548_v62 = vld [vmem:[#allocation6 + $0x8] sm:$0xff]  ;;  %v1550_v63 = vld [vmem:[#allocation6 + $0x18] sm:$0xff]  ;;  %v1549_v14 = vld [vmem:[#allocation6 + $0x10] sm:$0xff] }
 0x621   : > { %1092 = vrot.lane.b32.xlu0 %v1548_v62, %s1916_s22  ;;  %1106 = vrot.lane.b32.xlu1 %v1550_v63, %s1917_s30  ;;  %v1547_v10 = vld [vmem:[#allocation6] sm:$0xff] }
 0x629   : > { %1099 = vrot.lane.b32.xlu0 %v1549_v14, %s1918_s20 }
 0x693   : > { %v1093_v9 = vpop.permute.xlu0 %1092  ;;  %v1107_v12 = vpop.permute.xlu1 %1106 }
 0x694   : > { %v1111_v7 = vsel %vm849_vm3, %v1547_v10, %v1093_v9 }
 0x69b   : > { %v1100_v8 = vpop.permute.xlu0 %1099 }
 0x69c   : > { %v1114_v15 = vsel %vm1112_vm15, %v1111_v7, %v1100_v8 }
 0x69d   : > { %v1117_v16 = vsel %vm1115_vm0, %v1114_v15, %v1107_v12 }
 0x69e   : > { %1507 = vmatmul.msk.bf16.vlgmr.msra.gmra.mxu0 %vm539_vm1, %v1117_v16 }
 0x71b   : > { %v1156_v3 = vpop.f32.mrf.mxu0 }
 0x71c   : > { %v1157_v4 = vadd.f32 %v1156_v3, %v1119_v5 }
 0x71e   : > { %1161 = vst [vmem:[%s2288_s24] sm:$0xff] %v1157_v4 }
 0x723   : > { %v1158_v6 = vpop.f32.mrf.mxu0 }
 0x724   : > { %v1159_v17 = vadd.f32 %v1158_v6, %v1119_v5 }
 0x726   : > { %1162 = vst [vmem:[%s2288_s24 + $0x8] sm:$0xff] %v1159_v17 }
 0x727   : > { %1842 = shalt.err (!%p1839_p12)
}
 0x728   : > { %s1919_s18 = smov 128   ;;  %s1920_s24 = smov 8  }
 0x729   : > { %1566 = dma.vmem_to_hbm [thread:$0]  (%p2046_p5), %s1177_s26, 256, %s1179_s25, %s1164_s4, %s1919_s18, %s1919_s18, %s1920_s24  }
 0x72a PF: > { %s2439_s19 = sld [smem:[#allocation22_spill]] }
 0x72b   : > { %s2440_s12 = sld [smem:[#allocation21_spill]] }
 0x730   : > { %p1594_p13 = scmp.ge.s32.totalorder %s2439_s19, 2 }
 0x731   : > { %s1193_s22 = sand.u32 1, %s2440_s12  }
 0x732   : > { %p1586_p8 = pnand %p1594_p13, %p2006_p6  ;;  %s1194_s30 = scalar_lea.sflag [#allocation9], %s1193_s22 }
 0x734   : > { %p1587_p7 = pneg %p1586_p8 }
 0x736   : > { %1876 = dma.done.wait (%p1587_p7), %s1194_s30, 256  }
 0x737   : > { %1878 = vsyncadd (%p1587_p7), %s1194_s30, 4294967040  ;;  %s2442_s12 = sld [smem:[#allocation24_spill]]  ;;  %s2444_s30 = smov %s1885_s10 }
 0x738   : > { %s2443_s20 = sld [smem:[#allocation25_spill]]  ;;  %s2445_s10 = smov %s1889_s11 }
 0x73d   : > { %p26_p9 = scmp.ge.s32.totalorder %s2442_s12, 6  }
 0x73e   : > { %s2446_s11 = smov %s2443_s20 }
 0x73f   :  { %28 = sbr.rel (!%p26_p9) target bundleno = 14 (0xe), region = 177 }
 0x744   :  { %1200 = vsyncpa [#allocation8], 1 }
 0x745   :  { %1202 = vsyncpa [#allocation8 + $0x1], 1 }
 0x746   :  { %1203 = vsyncpa [#allocation11], 1 }
 0x747   :  { %1205 = vsyncpa [#allocation11 + $0x1], 1 }
 0x748   :  { %1206 = vsyncpa [#allocation14], 1 }
 0x749   :  { %1207 = vsyncpa [#allocation9], 1 }
 0x74a   :  { %1209 = vsyncpa [#allocation9 + $0x1], 1 }

</bundles_post_ra>
